<compile_context>
chip_gen: v6e
topology: v6e:2x2x1
jax: 0.10.0
libtpu: 0.0.40
codegen_flags: <defaults>
</compile_context>

<pallas_src>
import numpy as np
import jax
import jax.numpy as jnp
from jax import lax
from jax.experimental import pallas as pl
from jax.experimental.pallas import tpu as pltpu


# ----------------------------- Pallas kernel ------------------------------- #
def convnet_kernel(x_ref, m1_ref, b1_ref, m2_ref, b2_ref, sg_ref,
                   fw1_ref, fb1_ref, fw2_ref, fb2_ref, out_ref):
    bf16 = jnp.bfloat16

    def mm(a, b):                                  # bf16 x bf16 -> f32 accumulate
        return jnp.dot(a, b, preferred_element_type=jnp.float32)

    xr = x_ref[...]                                # (T, 112): T = B*7, 4 image rows per kernel row
    T = xr.shape[0]
    B = T // 7

    # Extended packed row m: image rows [4m .. 4m+5] along lanes (tail of the
    # last row per image / per block wraps to existing data; those rows are
    # never selected downstream).
    nxt = jnp.concatenate([xr[1:T, 0:56], xr[0:1, 0:56]], axis=0)    # rows 4m+4, 4m+5
    xe = jnp.concatenate([xr, nxt], axis=1)                          # (T, 168)

    # ---- conv1 (1->16, 3x3, VALID) + ReLU + 2x2 maxpool, fully fused ----
    # Four shifted 84-lane slices are conv rows 4m, 4m+1, 4m+2, 4m+3 (one even
    # and one odd pool row per packed row).  M1's output lanes are ordered
    # [even conv cols | odd conv cols], so the column pool is a lane max.
    a1 = jnp.concatenate([xe[:, 0:84], xe[:, 28:112],
                          xe[:, 56:140], xe[:, 84:168]], axis=0)     # (4T, 84)
    h1 = mm(a1.astype(bf16), m1_ref[...])                            # (4T, 416) f32
    he = jnp.maximum(h1[0:T], h1[T:2 * T])                 # pool rows 2m   (conv rows 4m, 4m+1)
    ho = jnp.maximum(h1[2 * T:3 * T], h1[3 * T:4 * T])     # pool rows 2m+1 (conv rows 4m+2, 4m+3)
    p1e = jnp.maximum(jnp.maximum(he[:, 0:208], he[:, 208:416]) + b1_ref[...], 0.0)   # (T, 208)
    p1o = jnp.maximum(jnp.maximum(ho[:, 0:208], ho[:, 208:416]) + b1_ref[...], 0.0)   # (T, 208)

    # ---- conv2 (16->32, 3x3, VALID) + ReLU + 2x2 maxpool (floor), same scheme ----
    p1e_n = jnp.concatenate([p1e[1:T], p1e[0:1]], axis=0)            # pool1 even rows shifted up
    p1o_n = jnp.concatenate([p1o[1:T], p1o[0:1]], axis=0)            # pool1 odd rows shifted up
    ya = jnp.concatenate([p1e, p1o, p1e_n], axis=1)                  # conv2 rows 2m     (T, 624)
    yb = jnp.concatenate([p1o, p1e_n, p1o_n], axis=1)                # conv2 rows 2m+1   (T, 624)
    a2 = jnp.concatenate([ya, yb], axis=0)                           # (2T, 624)
    h2 = mm(a2.astype(bf16), m2_ref[...])                            # (2T, 320) f32
    hr = jnp.maximum(h2[0:T], h2[T:2 * T])                           # row pool
    p2 = jnp.maximum(jnp.maximum(hr[:, 0:160], hr[:, 160:320]) + b2_ref[...], 0.0)    # (T, 160)

    # TODO(synk): nn.Dropout(0.25)/(0.5) are identity at inference; training-mode
    # random masking is not implemented here.

    # ---- gather the 5 valid pool2 rows per image (h-major), flatten, fc1, fc2 ----
    q = mm(sg_ref[...], p2.astype(bf16))                             # (B*5, 160)
    flat = jnp.concatenate([q[h * B:(h + 1) * B, :] for h in range(5)], axis=1)       # (B, 800)
    z = jnp.maximum(mm(flat.astype(bf16), fw1_ref[...]) + fb1_ref[...], 0.0)          # (B, 64)
    out_ref[...] = mm(z.astype(bf16), fw2_ref[...]) + fb2_ref[...]                    # (B, 128)


# -------------------------- parameter construction ------------------------- #
def init_params(key):
    """PyTorch-shaped parameters, deterministic."""
    ks = jax.random.split(key, 8)
    w1 = jax.random.normal(ks[0], (16, 1, 3, 3), jnp.float32) * (2.0 / 9) ** 0.5
    b1 = jax.random.normal(ks[1], (16,), jnp.float32) * 0.1
    w2 = jax.random.normal(ks[2], (32, 16, 3, 3), jnp.float32) * (2.0 / 144) ** 0.5
    b2 = jax.random.normal(ks[3], (32,), jnp.float32) * 0.1
    fw1 = jax.random.normal(ks[4], (64, 800), jnp.float32) * (2.0 / 800) ** 0.5
    fb1 = jax.random.normal(ks[5], (64,), jnp.float32) * 0.1
    fw2 = jax.random.normal(ks[6], (10, 64), jnp.float32) * (2.0 / 64) ** 0.5
    fb2 = jax.random.normal(ks[7], (10,), jnp.float32) * 0.1
    return w1, b1, w2, b2, fw1, fb1, fw2, fb2


def pack_kernel_params(params, block_b=16):
    """Rearrange PyTorch params into bf16 matmul-friendly operands (B baked into SG)."""
    w1, b1, w2, b2, fw1, fb1, fw2, fb2 = [np.asarray(p, np.float32) for p in params]
    B = block_b
    assert B % 8 == 0, "block_b must be a multiple of 8 (sublane tiling)"

    # conv1 Toeplitz (K = 3*28 = 84).  Output lanes: [even conv cols w=2w' | odd cols w=2w'+1],
    # each block ordered w'*16 + c_out, so the column pool is max(lane[:208], lane[208:]).
    M1 = np.zeros((3 * 28, 2 * 13 * 16), np.float32)
    for kh in range(3):
        for kw in range(3):
            for wp in range(13):
                M1[kh * 28 + 2 * wp + kw, wp * 16:(wp + 1) * 16] = w1[:, 0, kh, kw]
                M1[kh * 28 + 2 * wp + 1 + kw,
                   208 + wp * 16:208 + (wp + 1) * 16] = w1[:, 0, kh, kw]
    b1t = np.tile(b1, 13)[None, :]                                   # (1, 208)

    # conv2 Toeplitz (K = 3*208 = 624) over input lanes w_in*16 + c_in.
    # Output lanes: [even conv cols | odd conv cols]; col 10 dropped (floor pooling).
    M2 = np.zeros((3 * 208, 2 * 5 * 32), np.float32)
    for kh in range(3):
        for kw in range(3):
            for wpp in range(5):
                wi_e = 2 * wpp + kw
                wi_o = 2 * wpp + 1 + kw
                M2[kh * 208 + wi_e * 16:kh * 208 + (wi_e + 1) * 16,
                   wpp * 32:(wpp + 1) * 32] = w2[:, :, kh, kw].T
                M2[kh * 208 + wi_o * 16:kh * 208 + (wi_o + 1) * 16,
                   160 + wpp * 32:160 + (wpp + 1) * 32] = w2[:, :, kh, kw].T
    b2t = np.tile(b2, 5)[None, :]                                    # (1, 160)

    # Gather the valid pool2 rows (h = 0..4) from the (B*7)-row stack into
    # h-major order (row h*B + b <- stack row b*7 + h), so fc1's flatten is a lane concat.
    SG = np.zeros((B * 5, B * 7), np.float32)
    for h in range(5):
        for b in range(B):
            SG[h * B + b, b * 7 + h] = 1.0

    FW1 = fw1.T                                      # (800, 64); rows ordered h*160 + w*32 + c
    fb1r = fb1[None, :]                              # (1, 64)
    FW2 = np.zeros((64, 128), np.float32)            # lane-pad 10 -> 128 for dense stores
    FW2[:, :10] = fw2.T
    fb2r = np.zeros((1, 128), np.float32)
    fb2r[0, :10] = fb2

    bf, f32 = jnp.bfloat16, jnp.float32
    return (jnp.asarray(M1, bf), jnp.asarray(b1t, f32),
            jnp.asarray(M2, bf), jnp.asarray(b2t, f32),
            jnp.asarray(SG, bf),
            jnp.asarray(FW1, bf), jnp.asarray(fb1r, f32),
            jnp.asarray(FW2, bf), jnp.asarray(fb2r, f32))


# ------------------------------- wrapper ----------------------------------- #
def convnet_forward(x_nchw, kparams):
    (M1, b1t, M2, b2t, SG, FW1, fb1, FW2, fb2) = kparams
    B = SG.shape[0] // 5                                     # batch tile baked into SG

    x = jnp.asarray(x_nchw, jnp.float32)[:, 0, :, :]         # (N, 28, 28), Cin=1 squeezed
    N = x.shape[0]
    Np = ((N + B - 1) // B) * B
    if Np != N:
        x = jnp.pad(x, ((0, Np - N), (0, 0), (0, 0)))
    xp = x.reshape(Np * 7, 112)          # 4 consecutive image rows packed per kernel row

    out = pl.pallas_call(
        convnet_kernel,
        out_shape=jax.ShapeDtypeStruct((Np, 128), jnp.float32),
        grid=(Np // B,),
        in_specs=[
            pl.BlockSpec((B * 7, 112), lambda i: (i, 0)),     # packed input, B images per step
            pl.BlockSpec(M1.shape, lambda i: (0, 0)),         # conv1 Toeplitz (even|odd cols)
            pl.BlockSpec(b1t.shape, lambda i: (0, 0)),
            pl.BlockSpec(M2.shape, lambda i: (0, 0)),         # conv2 Toeplitz (even|odd cols)
            pl.BlockSpec(b2t.shape, lambda i: (0, 0)),
            pl.BlockSpec(SG.shape, lambda i: (0, 0)),         # pool2-row gather (h-major)
            pl.BlockSpec(FW1.shape, lambda i: (0, 0)),        # fc1 weight (800, 64)
            pl.BlockSpec(fb1.shape, lambda i: (0, 0)),
            pl.BlockSpec(FW2.shape, lambda i: (0, 0)),        # fc2 weight, lane-padded
            pl.BlockSpec(fb2.shape, lambda i: (0, 0)),
        ],
        out_specs=pl.BlockSpec((B, 128), lambda i: (i, 0)),
        compiler_params=pltpu.CompilerParams(dimension_semantics=("parallel",)),
    )(xp, M1, b1t, M2, b2t, SG, FW1, fb1, FW2, fb2)
    return out[:N, :10]


# ------------------------- plain-JAX reference ------------------------------ #
def reference_forward(x_nchw, params):
    w1, b1, w2, b2, fw1, fb1, fw2, fb2 = params
    dn = ("NCHW", "OIHW", "NCHW")
    y = lax.conv_general_dilated(x_nchw, w1, (1, 1), "VALID", dimension_numbers=dn)
    y = jnp.maximum(y + b1[None, :, None, None], 0.0)
    y = lax.reduce_window(y, -jnp.inf, lax.max, (1, 1, 2, 2), (1, 1, 2, 2), "VALID")
    y = lax.conv_general_dilated(y, w2, (1, 1), "VALID", dimension_numbers=dn)
    y = jnp.maximum(y + b2[None, :, None, None], 0.0)
    y = lax.reduce_window(y, -jnp.inf, lax.max, (1, 1, 2, 2), (1, 1, 2, 2), "VALID")
    y = jnp.transpose(y, (0, 2, 3, 1)).reshape(x_nchw.shape[0], -1)   # permute + flatten
    z = jnp.maximum(y @ fw1.T + fb1, 0.0)
    return z @ fw2.T + fb2


if __name__ == "__main__":
    key = jax.random.PRNGKey(0)
    pkey, xkey = jax.random.split(key)
    params = init_params(pkey)
    kparams = pack_kernel_params(params, block_b=16)

    x = jax.random.normal(xkey, (16, 1, 28, 28), jnp.float32)   # NCHW, like PyTorch MNIST

    out = jax.block_until_ready(convnet_forward(x, kparams))
    ref = jax.block_until_ready(reference_forward(x, params))

    # bf16 MXU operands vs. f32 reference: ~0.3-1% relative error expected.
    np.testing.assert_allclose(np.asarray(out), np.asarray(ref), rtol=4e-2, atol=4e-2)
    print("KERNEL_OK")
</pallas_src>

<mosaic_0001>
module attributes {stable_mosaic.version = 11 : i64} {
  func.func @convnet_kernel(%arg0: i32, %arg1: memref<112x112xf32, #tpu.memory_space<vmem>>, %arg2: memref<84x416xbf16, #tpu.memory_space<vmem>>, %arg3: memref<1x208xf32, #tpu.memory_space<vmem>>, %arg4: memref<624x320xbf16, #tpu.memory_space<vmem>>, %arg5: memref<1x160xf32, #tpu.memory_space<vmem>>, %arg6: memref<80x112xbf16, #tpu.memory_space<vmem>>, %arg7: memref<800x64xbf16, #tpu.memory_space<vmem>>, %arg8: memref<1x64xf32, #tpu.memory_space<vmem>>, %arg9: memref<64x128xbf16, #tpu.memory_space<vmem>>, %arg10: memref<1x128xf32, #tpu.memory_space<vmem>>, %arg11: memref<16x128xf32, #tpu.memory_space<vmem>>) attributes {dimension_semantics = [#tpu.dimension_semantics<parallel>], iteration_bounds = array<i64: 1>, scalar_prefetch = 0 : i64, scratch_operands = 0 : i64, tpu.core_type = #tpu.core_type<tc>, window_params = [{transform_indices = @transform_0, window_bounds = array<i64: 112, 112>}, {pipeline_mode = #tpu.pipeline_mode<synchronous>, transform_indices = @transform_1, window_bounds = array<i64: 84, 416>}, {pipeline_mode = #tpu.pipeline_mode<synchronous>, transform_indices = @transform_2, window_bounds = array<i64: 1, 208>}, {pipeline_mode = #tpu.pipeline_mode<synchronous>, transform_indices = @transform_3, window_bounds = array<i64: 624, 320>}, {pipeline_mode = #tpu.pipeline_mode<synchronous>, transform_indices = @transform_4, window_bounds = array<i64: 1, 160>}, {pipeline_mode = #tpu.pipeline_mode<synchronous>, transform_indices = @transform_5, window_bounds = array<i64: 80, 112>}, {pipeline_mode = #tpu.pipeline_mode<synchronous>, transform_indices = @transform_6, window_bounds = array<i64: 800, 64>}, {pipeline_mode = #tpu.pipeline_mode<synchronous>, transform_indices = @transform_7, window_bounds = array<i64: 1, 64>}, {pipeline_mode = #tpu.pipeline_mode<synchronous>, transform_indices = @transform_8, window_bounds = array<i64: 64, 128>}, {pipeline_mode = #tpu.pipeline_mode<synchronous>, transform_indices = @transform_9, window_bounds = array<i64: 1, 128>}, {transform_indices = @transform_10, window_bounds = array<i64: 16, 128>}]} {
    %c0 = arith.constant 0 : index
    %c0_0 = arith.constant 0 : index
    %0 = vector.load %arg1[%c0, %c0_0] : memref<112x112xf32, #tpu.memory_space<vmem>>, vector<112x112xf32>
    %1 = vector.extract_strided_slice %0 {offsets = [1, 0], sizes = [111, 56], strides = [1, 1]} : vector<112x112xf32> to vector<111x56xf32>
    %2 = vector.extract_strided_slice %0 {offsets = [0, 0], sizes = [1, 56], strides = [1, 1]} : vector<112x112xf32> to vector<1x56xf32>
    %3 = tpu.concatenate %1, %2 in 0 : vector<111x56xf32>, vector<1x56xf32> -> vector<112x56xf32>
    %4 = tpu.concatenate %0, %3 in 1 : vector<112x112xf32>, vector<112x56xf32> -> vector<112x168xf32>
    %5 = vector.extract_strided_slice %4 {offsets = [0, 0], sizes = [112, 84], strides = [1, 1]} : vector<112x168xf32> to vector<112x84xf32>
    %6 = vector.extract_strided_slice %4 {offsets = [0, 28], sizes = [112, 84], strides = [1, 1]} : vector<112x168xf32> to vector<112x84xf32>
    %7 = vector.extract_strided_slice %4 {offsets = [0, 56], sizes = [112, 84], strides = [1, 1]} : vector<112x168xf32> to vector<112x84xf32>
    %8 = vector.extract_strided_slice %4 {offsets = [0, 84], sizes = [112, 84], strides = [1, 1]} : vector<112x168xf32> to vector<112x84xf32>
    %9 = tpu.concatenate %5, %6, %7, %8 in 0 : vector<112x84xf32>, vector<112x84xf32>, vector<112x84xf32>, vector<112x84xf32> -> vector<448x84xf32>
    %10 = arith.truncf %9 : vector<448x84xf32> to vector<448x84xbf16>
    %c0_1 = arith.constant 0 : index
    %c0_2 = arith.constant 0 : index
    %11 = vector.load %arg2[%c0_1, %c0_2] : memref<84x416xbf16, #tpu.memory_space<vmem>>, vector<84x416xbf16>
    %cst = arith.constant dense<0.000000e+00> : vector<448x416xf32>
    %12 = tpu.matmul %10, %11, %cst {dimension_numbers = #tpu.dot_dimension_numbers<[1], [0], [0], [1], [0, 0, 1, 1], [], []>} : vector<448x84xbf16>, vector<84x416xbf16>, vector<448x416xf32> -> vector<448x416xf32>
    %13 = vector.extract_strided_slice %12 {offsets = [0, 0], sizes = [112, 416], strides = [1, 1]} : vector<448x416xf32> to vector<112x416xf32>
    %14 = vector.extract_strided_slice %12 {offsets = [112, 0], sizes = [112, 416], strides = [1, 1]} : vector<448x416xf32> to vector<112x416xf32>
    %15 = arith.maximumf %13, %14 : vector<112x416xf32>
    %16 = vector.extract_strided_slice %12 {offsets = [224, 0], sizes = [112, 416], strides = [1, 1]} : vector<448x416xf32> to vector<112x416xf32>
    %17 = vector.extract_strided_slice %12 {offsets = [336, 0], sizes = [112, 416], strides = [1, 1]} : vector<448x416xf32> to vector<112x416xf32>
    %18 = arith.maximumf %16, %17 : vector<112x416xf32>
    %19 = vector.extract_strided_slice %15 {offsets = [0, 0], sizes = [112, 208], strides = [1, 1]} : vector<112x416xf32> to vector<112x208xf32>
    %20 = vector.extract_strided_slice %15 {offsets = [0, 208], sizes = [112, 208], strides = [1, 1]} : vector<112x416xf32> to vector<112x208xf32>
    %21 = arith.maximumf %19, %20 : vector<112x208xf32>
    %c0_3 = arith.constant 0 : index
    %c0_4 = arith.constant 0 : index
    %22 = vector.load %arg3[%c0_3, %c0_4] : memref<1x208xf32, #tpu.memory_space<vmem>>, vector<1x208xf32>
    %23 = vector.broadcast %22 : vector<1x208xf32> to vector<112x208xf32>
    %24 = arith.addf %21, %23 : vector<112x208xf32>
    %cst_5 = arith.constant 0.000000e+00 : f32
    %25 = vector.broadcast %cst_5 : f32 to vector<112x208xf32>
    %26 = arith.maximumf %24, %25 : vector<112x208xf32>
    %27 = vector.extract_strided_slice %18 {offsets = [0, 0], sizes = [112, 208], strides = [1, 1]} : vector<112x416xf32> to vector<112x208xf32>
    %28 = vector.extract_strided_slice %18 {offsets = [0, 208], sizes = [112, 208], strides = [1, 1]} : vector<112x416xf32> to vector<112x208xf32>
    %29 = arith.maximumf %27, %28 : vector<112x208xf32>
    %c0_6 = arith.constant 0 : index
    %c0_7 = arith.constant 0 : index
    %30 = vector.load %arg3[%c0_6, %c0_7] : memref<1x208xf32, #tpu.memory_space<vmem>>, vector<1x208xf32>
    %31 = vector.broadcast %30 : vector<1x208xf32> to vector<112x208xf32>
    %32 = arith.addf %29, %31 : vector<112x208xf32>
    %cst_8 = arith.constant 0.000000e+00 : f32
    %33 = vector.broadcast %cst_8 : f32 to vector<112x208xf32>
    %34 = arith.maximumf %32, %33 : vector<112x208xf32>
    %35 = vector.extract_strided_slice %26 {offsets = [1, 0], sizes = [111, 208], strides = [1, 1]} : vector<112x208xf32> to vector<111x208xf32>
    %36 = vector.extract_strided_slice %26 {offsets = [0, 0], sizes = [1, 208], strides = [1, 1]} : vector<112x208xf32> to vector<1x208xf32>
    %37 = tpu.concatenate %35, %36 in 0 : vector<111x208xf32>, vector<1x208xf32> -> vector<112x208xf32>
    %38 = vector.extract_strided_slice %34 {offsets = [1, 0], sizes = [111, 208], strides = [1, 1]} : vector<112x208xf32> to vector<111x208xf32>
    %39 = vector.extract_strided_slice %34 {offsets = [0, 0], sizes = [1, 208], strides = [1, 1]} : vector<112x208xf32> to vector<1x208xf32>
    %40 = tpu.concatenate %38, %39 in 0 : vector<111x208xf32>, vector<1x208xf32> -> vector<112x208xf32>
    %41 = tpu.concatenate %26, %34, %37 in 1 : vector<112x208xf32>, vector<112x208xf32>, vector<112x208xf32> -> vector<112x624xf32>
    %42 = tpu.concatenate %34, %37, %40 in 1 : vector<112x208xf32>, vector<112x208xf32>, vector<112x208xf32> -> vector<112x624xf32>
    %43 = tpu.concatenate %41, %42 in 0 : vector<112x624xf32>, vector<112x624xf32> -> vector<224x624xf32>
    %44 = arith.truncf %43 : vector<224x624xf32> to vector<224x624xbf16>
    %c0_9 = arith.constant 0 : index
    %c0_10 = arith.constant 0 : index
    %45 = vector.load %arg4[%c0_9, %c0_10] : memref<624x320xbf16, #tpu.memory_space<vmem>>, vector<624x320xbf16>
    %cst_11 = arith.constant dense<0.000000e+00> : vector<224x320xf32>
    %46 = tpu.matmul %44, %45, %cst_11 {dimension_numbers = #tpu.dot_dimension_numbers<[1], [0], [0], [1], [0, 0, 1, 1], [], []>} : vector<224x624xbf16>, vector<624x320xbf16>, vector<224x320xf32> -> vector<224x320xf32>
    %47 = vector.extract_strided_slice %46 {offsets = [0, 0], sizes = [112, 320], strides = [1, 1]} : vector<224x320xf32> to vector<112x320xf32>
    %48 = vector.extract_strided_slice %46 {offsets = [112, 0], sizes = [112, 320], strides = [1, 1]} : vector<224x320xf32> to vector<112x320xf32>
    %49 = arith.maximumf %47, %48 : vector<112x320xf32>
    %50 = vector.extract_strided_slice %49 {offsets = [0, 0], sizes = [112, 160], strides = [1, 1]} : vector<112x320xf32> to vector<112x160xf32>
    %51 = vector.extract_strided_slice %49 {offsets = [0, 160], sizes = [112, 160], strides = [1, 1]} : vector<112x320xf32> to vector<112x160xf32>
    %52 = arith.maximumf %50, %51 : vector<112x160xf32>
    %c0_12 = arith.constant 0 : index
    %c0_13 = arith.constant 0 : index
    %53 = vector.load %arg5[%c0_12, %c0_13] : memref<1x160xf32, #tpu.memory_space<vmem>>, vector<1x160xf32>
    %54 = vector.broadcast %53 : vector<1x160xf32> to vector<112x160xf32>
    %55 = arith.addf %52, %54 : vector<112x160xf32>
    %cst_14 = arith.constant 0.000000e+00 : f32
    %56 = vector.broadcast %cst_14 : f32 to vector<112x160xf32>
    %57 = arith.maximumf %55, %56 : vector<112x160xf32>
    %c0_15 = arith.constant 0 : index
    %c0_16 = arith.constant 0 : index
    %58 = vector.load %arg6[%c0_15, %c0_16] : memref<80x112xbf16, #tpu.memory_space<vmem>>, vector<80x112xbf16>
    %59 = arith.truncf %57 : vector<112x160xf32> to vector<112x160xbf16>
    %cst_17 = arith.constant dense<0.000000e+00> : vector<80x160xf32>
    %60 = tpu.matmul %58, %59, %cst_17 {dimension_numbers = #tpu.dot_dimension_numbers<[1], [0], [0], [1], [0, 0, 1, 1], [], []>} : vector<80x112xbf16>, vector<112x160xbf16>, vector<80x160xf32> -> vector<80x160xf32>
    %61 = vector.extract_strided_slice %60 {offsets = [0, 0], sizes = [16, 160], strides = [1, 1]} : vector<80x160xf32> to vector<16x160xf32>
    %62 = vector.extract_strided_slice %60 {offsets = [16, 0], sizes = [16, 160], strides = [1, 1]} : vector<80x160xf32> to vector<16x160xf32>
    %63 = vector.extract_strided_slice %60 {offsets = [32, 0], sizes = [16, 160], strides = [1, 1]} : vector<80x160xf32> to vector<16x160xf32>
    %64 = vector.extract_strided_slice %60 {offsets = [48, 0], sizes = [16, 160], strides = [1, 1]} : vector<80x160xf32> to vector<16x160xf32>
    %65 = vector.extract_strided_slice %60 {offsets = [64, 0], sizes = [16, 160], strides = [1, 1]} : vector<80x160xf32> to vector<16x160xf32>
    %66 = tpu.concatenate %61, %62, %63, %64, %65 in 1 : vector<16x160xf32>, vector<16x160xf32>, vector<16x160xf32>, vector<16x160xf32>, vector<16x160xf32> -> vector<16x800xf32>
    %67 = arith.truncf %66 : vector<16x800xf32> to vector<16x800xbf16>
    %c0_18 = arith.constant 0 : index
    %c0_19 = arith.constant 0 : index
    %68 = vector.load %arg7[%c0_18, %c0_19] : memref<800x64xbf16, #tpu.memory_space<vmem>>, vector<800x64xbf16>
    %cst_20 = arith.constant dense<0.000000e+00> : vector<16x64xf32>
    %69 = tpu.matmul %67, %68, %cst_20 {dimension_numbers = #tpu.dot_dimension_numbers<[1], [0], [0], [1], [0, 0, 1, 1], [], []>} : vector<16x800xbf16>, vector<800x64xbf16>, vector<16x64xf32> -> vector<16x64xf32>
    %c0_21 = arith.constant 0 : index
    %c0_22 = arith.constant 0 : index
    %70 = vector.load %arg8[%c0_21, %c0_22] : memref<1x64xf32, #tpu.memory_space<vmem>>, vector<1x64xf32>
    %71 = vector.broadcast %70 : vector<1x64xf32> to vector<16x64xf32>
    %72 = arith.addf %69, %71 : vector<16x64xf32>
    %cst_23 = arith.constant 0.000000e+00 : f32
    %73 = vector.broadcast %cst_23 : f32 to vector<16x64xf32>
    %74 = arith.maximumf %72, %73 : vector<16x64xf32>
    %75 = arith.truncf %74 : vector<16x64xf32> to vector<16x64xbf16>
    %c0_24 = arith.constant 0 : index
    %c0_25 = arith.constant 0 : index
    %76 = vector.load %arg9[%c0_24, %c0_25] : memref<64x128xbf16, #tpu.memory_space<vmem>>, vector<64x128xbf16>
    %cst_26 = arith.constant dense<0.000000e+00> : vector<16x128xf32>
    %77 = tpu.matmul %75, %76, %cst_26 {dimension_numbers = #tpu.dot_dimension_numbers<[1], [0], [0], [1], [0, 0, 1, 1], [], []>} : vector<16x64xbf16>, vector<64x128xbf16>, vector<16x128xf32> -> vector<16x128xf32>
    %c0_27 = arith.constant 0 : index
    %c0_28 = arith.constant 0 : index
    %78 = vector.load %arg10[%c0_27, %c0_28] : memref<1x128xf32, #tpu.memory_space<vmem>>, vector<1x128xf32>
    %79 = vector.broadcast %78 : vector<1x128xf32> to vector<16x128xf32>
    %80 = arith.addf %77, %79 : vector<16x128xf32>
    %c0_29 = arith.constant 0 : index
    %c0_30 = arith.constant 0 : index
    %81 = vector.load %arg11[%c0_29, %c0_30] : memref<16x128xf32, #tpu.memory_space<vmem>>, vector<16x128xf32>
    tpu.vector_store %arg11[%c0_29, %c0_30], %80 {strides = array<i32>} : memref<16x128xf32, #tpu.memory_space<vmem>>, vector<16x128xf32>,
    return
  }
  func.func @transform_0(%arg0: i32) -> (i32, i32) {
    %c0_i32 = arith.constant 0 : i32
    %c0_i32_0 = arith.constant 0 : i32
    return %arg0, %c0_i32 : i32, i32
  }
  func.func @transform_1(%arg0: i32) -> (i32, i32) {
    %c0_i32 = arith.constant 0 : i32
    %c0_i32_0 = arith.constant 0 : i32
    %c0_i32_1 = arith.constant 0 : i32
    return %c0_i32, %c0_i32_0 : i32, i32
  }
  func.func @transform_2(%arg0: i32) -> (i32, i32) {
    %c0_i32 = arith.constant 0 : i32
    %c0_i32_0 = arith.constant 0 : i32
    %c0_i32_1 = arith.constant 0 : i32
    return %c0_i32, %c0_i32_0 : i32, i32
  }
  func.func @transform_3(%arg0: i32) -> (i32, i32) {
    %c0_i32 = arith.constant 0 : i32
    %c0_i32_0 = arith.constant 0 : i32
    %c0_i32_1 = arith.constant 0 : i32
    return %c0_i32, %c0_i32_0 : i32, i32
  }
  func.func @transform_4(%arg0: i32) -> (i32, i32) {
    %c0_i32 = arith.constant 0 : i32
    %c0_i32_0 = arith.constant 0 : i32
    %c0_i32_1 = arith.constant 0 : i32
    return %c0_i32, %c0_i32_0 : i32, i32
  }
  func.func @transform_5(%arg0: i32) -> (i32, i32) {
    %c0_i32 = arith.constant 0 : i32
    %c0_i32_0 = arith.constant 0 : i32
    %c0_i32_1 = arith.constant 0 : i32
    return %c0_i32, %c0_i32_0 : i32, i32
  }
  func.func @transform_6(%arg0: i32) -> (i32, i32) {
    %c0_i32 = arith.constant 0 : i32
    %c0_i32_0 = arith.constant 0 : i32
    %c0_i32_1 = arith.constant 0 : i32
    return %c0_i32, %c0_i32_0 : i32, i32
  }
  func.func @transform_7(%arg0: i32) -> (i32, i32) {
    %c0_i32 = arith.constant 0 : i32
    %c0_i32_0 = arith.constant 0 : i32
    %c0_i32_1 = arith.constant 0 : i32
    return %c0_i32, %c0_i32_0 : i32, i32
  }
  func.func @transform_8(%arg0: i32) -> (i32, i32) {
    %c0_i32 = arith.constant 0 : i32
    %c0_i32_0 = arith.constant 0 : i32
    %c0_i32_1 = arith.constant 0 : i32
    return %c0_i32, %c0_i32_0 : i32, i32
  }
  func.func @transform_9(%arg0: i32) -> (i32, i32) {
    %c0_i32 = arith.constant 0 : i32
    %c0_i32_0 = arith.constant 0 : i32
    %c0_i32_1 = arith.constant 0 : i32
    return %c0_i32, %c0_i32_0 : i32, i32
  }
  func.func @transform_10(%arg0: i32) -> (i32, i32) {
    %c0_i32 = arith.constant 0 : i32
    %c0_i32_0 = arith.constant 0 : i32
    return %arg0, %c0_i32 : i32, i32
  }
}

</mosaic_0001>

<bundles_post_ra>
// kernel: tpu_custom_call.1
= control target key start
LH: loop header
LB: loop body
LE: loop exit
PB: predicated region body
PF: predicated region fallthrough
CT: control target
= control target key end

     0   :  { %vm65_vm0 = vcmask 1046528   ;;  %vm625_vm1 = vcmask 1041408   ;;  %s7041_s25 = smov 112   ;;  %v11287_v57 = vmov 0   ;;  %s11276_s0 = inlined_call_operand.vmem [shape: f32[112,112], index: 0, kind: input, shape index: {}]   ;;  %s11277_s1 = inlined_call_operand.vmem [shape: bf16[84,416], index: 1, kind: input, shape index: {}]   ;;  %s11278_s2 = inlined_call_operand.vmem [shape: f32[1,208], index: 2, kind: input, shape index: {}]   ;;  %s11279_s3 = inlined_call_operand.vmem [shape: bf16[624,320], index: 3, kind: input, shape index: {}]   ;;  %s11280_s4 = inlined_call_operand.vmem [shape: f32[1,160], index: 4, kind: input, shape index: {}]   ;;  %s11281_s5 = inlined_call_operand.vmem [shape: bf16[80,112], index: 5, kind: input, shape index: {}]   ;;  %s11282_s6 = inlined_call_operand.vmem [shape: bf16[800,64], index: 6, kind: input, shape index: {}]   ;;  %s11283_s7 = inlined_call_operand.vmem [shape: f32[1,64], index: 7, kind: input, shape index: {}]   ;;  %s11284_s8 = inlined_call_operand.vmem [shape: bf16[64,128], index: 8, kind: input, shape index: {}]   ;;  %s11285_s9 = inlined_call_operand.vmem [shape: f32[1,128], index: 9, kind: input, shape index: {}]   ;;  %s11286_s10 = inlined_call_operand.hbm [shape: f32[16,128], index: 10, kind: output, shape index: {}]  }
   0x1   :  { %v7114_v0 = vld [vmem:[%s11276_s0] sm:$0xff]  ;;  %v7119_v1 = vld [vmem:[%s11276_s0 + $0x8] sm:$0xff]  ;;  %v7124_v2 = vld [vmem:[%s11276_s0 + $0x10] sm:$0xff]  ;;  %670 = vmatprep.mubr.bf16.mxu0 %v11287_v57  ;;  %983 = vmatprep.mubr.bf16.mxu1 %v11287_v57 }
   0x2   :  { %v66_v3 = vrot.slane %v7114_v0, 1  ;;  %v67_v4 = vrot.slane %v7119_v1, 1  ;;  %v69_v5 = vrot.slane %v7124_v2, 1  ;;  %v7132_v6 = vld [vmem:[%s11276_s0 + $0x20] sm:$0xff]  ;;  %v7137_v7 = vld [vmem:[%s11276_s0 + $0x28] sm:$0xff]  ;;  %v7142_v8 = vld [vmem:[%s11276_s0 + $0x30] sm:$0xff] }
   0x3   :  { %v73_v9 = vrot.slane %v7132_v6, 1  ;;  %v75_v10 = vrot.slane %v7137_v7, 1  ;;  %v77_v11 = vrot.slane %v7142_v8, 1  ;;  %v7150_v12 = vld [vmem:[%s11276_s0 + $0x18] sm:$0xff]  ;;  %v7160_v14 = vld [vmem:[%s11276_s0 + $0x40] sm:$0xff]  ;;  %v7169_v19 = vld [vmem:[%s11276_s0 + $0x48] sm:$0xff] }
   0x4   :  { %v7155_v13 = vld [vmem:[%s11276_s0 + $0x38] sm:$0xff]  ;;  %v68_v15 = vsel %vm65_vm0, %v66_v3, %v67_v4  ;;  %v70_v16 = vsel %vm65_vm0, %v67_v4, %v69_v5  ;;  %v71_v17 = vrot.slane %v7150_v12, 1  ;;  %v7174_v20 = vld [vmem:[%s11276_s0 + $0x50] sm:$0xff]  ;;  %v81_v25 = vrot.slane %v7160_v14, 1  ;;  %v7187_v26 = vld [vmem:[%s11276_s0 + $0x60] sm:$0xff] }
   0x5   :  { %v79_v18 = vrot.slane %v7155_v13, 1  ;;  %v7179_v21 = vld [vmem:[%s11276_s0 + $0x58] sm:$0xff]  ;;  %v6250_v22 = vpack.i.bf16 %v70_v16, %v68_v15  ;;  %v76_v23 = vsel %vm65_vm0, %v73_v9, %v75_v10  ;;  %v78_v24 = vsel %vm65_vm0, %v75_v10, %v77_v11  ;;  %v7192_v27 = vld [vmem:[%s11276_s0 + $0x68] sm:$0xff]  ;;  %v428_v28 = vld [vmem:[%s11277_s1 + $0xa0] sm:$0x33] }
   0x6   :  { %v6260_v29 = vpack.i.bf16 %v78_v24, %v76_v23  ;;  %v72_v30 = vsel %vm65_vm0, %v69_v5, %v71_v17  ;;  %v74_v31 = vsel %vm65_vm0, %v71_v17, %v73_v9  ;;  %v429_v33 = vld [vmem:[%s11277_s1 + $0xa8] sm:$0x33]  ;;  %v83_v36 = vrot.slane %v7169_v19, 1  ;;  %v6774_v54 = vld [vmem:[%s11277_s1 + $0x84] ss:$16 sps:$4 sm:$0xff]  }
   0x7   :  { %v80_v32 = vsel %vm65_vm0, %v77_v11, %v79_v18  ;;  %6251 = vrot.lane.b32.xlu0 %v6250_v22, %s7041_s25  ;;  %v6255_v34 = vpack.i.bf16 %v74_v31, %v72_v30  ;;  %v82_v35 = vsel %vm65_vm0, %v79_v18, %v81_v25  ;;  %v85_v37 = vrot.slane %v7174_v20, 1  ;;  %v6776_v56 = vld [vmem:[%s11277_s1 + $0x8c] ss:$16 sps:$4 sm:$0xff]   ;;  %v6778_v59 = vld [vmem:[%s11277_s1 + $0x80] ss:$16 sps:$4 sm:$0xff]  }
   0x8   :  { %6261 = vrot.lane.b32.xlu1 %v6260_v29, %s7041_s25  ;;  %v6265_v38 = vpack.i.bf16 %v82_v35, %v80_v32  ;;  %v87_v39 = vrot.slane %v7179_v21, 1  ;;  %v89_v40 = vrot.slane %v7187_v26, 1  ;;  %v91_v41 = vrot.slane %v7192_v27, 1  ;;  %v6779_v61 = vld [vmem:[%s11277_s1 + $0x88] ss:$16 sps:$4 sm:$0xff]  }
   0x9   :  { %v84_v42 = vsel %vm65_vm0, %v81_v25, %v83_v36  ;;  %v86_v43 = vsel %vm65_vm0, %v83_v36, %v85_v37  ;;  %v5604_v44 = vcombine.high %v428_v28, %v428_v28  ;;  %v5606_v45 = vcombine.high %v429_v33, %v429_v33  ;;  %v6780_v62 = vld [vmem:[%s11277_s1 + $0x64] ss:$16 sps:$4 sm:$0xff]   ;;  %v6782_v63 = vld [vmem:[%s11277_s1 + $0x6c] ss:$16 sps:$4 sm:$0xff]   ;;  %v6785_v4 = vld [vmem:[%s11277_s1 + $0x68] ss:$16 sps:$4 sm:$0xff]  }
   0xa   :  { %v88_v46 = vsel %vm65_vm0, %v85_v37, %v87_v39  ;;  %v90_v47 = vsel %vm65_vm0, %v87_v39, %v89_v40  ;;  %v6270_v48 = vpack.i.bf16 %v86_v43, %v84_v42  ;;  %v92_v49 = vsel %vm65_vm0, %v89_v40, %v91_v41  ;;  %v6786_v5 = vld [vmem:[%s11277_s1 + $0x44] ss:$16 sps:$4 sm:$0xff]   ;;  %v6788_v9 = vld [vmem:[%s11277_s1 + $0x4c] ss:$16 sps:$4 sm:$0xff]   ;;  %v6790_v10 = vld [vmem:[%s11277_s1 + $0x40] ss:$16 sps:$4 sm:$0xff]  }
   0xb   :  { %6256 = vrot.lane.b32.xlu0 %v6255_v34, %s7041_s25  ;;  %5607 = vmatprep.subr.msk.bf16.mxu0 %vm625_vm1, %v5604_v44  ;;  %v5603_v50 = vcombine.low %v428_v28, %v428_v28  ;;  %v6275_v51 = vpack.i.bf16 %v90_v47, %v88_v46  ;;  %v95_v52 = vsel %vm65_vm0, %v91_v41, %v66_v3  ;;  %v6784_v3 = vld [vmem:[%s11277_s1 + $0x60] ss:$16 sps:$4 sm:$0xff]   ;;  %v6791_v11 = vld [vmem:[%s11277_s1 + $0x48] ss:$16 sps:$4 sm:$0xff]   ;;  %v6792_v15 = vld [vmem:[%s11277_s1 + $0x24] ss:$16 sps:$4 sm:$0xff]  }
   0xc   :  { %6266 = vrot.lane.b32.xlu1 %v6265_v38, %s7041_s25  ;;  %5636 = vmatprep.subr.msk.bf16.mxu1 %vm625_vm1, %v5606_v45  ;;  %v5605_v53 = vcombine.low %v429_v33, %v429_v33  ;;  %v6280_v60 = vpack.i.bf16 %v95_v52, %v92_v49  ;;  %v6794_v16 = vld [vmem:[%s11277_s1 + $0x2c] ss:$16 sps:$4 sm:$0xff]   ;;  %v6796_v17 = vld [vmem:[%s11277_s1 + $0x20] ss:$16 sps:$4 sm:$0xff]   ;;  %v6797_v18 = vld [vmem:[%s11277_s1 + $0x28] ss:$16 sps:$4 sm:$0xff]  }
   0xd   :  { %v627_v55 = vsel %vm625_vm1, %v5603_v50, 0  ;;  %v6798_v22 = vld [vmem:[%s11277_s1 + $0x4] ss:$16 sps:$4 sm:$0xff]   ;;  %v6800_v23 = vld [vmem:[%s11277_s1 + $0xc] ss:$16 sps:$4 sm:$0xff]  }
   0xe   :  { %643 = vmatpush1.bf16.msra.mxu0 %v627_v55  ;;  %v633_v58 = vsel %vm625_vm1, %v5605_v53, 0  ;;  %v6802_v24 = vld [vmem:[%s11277_s1] ss:$16 sps:$4 sm:$0xff]   ;;  %v6803_v25 = vld [vmem:[%s11277_s1 + $0x8] ss:$16 sps:$4 sm:$0xff]  }
   0xf   :  { %6271 = vrot.lane.b32.xlu0 %v6270_v48, %s7041_s25  ;;  %956 = vmatpush1.bf16.msra.mxu1 %v633_v58 }
  0x10   :  { %6276 = vrot.lane.b32.xlu1 %v6275_v51, %s7041_s25  ;;  %644 = vmatprep.subr.bf16.mxu0 %v6774_v54 }
  0x11   :  { %957 = vmatprep.subr.bf16.mxu1 %v6776_v56 }
  0x12   :  { %645 = vmatpush1.bf16.msra.mxu0 %v6778_v59 }
  0x13   :  { %6281 = vrot.lane.b32.xlu0 %v6280_v60, %s7041_s25  ;;  %958 = vmatpush1.bf16.msra.mxu1 %v6779_v61 }
  0x14   :  { %646 = vmatprep.subr.bf16.mxu0 %v6780_v62  ;;  %959 = vmatprep.subr.bf16.mxu1 %v6782_v63 }
  0x16   :  { %647 = vmatpush1.bf16.msra.mxu0 %v6784_v3 }
  0x17   :  { %960 = vmatpush1.bf16.msra.mxu1 %v6785_v4  ;;  %648 = vmatprep.subr.bf16.mxu0 %v6786_v5 }
  0x18   :  { %961 = vmatprep.subr.bf16.mxu1 %v6788_v9 }
  0x1a   :  { %649 = vmatpush1.bf16.msra.mxu0 %v6790_v10 }
  0x1b   :  { %962 = vmatpush1.bf16.msra.mxu1 %v6791_v11  ;;  %650 = vmatprep.subr.bf16.mxu0 %v6792_v15 }
  0x1c   :  { %963 = vmatprep.subr.bf16.mxu1 %v6794_v16 }
  0x1e   :  { %651 = vmatpush1.bf16.msra.mxu0 %v6796_v17 }
  0x1f   :  { %964 = vmatpush1.bf16.msra.mxu1 %v6797_v18  ;;  %652 = vmatprep.subr.bf16.mxu0 %v6798_v22 }
  0x20   :  { %965 = vmatprep.subr.bf16.mxu1 %v6800_v23 }
  0x22   :  { %653 = vmatpush1.bf16.msra.mxu0 %v6802_v24 }
  0x23   :  { %966 = vmatpush1.bf16.msra.mxu1 %v6803_v25 }
  0x24   :  { %15 = vsyncpa [#allocation3], 0  ;;  %vm139_vm2 = vcmask 916480   ;;  %vm540_vm3 = vcmask 687104   ;;  %s7043_s1 = smov 100   ;;  %s7044_s24 = smov 72  }
  0x25   :  { %s7045_s0 = smov 44   ;;  %vm266_vm4 = vcmask 588800   ;;  %vm351_vm5 = vcmask 359424   ;;  %s7046_s26 = smov 48   ;;  %vm1502_vm6 = vcmask 392192   ;;  %vm2153_vm7 = vcmask 654336  }
  0x26   :  { %vm2268_vm8 = vcmask 261120   ;;  %vm4551_vm9 = vcmask 785408   ;;  %s7050_s27 = smov 64   ;;  %vm4867_vm10 = vcmask 523264   ;;  %vm7052_vm11 = vmmov 0   ;;  %s7053_s23 = smov [#allocation2]  }
  0x79   :  { %v7288_v28 = vpop.permute.xlu0 %6251 }
  0x7a   :  { %v6254_v29 = vunpack.i.h.bf16 %v7288_v28  ;;  %v6253_v30 = vunpack.i.l.bf16 %v7288_v28  ;;  %v7292_v31 = vpop.permute.xlu1 %6261 }
  0x7b   :  { %v6264_v32 = vunpack.i.h.bf16 %v7292_v31  ;;  %v6263_v33 = vunpack.i.l.bf16 %v7292_v31 }
  0x7c   :  { %v140_v34 = vsel %vm139_vm2, %v7114_v0, %v6253_v30  ;;  %v141_v35 = vsel %vm139_vm2, %v7119_v1, %v6254_v29 }
  0x7d   :  { %v6257_v36 = vpop.permute.xlu0 %6256  ;;  %v6285_v37 = vpack.i.bf16 %v141_v35, %v140_v34  ;;  %v380_v38 = vpack.c.bf16 %v141_v35, %v140_v34  ;;  %v7304_v39 = vsel %vm139_vm2, %v7132_v6, %v6263_v33  ;;  %v7310_v40 = vsel %vm139_vm2, %v7137_v7, %v6264_v32 }
  0x7e   :  { %v6259_v0 = vunpack.i.h.bf16 %v6257_v36  ;;  %v6258_v41 = vunpack.i.l.bf16 %v6257_v36  ;;  %v7312_v42 = vpop.permute.xlu1 %6266  ;;  %v6295_v43 = vpack.i.bf16 %v7310_v40, %v7304_v39  ;;  %v6320_v62 = vpack.i.bf16 %v6253_v30, %v140_v34 }
  0x7f   :  { %6286 = vrot.lane.b32.xlu1 %v6285_v37, %s7043_s1  ;;  %5608 = vmatmul.mubr.msk.bf16.vlgmr.msra.gmra.mxu0 %vm540_vm3, %v380_v38  ;;  %v6269_v1 = vunpack.i.h.bf16 %v7312_v42  ;;  %v6268_v6 = vunpack.i.l.bf16 %v7312_v42  ;;  %v6325_v63 = vpack.i.bf16 %v6254_v29, %v141_v35  ;;  %v6340_v4 = vpack.i.bf16 %v6263_v33, %v7304_v39 }
  0x80   :  { %5637 = vmatmul.mubr.msk.bf16.vlgmr.msra.gmra.mxu1 %vm540_vm3, %v380_v38  ;;  %v142_v7 = vsel %vm139_vm2, %v7124_v2, %v6258_v41  ;;  %v143_v44 = vsel %vm139_vm2, %v7150_v12, %v6259_v0  ;;  %680 = vmatprep.mubr.bf16.mxu0 %v11287_v57  ;;  %v6345_v5 = vpack.i.bf16 %v6264_v32, %v7310_v40 }
  0x81   :  { %v7326_v45 = vpop.permute.xlu0 %6271  ;;  %v6290_v46 = vpack.i.bf16 %v143_v44, %v142_v7  ;;  %993 = vmatprep.mubr.bf16.mxu1 %v11287_v57  ;;  %v146_v47 = vsel %vm139_vm2, %v7142_v8, %v6268_v6  ;;  %v147_v48 = vsel %vm139_vm2, %v7155_v13, %v6269_v1  ;;  %v381_v54 = vpack.c.bf16 %v143_v44, %v142_v7 }
  0x82   :  { %v6274_v2 = vunpack.i.h.bf16 %v7326_v45  ;;  %v6273_v49 = vunpack.i.l.bf16 %v7326_v45  ;;  %v6277_v12 = vpop.permute.xlu1 %6276  ;;  %v6300_v52 = vpack.i.bf16 %v147_v48, %v146_v47  ;;  %v383_v3 = vpack.c.bf16 %v147_v48, %v146_v47 }
  0x83   :  { %6291 = vrot.lane.b32.xlu0 %v6290_v46, %s7043_s1  ;;  %6296 = vrot.lane.b32.xlu1 %v6295_v43, %s7043_s1  ;;  %v6279_v50 = vunpack.i.h.bf16 %v6277_v12  ;;  %v6278_v51 = vunpack.i.l.bf16 %v6277_v12  ;;  %v6350_v9 = vpack.i.bf16 %v6268_v6, %v146_v47  ;;  %v6355_v10 = vpack.i.bf16 %v6269_v1, %v147_v48 }
  0x84   :  { %v148_v8 = vsel %vm139_vm2, %v7160_v14, %v6273_v49  ;;  %v149_v53 = vsel %vm139_vm2, %v7169_v19, %v6274_v2 }
  0x85   :  { %v6282_v13 = vpop.permute.xlu0 %6281  ;;  %v6305_v55 = vpack.i.bf16 %v149_v53, %v148_v8  ;;  %v150_v56 = vsel %vm139_vm2, %v7174_v20, %v6278_v51  ;;  %v151_v58 = vsel %vm139_vm2, %v7179_v21, %v6279_v50  ;;  %v382_v21 = vpack.c.bf16 %v7310_v40, %v7304_v39 }
  0x86   :  { %v6284_v59 = vunpack.i.h.bf16 %v6282_v13  ;;  %v6283_v60 = vunpack.i.l.bf16 %v6282_v13  ;;  %v6310_v61 = vpack.i.bf16 %v151_v58, %v150_v56  ;;  %v6360_v11 = vpack.i.bf16 %v6273_v49, %v148_v8 }
  0x87   :  { %6301 = vrot.lane.b32.xlu0 %v6300_v52, %s7043_s1  ;;  %6306 = vrot.lane.b32.xlu1 %v6305_v55, %s7043_s1  ;;  %v6365_v15 = vpack.i.bf16 %v6274_v2, %v149_v53  ;;  %v384_v16 = vpack.c.bf16 %v149_v53, %v148_v8  ;;  %v6370_v17 = vpack.i.bf16 %v6278_v51, %v150_v56 }
  0x88   :  { %5609 = vmatmul.mubr.msk.bf16.gmra.mxu0 %vm540_vm3, %v381_v54  ;;  %5638 = vmatmul.mubr.msk.bf16.gmra.mxu1 %vm540_vm3, %v381_v54  ;;  %v152_v14 = vsel %vm139_vm2, %v7187_v26, %v6283_v60  ;;  %v153_v19 = vsel %vm139_vm2, %v7192_v27, %v6284_v59  ;;  %v6330_v26 = vpack.i.bf16 %v6258_v41, %v142_v7 }
  0x89   :  { %v6315_v20 = vpack.i.bf16 %v153_v19, %v152_v14  ;;  %690 = vmatprep.mubr.bf16.mxu0 %v11287_v57  ;;  %1003 = vmatprep.mubr.bf16.mxu1 %v11287_v57  ;;  %v6335_v27 = vpack.i.bf16 %v6259_v0, %v143_v44  ;;  %v6375_v18 = vpack.i.bf16 %v6279_v50, %v151_v58 }
  0x8a   :  { %v6380_v22 = vpack.i.bf16 %v6283_v60, %v152_v14  ;;  %v6385_v23 = vpack.i.bf16 %v6284_v59, %v153_v19  ;;  %v385_v24 = vpack.c.bf16 %v151_v58, %v150_v56  ;;  %v386_v25 = vpack.c.bf16 %v153_v19, %v152_v14 }
  0x8b   :  { %6311 = vrot.lane.b32.xlu0 %v6310_v61, %s7043_s1  ;;  %6316 = vrot.lane.b32.xlu1 %v6315_v20, %s7043_s1  ;;  %s5572_s1 = sshll.u32 %s7053_s23, 4  ;;  %s5573_s1 = int_to_ptr.vmem [resolvable:$true] %s5572_s1 }
  0x8c   :  { %p7024_p1 = scmp.lt.s32.totalorder %s5573_s1, %s5573_s1 }
  0x8f   :  { %6321 = vrot.lane.b32.xlu0 %v6320_v62, %s7044_s24  ;;  %6326 = vrot.lane.b32.xlu1 %v6325_v63, %s7044_s24 }
  0x90   :  { %5610 = vmatmul.mubr.msk.bf16.gmra.mxu0 %vm540_vm3, %v382_v21  ;;  %5639 = vmatmul.mubr.msk.bf16.gmra.mxu1 %vm540_vm3, %v382_v21 }
  0x91   :  { %700 = vmatprep.mubr.bf16.mxu0 %v11287_v57  ;;  %1013 = vmatprep.mubr.bf16.mxu1 %v11287_v57 }
  0x93   :  { %6331 = vrot.lane.b32.xlu0 %v6330_v26, %s7044_s24  ;;  %6336 = vrot.lane.b32.xlu1 %v6335_v27, %s7044_s24 }
  0x97   :  { %6341 = vrot.lane.b32.xlu0 %v6340_v4, %s7044_s24  ;;  %6346 = vrot.lane.b32.xlu1 %v6345_v5, %s7044_s24 }
  0x98   :  { %5611 = vmatmul.mubr.msk.bf16.gmra.mxu0 %vm540_vm3, %v383_v3  ;;  %5640 = vmatmul.mubr.msk.bf16.gmra.mxu1 %vm540_vm3, %v383_v3 }
  0x99   :  { %710 = vmatprep.mubr.bf16.mxu0 %v11287_v57  ;;  %1023 = vmatprep.mubr.bf16.mxu1 %v11287_v57 }
  0x9b   :  { %6351 = vrot.lane.b32.xlu0 %v6350_v9, %s7044_s24  ;;  %6356 = vrot.lane.b32.xlu1 %v6355_v10, %s7044_s24 }
  0x9f   :  { %6361 = vrot.lane.b32.xlu0 %v6360_v11, %s7044_s24  ;;  %6366 = vrot.lane.b32.xlu1 %v6365_v15, %s7044_s24 }
  0xa0   :  { %5612 = vmatmul.mubr.msk.bf16.gmra.mxu0 %vm540_vm3, %v384_v16  ;;  %5641 = vmatmul.mubr.msk.bf16.gmra.mxu1 %vm540_vm3, %v384_v16 }
  0xa1   :  { %720 = vmatprep.mubr.bf16.mxu0 %v11287_v57  ;;  %1033 = vmatprep.mubr.bf16.mxu1 %v11287_v57 }
  0xa3   :  { %6371 = vrot.lane.b32.xlu0 %v6370_v17, %s7044_s24  ;;  %6376 = vrot.lane.b32.xlu1 %v6375_v18, %s7044_s24 }
  0xa7   :  { %6381 = vrot.lane.b32.xlu0 %v6380_v22, %s7044_s24  ;;  %6386 = vrot.lane.b32.xlu1 %v6385_v23, %s7044_s24 }
  0xa8   :  { %5613 = vmatmul.mubr.msk.bf16.gmra.mxu0 %vm540_vm3, %v385_v24  ;;  %5642 = vmatmul.mubr.msk.bf16.gmra.mxu1 %vm540_vm3, %v385_v24 }
  0xa9   :  { %730 = vmatprep.mubr.bf16.mxu0 %v11287_v57  ;;  %1043 = vmatprep.mubr.bf16.mxu1 %v11287_v57 }
  0xab   :  { %6391 = vrot.lane.b32.xlu0 %v6320_v62, %s7045_s0  ;;  %6396 = vrot.lane.b32.xlu1 %v6325_v63, %s7045_s0 }
  0xaf   :  { %6401 = vrot.lane.b32.xlu0 %v6330_v26, %s7045_s0  ;;  %6406 = vrot.lane.b32.xlu1 %v6335_v27, %s7045_s0 }
  0xb0   :  { %5614 = vmatmul.mubr.msk.bf16.gmra.mxu0 %vm540_vm3, %v386_v25  ;;  %5643 = vmatmul.mubr.msk.bf16.gmra.mxu1 %vm540_vm3, %v386_v25 }
  0xb1   :  { %740 = vmatprep.mubr.bf16.mxu0 %v11287_v57  ;;  %1053 = vmatprep.mubr.bf16.mxu1 %v11287_v57 }
  0xb3   :  { %6411 = vrot.lane.b32.xlu0 %v6340_v4, %s7045_s0  ;;  %6416 = vrot.lane.b32.xlu1 %v6345_v5, %s7045_s0 }
  0xb7   :  { %6421 = vrot.lane.b32.xlu0 %v6350_v9, %s7045_s0  ;;  %6426 = vrot.lane.b32.xlu1 %v6355_v10, %s7045_s0 }
  0xbb   :  { %6431 = vrot.lane.b32.xlu0 %v6360_v11, %s7045_s0  ;;  %6436 = vrot.lane.b32.xlu1 %v6365_v15, %s7045_s0 }
  0xbf   :  { %6441 = vrot.lane.b32.xlu0 %v6370_v17, %s7045_s0  ;;  %6446 = vrot.lane.b32.xlu1 %v6375_v18, %s7045_s0 }
  0xc3   :  { %6451 = vrot.lane.b32.xlu0 %v6380_v22, %s7045_s0  ;;  %6456 = vrot.lane.b32.xlu1 %v6385_v23, %s7045_s0  ;;  %s7048_s0 = smov 32  }
  0xf1   :  { %v6287_v28 = vpop.permute.xlu1 %6286 }
  0xf2   :  { %v6289_v29 = vunpack.i.h.bf16 %v6287_v28  ;;  %v6288_v30 = vunpack.i.l.bf16 %v6287_v28 }
  0xf4   :  { %v387_v31 = vpack.c.bf16 %v6289_v29, %v6288_v30 }
  0xf5   :  { %v6292_v32 = vpop.permute.xlu0 %6291  ;;  %v6297_v36 = vpop.permute.xlu1 %6296 }
  0xf6   :  { %v6294_v33 = vunpack.i.h.bf16 %v6292_v32  ;;  %v6293_v34 = vunpack.i.l.bf16 %v6292_v32  ;;  %5615 = vmatmul.mubr.msk.bf16.gmra.mxu0 %vm540_vm3, %v387_v31  ;;  %5644 = vmatmul.mubr.msk.bf16.gmra.mxu1 %vm540_vm3, %v387_v31  ;;  %v6299_v37 = vunpack.i.h.bf16 %v6297_v36  ;;  %v6298_v38 = vunpack.i.l.bf16 %v6297_v36 }
  0xf7   :  { %750 = vmatprep.mubr.bf16.mxu0 %v11287_v57  ;;  %1063 = vmatprep.mubr.bf16.mxu1 %v11287_v57 }
  0xf8   :  { %v388_v35 = vpack.c.bf16 %v6294_v33, %v6293_v34  ;;  %v389_v39 = vpack.c.bf16 %v6299_v37, %v6298_v38 }
  0xf9   :  { %v6302_v40 = vpop.permute.xlu0 %6301  ;;  %v6307_v1 = vpop.permute.xlu1 %6306 }
  0xfa   :  { %v6304_v0 = vunpack.i.h.bf16 %v6302_v40  ;;  %v6303_v41 = vunpack.i.l.bf16 %v6302_v40  ;;  %v6309_v6 = vunpack.i.h.bf16 %v6307_v1  ;;  %v6308_v43 = vunpack.i.l.bf16 %v6307_v1 }
  0xfc   :  { %v390_v42 = vpack.c.bf16 %v6304_v0, %v6303_v41  ;;  %v391_v7 = vpack.c.bf16 %v6309_v6, %v6308_v43 }
  0xfd   :  { %v6312_v44 = vpop.permute.xlu0 %6311  ;;  %v6317_v48 = vpop.permute.xlu1 %6316 }
  0xfe   :  { %5616 = vmatmul.mubr.msk.bf16.gmra.mxu0 %vm540_vm3, %v388_v35  ;;  %5645 = vmatmul.mubr.msk.bf16.gmra.mxu1 %vm540_vm3, %v388_v35  ;;  %v6314_v45 = vunpack.i.h.bf16 %v6312_v44  ;;  %v6313_v46 = vunpack.i.l.bf16 %v6312_v44  ;;  %v6319_v2 = vunpack.i.h.bf16 %v6317_v48  ;;  %v6318_v49 = vunpack.i.l.bf16 %v6317_v48 }
  0xff   :  { %760 = vmatprep.mubr.bf16.mxu0 %v11287_v57  ;;  %1073 = vmatprep.mubr.bf16.mxu1 %v11287_v57 }
 0x100   :  { %v392_v47 = vpack.c.bf16 %v6314_v45, %v6313_v46  ;;  %v393_v12 = vpack.c.bf16 %v6319_v2, %v6318_v49 }
 0x101   :  { %v6322_v50 = vpop.permute.xlu0 %6321  ;;  %v6327_v51 = vpop.permute.xlu1 %6326 }
 0x102   :  { %v6324_v52 = vunpack.i.h.bf16 %v6322_v50  ;;  %v6323_v8 = vunpack.i.l.bf16 %v6322_v50  ;;  %v6329_v53 = vunpack.i.h.bf16 %v6327_v51  ;;  %v6328_v54 = vunpack.i.l.bf16 %v6327_v51 }
 0x104   :  { %v267_v13 = vsel %vm266_vm4, %v6323_v8, %v6324_v52  ;;  %v268_v55 = vsel %vm266_vm4, %v6328_v54, %v6329_v53 }
 0x105   :  { %v6332_v56 = vpop.permute.xlu0 %6331  ;;  %v6337_v58 = vpop.permute.xlu1 %6336  ;;  %v394_v59 = vpack.c.bf16 %v268_v55, %v267_v13 }
 0x106   :  { %5617 = vmatmul.mubr.msk.bf16.gmra.mxu0 %vm540_vm3, %v389_v39  ;;  %5646 = vmatmul.mubr.msk.bf16.gmra.mxu1 %vm540_vm3, %v389_v39  ;;  %v6334_v60 = vunpack.i.h.bf16 %v6332_v56  ;;  %v6333_v61 = vunpack.i.l.bf16 %v6332_v56  ;;  %v6339_v14 = vunpack.i.h.bf16 %v6337_v58  ;;  %v6338_v19 = vunpack.i.l.bf16 %v6337_v58 }
 0x107   :  { %770 = vmatprep.mubr.bf16.mxu0 %v11287_v57  ;;  %1083 = vmatprep.mubr.bf16.mxu1 %v11287_v57 }
 0x108   :  { %v269_v20 = vsel %vm266_vm4, %v6333_v61, %v6334_v60  ;;  %v270_v21 = vsel %vm266_vm4, %v6338_v19, %v6339_v14 }
 0x109   :  { %v6342_v62 = vpop.permute.xlu0 %6341  ;;  %v6347_v63 = vpop.permute.xlu1 %6346  ;;  %v395_v26 = vpack.c.bf16 %v270_v21, %v269_v20 }
 0x10a   :  { %v6344_v27 = vunpack.i.h.bf16 %v6342_v62  ;;  %v6343_v3 = vunpack.i.l.bf16 %v6342_v62  ;;  %v6349_v4 = vunpack.i.h.bf16 %v6347_v63  ;;  %v6348_v5 = vunpack.i.l.bf16 %v6347_v63 }
 0x10c   :  { %v271_v9 = vsel %vm266_vm4, %v6343_v3, %v6344_v27  ;;  %v272_v10 = vsel %vm266_vm4, %v6348_v5, %v6349_v4 }
 0x10d   :  { %v6352_v11 = vpop.permute.xlu0 %6351  ;;  %v6357_v15 = vpop.permute.xlu1 %6356  ;;  %v396_v16 = vpack.c.bf16 %v272_v10, %v271_v9 }
 0x10e   :  { %5618 = vmatmul.mubr.msk.bf16.gmra.mxu0 %vm540_vm3, %v390_v42  ;;  %5647 = vmatmul.mubr.msk.bf16.gmra.mxu1 %vm540_vm3, %v390_v42  ;;  %v6354_v17 = vunpack.i.h.bf16 %v6352_v11  ;;  %v6353_v18 = vunpack.i.l.bf16 %v6352_v11  ;;  %v6359_v22 = vunpack.i.h.bf16 %v6357_v15  ;;  %v6358_v23 = vunpack.i.l.bf16 %v6357_v15 }
 0x10f   :  { %780 = vmatprep.mubr.bf16.mxu0 %v11287_v57  ;;  %1093 = vmatprep.mubr.bf16.mxu1 %v11287_v57 }
 0x110   :  { %v273_v24 = vsel %vm266_vm4, %v6353_v18, %v6354_v17  ;;  %v274_v25 = vsel %vm266_vm4, %v6358_v23, %v6359_v22 }
 0x111   :  { %v6362_v28 = vpop.permute.xlu0 %6361  ;;  %v6367_v29 = vpop.permute.xlu1 %6366  ;;  %v397_v30 = vpack.c.bf16 %v274_v25, %v273_v24 }
 0x112   :  { %v6364_v31 = vunpack.i.h.bf16 %v6362_v28  ;;  %v6363_v32 = vunpack.i.l.bf16 %v6362_v28  ;;  %v6369_v33 = vunpack.i.h.bf16 %v6367_v29  ;;  %v6368_v34 = vunpack.i.l.bf16 %v6367_v29 }
 0x114   :  { %v275_v37 = vsel %vm266_vm4, %v6363_v32, %v6364_v31  ;;  %v276_v38 = vsel %vm266_vm4, %v6368_v34, %v6369_v33 }
 0x115   :  { %v6372_v39 = vpop.permute.xlu0 %6371  ;;  %v6377_v40 = vpop.permute.xlu1 %6376  ;;  %v398_v42 = vpack.c.bf16 %v276_v38, %v275_v37 }
 0x116   :  { %5619 = vmatmul.mubr.msk.bf16.gmra.mxu0 %vm540_vm3, %v391_v7  ;;  %5648 = vmatmul.mubr.msk.bf16.gmra.mxu1 %vm540_vm3, %v391_v7  ;;  %v6374_v1 = vunpack.i.h.bf16 %v6372_v39  ;;  %v6373_v6 = vunpack.i.l.bf16 %v6372_v39  ;;  %v6379_v43 = vunpack.i.h.bf16 %v6377_v40  ;;  %v6378_v7 = vunpack.i.l.bf16 %v6377_v40 }
 0x117   :  { %790 = vmatprep.mubr.bf16.mxu0 %v11287_v57  ;;  %1103 = vmatprep.mubr.bf16.mxu1 %v11287_v57 }
 0x118   :  { %v277_v46 = vsel %vm266_vm4, %v6373_v6, %v6374_v1 }
 0x119   :  { %v6382_v48 = vpop.permute.xlu0 %6381  ;;  %v6387_v2 = vpop.permute.xlu1 %6386 }
 0x11a   :  { %v6384_v51 = vunpack.i.h.bf16 %v6382_v48  ;;  %v6383_v52 = vunpack.i.l.bf16 %v6382_v48  ;;  %v6389_v8 = vunpack.i.h.bf16 %v6387_v2  ;;  %v6388_v53 = vunpack.i.l.bf16 %v6387_v2 }
 0x11c   :  { %v279_v55 = vsel %vm266_vm4, %v6383_v52, %v6384_v51  ;;  %v280_v56 = vsel %vm266_vm4, %v6388_v53, %v6389_v8 }
 0x11d   :  { %v6392_v58 = vpop.permute.xlu0 %6391  ;;  %v400_v14 = vpack.c.bf16 %v280_v56, %v279_v55 }
 0x11e   :  { %5620 = vmatmul.mubr.msk.bf16.gmra.mxu0 %vm540_vm3, %v392_v47  ;;  %5649 = vmatmul.mubr.msk.bf16.gmra.mxu1 %vm540_vm3, %v392_v47  ;;  %v278_v47 = vsel %vm266_vm4, %v6378_v7, %v6379_v43  ;;  %v6394_v19 = vunpack.i.h.bf16 %v6392_v58  ;;  %v6393_v20 = vunpack.i.l.bf16 %v6392_v58 }
 0x11f   :  { %800 = vmatprep.mubr.bf16.mxu0 %v11287_v57  ;;  %1113 = vmatprep.mubr.bf16.mxu1 %v11287_v57  ;;  %v399_v50 = vpack.c.bf16 %v278_v47, %v277_v46 }
 0x120   :  { %v352_v27 = vsel %vm351_vm5, %v6393_v20, %v6394_v19 }
 0x121   :  { %v6402_v4 = vpop.permute.xlu0 %6401 }
 0x122   :  { %v6404_v15 = vunpack.i.h.bf16 %v6402_v4 }
 0x125   :  { %v6412_v28 = vpop.permute.xlu0 %6411 }
 0x126   :  { %5621 = vmatmul.mubr.msk.bf16.gmra.mxu0 %vm540_vm3, %v393_v12  ;;  %5650 = vmatmul.mubr.msk.bf16.gmra.mxu1 %vm540_vm3, %v393_v12  ;;  %v6414_v33 = vunpack.i.h.bf16 %v6412_v28  ;;  %v6413_v34 = vunpack.i.l.bf16 %v6412_v28 }
 0x127   :  { %810 = vmatprep.mubr.bf16.mxu0 %v11287_v57  ;;  %1123 = vmatprep.mubr.bf16.mxu1 %v11287_v57 }
 0x129   :  { %v6422_v6 = vpop.permute.xlu0 %6421 }
 0x12a   :  { %v6424_v48 = vunpack.i.h.bf16 %v6422_v6  ;;  %v6423_v2 = vunpack.i.l.bf16 %v6422_v6 }
 0x12c   :  { %v358_v53 = vsel %vm351_vm5, %v6423_v2, %v6424_v48 }
 0x12d   :  { %v6432_v56 = vpop.permute.xlu0 %6431 }
 0x12e   :  { %5622 = vmatmul.mubr.msk.bf16.gmra.mxu0 %vm540_vm3, %v394_v59  ;;  %5651 = vmatmul.mubr.msk.bf16.gmra.mxu1 %vm540_vm3, %v394_v59  ;;  %v6397_v59 = vpop.permute.xlu1 %6396  ;;  %v6434_v20 = vunpack.i.h.bf16 %v6432_v56 }
 0x12f   :  { %820 = vmatprep.mubr.bf16.mxu0 %v11287_v57  ;;  %1133 = vmatprep.mubr.bf16.mxu1 %v11287_v57  ;;  %v6399_v21 = vunpack.i.h.bf16 %v6397_v59  ;;  %v6398_v62 = vunpack.i.l.bf16 %v6397_v59 }
 0x131   :  { %v353_v3 = vsel %vm351_vm5, %v6398_v62, %v6399_v21  ;;  %v6433_v21 = vunpack.i.l.bf16 %v6432_v56 }
 0x132   :  { %v6407_v5 = vpop.permute.xlu1 %6406  ;;  %v401_v11 = vpack.c.bf16 %v353_v3, %v352_v27 }
 0x133   :  { %v6409_v17 = vunpack.i.h.bf16 %v6407_v5  ;;  %v6408_v18 = vunpack.i.l.bf16 %v6407_v5  ;;  %v360_v5 = vsel %vm351_vm5, %v6433_v21, %v6434_v20 }
 0x135   :  { %v355_v25 = vsel %vm351_vm5, %v6408_v18, %v6409_v17 }
 0x136   :  { %5623 = vmatmul.mubr.msk.bf16.gmra.mxu0 %vm540_vm3, %v395_v26  ;;  %5652 = vmatmul.mubr.msk.bf16.gmra.mxu1 %vm540_vm3, %v395_v26  ;;  %v6417_v29 = vpop.permute.xlu1 %6416 }
 0x137   :  { %830 = vmatprep.mubr.bf16.mxu0 %v11287_v57  ;;  %1143 = vmatprep.mubr.bf16.mxu1 %v11287_v57  ;;  %v6419_v37 = vunpack.i.h.bf16 %v6417_v29  ;;  %v6418_v38 = vunpack.i.l.bf16 %v6417_v29 }
 0x139   :  { %v357_v1 = vsel %vm351_vm5, %v6418_v38, %v6419_v37 }
 0x13a   :  { %v6427_v43 = vpop.permute.xlu1 %6426 }
 0x13b   :  { %v6428_v51 = vunpack.i.l.bf16 %v6427_v43 }
 0x13e   :  { %5624 = vmatmul.mubr.msk.bf16.gmra.mxu0 %vm540_vm3, %v396_v16  ;;  %5653 = vmatmul.mubr.msk.bf16.gmra.mxu1 %vm540_vm3, %v396_v16  ;;  %v6403_v16 = vunpack.i.l.bf16 %v6402_v4  ;;  %v6437_v58 = vpop.permute.xlu1 %6436 }
 0x13f   :  { %840 = vmatprep.mubr.bf16.mxu0 %v11287_v57  ;;  %1153 = vmatprep.mubr.bf16.mxu1 %v11287_v57  ;;  %v7455_v35 = vpop.f32.mrf.mxu0  ;;  %v6439_v62 = vunpack.i.h.bf16 %v6437_v58  ;;  %v6438_v27 = vunpack.i.l.bf16 %v6437_v58 }
 0x140   :  { %v7457_v36 = vpop.f32.mrf.mxu1  ;;  %v354_v24 = vsel %vm351_vm5, %v6403_v16, %v6404_v15  ;;  %v6442_v15 = vpop.permute.xlu0 %6441 }
 0x141   :  { %v7461_v0 = vpop.f32.mrf.mxu0  ;;  %v402_v32 = vpack.c.bf16 %v355_v25, %v354_v24  ;;  %v6444_v25 = vunpack.i.h.bf16 %v6442_v15  ;;  %v6443_v28 = vunpack.i.l.bf16 %v6442_v15 }
 0x142   :  { %v7463_v41 = vpop.f32.mrf.mxu1  ;;  %v6447_v16 = vpop.permute.xlu1 %6446 }
 0x143   :  { %v7469_v44 = vpop.f32.mrf.mxu0  ;;  %v6449_v29 = vunpack.i.h.bf16 %v6447_v16  ;;  %v362_v37 = vsel %vm351_vm5, %v6443_v28, %v6444_v25 }
 0x144   :  { %v7471_v45 = vpop.f32.mrf.mxu1 }
 0x145   :  { %v7475_v49 = vpop.f32.mrf.mxu0 }
 0x146   :  { %5625 = vmatmul.mubr.msk.bf16.gmra.mxu0 %vm540_vm3, %v397_v30  ;;  %5654 = vmatmul.mubr.msk.bf16.gmra.mxu1 %vm540_vm3, %v397_v30  ;;  %v7477_v12 = vpop.f32.mrf.mxu1 }
 0x147   :  { %850 = vmatprep.mubr.bf16.mxu0 %v11287_v57  ;;  %1163 = vmatprep.mubr.bf16.mxu1 %v11287_v57 }
 0x148   :  { %v7483_v54 = vpop.f32.mrf.mxu0  ;;  %v7485_v13 = vpop.f32.mrf.mxu1 }
 0x14a   :  { %v7489_v60 = vpop.f32.mrf.mxu0  ;;  %v7491_v61 = vpop.f32.mrf.mxu1 }
 0x14c   :  { %v7497_v63 = vpop.f32.mrf.mxu0  ;;  %v7499_v26 = vpop.f32.mrf.mxu1 }
 0x14e   :  { %5626 = vmatmul.mubr.msk.bf16.gmra.mxu0 %vm540_vm3, %v398_v42  ;;  %5655 = vmatmul.mubr.msk.bf16.gmra.mxu1 %vm540_vm3, %v398_v42  ;;  %v7503_v9 = vpop.f32.mrf.mxu0  ;;  %v7505_v10 = vpop.f32.mrf.mxu1  ;;  %v356_v42 = vsel %vm351_vm5, %v6413_v34, %v6414_v33 }
 0x14f   :  { %860 = vmatprep.mubr.bf16.mxu0 %v11287_v57  ;;  %1173 = vmatprep.mubr.bf16.mxu1 %v11287_v57  ;;  %v403_v47 = vpack.c.bf16 %v357_v1, %v356_v42  ;;  %v6452_v42 = vpop.permute.xlu0 %6451  ;;  %v6457_v1 = vpop.permute.xlu1 %6456 }
 0x150   :  { %v7511_v22 = vpop.f32.mrf.mxu0  ;;  %v7513_v23 = vpop.f32.mrf.mxu1  ;;  %v6454_v48 = vunpack.i.h.bf16 %v6452_v42  ;;  %v6453_v2 = vunpack.i.l.bf16 %v6452_v42 }
 0x152   :  { %v7517_v30 = vpop.f32.mrf.mxu0  ;;  %v7519_v31 = vpop.f32.mrf.mxu1  ;;  %v364_v56 = vsel %vm351_vm5, %v6453_v2, %v6454_v48 }
 0x154   :  { %v7525_v39 = vpop.f32.mrf.mxu0  ;;  %v7527_v40 = vpop.f32.mrf.mxu1 }
 0x156   :  { %5627 = vmatmul.mubr.msk.bf16.gmra.mxu0 %vm540_vm3, %v399_v50  ;;  %5656 = vmatmul.mubr.msk.bf16.gmra.mxu1 %vm540_vm3, %v399_v50  ;;  %v7531_v7 = vpop.f32.mrf.mxu0  ;;  %v7533_v46 = vpop.f32.mrf.mxu1  ;;  %v6429_v50 = vunpack.i.h.bf16 %v6427_v43 }
 0x157   :  { %870 = vmatprep.mubr.bf16.mxu0 %v11287_v57  ;;  %1183 = vmatprep.mubr.bf16.mxu1 %v11287_v57 }
 0x158   :  { %v7539_v52 = vpop.f32.mrf.mxu0  ;;  %v7541_v8 = vpop.f32.mrf.mxu1  ;;  %v359_v55 = vsel %vm351_vm5, %v6428_v51, %v6429_v50  ;;  %v6459_v50 = vunpack.i.h.bf16 %v6457_v1  ;;  %v6458_v51 = vunpack.i.l.bf16 %v6457_v1 }
 0x159   :  { %v404_v19 = vpack.c.bf16 %v359_v55, %v358_v53 }
 0x15a   :  { %v7545_v59 = vpop.f32.mrf.mxu0  ;;  %v365_v58 = vsel %vm351_vm5, %v6458_v51, %v6459_v50 }
 0x15b   :  { %v407_v21 = vpack.c.bf16 %v365_v58, %v364_v56 }
 0x15c   :  { %v7553_v3 = vpop.f32.mrf.mxu0 }
 0x15d   :  { %11498 = vst [vmem:[#allocation6_spill] sm:$0xff] %v7553_v3 }
 0x15e   :  { %5628 = vmatmul.mubr.msk.bf16.gmra.mxu0 %vm540_vm3, %v400_v14  ;;  %5657 = vmatmul.mubr.msk.bf16.gmra.mxu1 %vm540_vm3, %v400_v14  ;;  %v7547_v14 = vpop.f32.mrf.mxu1  ;;  %v7559_v17 = vpop.f32.mrf.mxu0 }
 0x15f   :  { %880 = vmatprep.mubr.bf16.mxu0 %v11287_v57  ;;  %1193 = vmatprep.mubr.bf16.mxu1 %v11287_v57  ;;  %11497 = vst [vmem:[#allocation5_spill] sm:$0xff] %v7547_v14 }
 0x160   :  { %v7555_v4 = vpop.f32.mrf.mxu1  ;;  %v7567_v33 = vpop.f32.mrf.mxu0 }
 0x161   :  { %11500 = vst [vmem:[#allocation8_spill] sm:$0xff] %v7567_v33 }
 0x162   :  { %v7561_v18 = vpop.f32.mrf.mxu1  ;;  %v7573_v6 = vpop.f32.mrf.mxu0 }
 0x163   :  { %11499 = vst [vmem:[#allocation7_spill] sm:$0xff] %v7561_v18 }
 0x164   :  { %v7569_v34 = vpop.f32.mrf.mxu1  ;;  %v7581_v53 = vpop.f32.mrf.mxu0 }
 0x165   :  { %11502 = vst [vmem:[#allocation10_spill] sm:$0xff] %v7581_v53 }
 0x166   :  { %5629 = vmatmul.mubr.msk.bf16.gmra.mxu0 %vm540_vm3, %v401_v11  ;;  %5658 = vmatmul.mubr.msk.bf16.gmra.mxu1 %vm540_vm3, %v401_v11  ;;  %v361_v11 = vsel %vm351_vm5, %v6438_v27, %v6439_v62  ;;  %v7575_v43 = vpop.f32.mrf.mxu1 }
 0x167   :  { %890 = vmatprep.mubr.bf16.mxu0 %v11287_v57  ;;  %1203 = vmatprep.mubr.bf16.mxu1 %v11287_v57  ;;  %v405_v24 = vpack.c.bf16 %v361_v11, %v360_v5  ;;  %11501 = vst [vmem:[#allocation9_spill] sm:$0xff] %v7575_v43 }
 0x168   :  { %v7583_v55 = vpop.f32.mrf.mxu1 }
 0x169   :  { %11503 = vst [vmem:[#allocation11_spill] sm:$0xff] %v7583_v55 }
 0x16a   :  { %v7589_v20 = vpop.f32.mrf.mxu1 }
 0x16b   :  { %11505 = vst [vmem:[#allocation13_spill] sm:$0xff] %v7589_v20 }
 0x16c   :  { %v7595_v27 = vpop.f32.mrf.mxu1 }
 0x16d   :  { %11507 = vst [vmem:[#allocation15_spill] sm:$0xff] %v7595_v27 }
 0x16e   :  { %5630 = vmatmul.mubr.msk.bf16.gmra.mxu0 %vm540_vm3, %v402_v32  ;;  %5659 = vmatmul.mubr.msk.bf16.gmra.mxu1 %vm540_vm3, %v402_v32  ;;  %v6448_v32 = vunpack.i.l.bf16 %v6447_v16  ;;  %v7599_v11 = vpop.f32.mrf.mxu1 }
 0x16f   :  { %900 = vmatprep.mubr.bf16.mxu0 %v11287_v57  ;;  %1213 = vmatprep.mubr.bf16.mxu1 %v11287_v57  ;;  %11509 = vst [vmem:[#allocation17_spill] sm:$0xff] %v7599_v11 }
 0x170   :  { %v363_v38 = vsel %vm351_vm5, %v6448_v32, %v6449_v29  ;;  %v7603_v16 = vpop.f32.mrf.mxu1 }
 0x171   :  { %11511 = vst [vmem:[#allocation19_spill] sm:$0xff] %v7603_v16 }
 0x172   :  { %v7607_v25 = vpop.f32.mrf.mxu1 }
 0x173   :  { %11513 = vst [vmem:[#allocation21_spill] sm:$0xff] %v7607_v25 }
 0x174   :  { %v7611_v29 = vpop.f32.mrf.mxu1 }
 0x175   :  { %11515 = vst [vmem:[#allocation23_spill] sm:$0xff] %v7611_v29 }
 0x176   :  { %5631 = vmatmul.mubr.msk.bf16.gmra.mxu0 %vm540_vm3, %v403_v47  ;;  %5660 = vmatmul.mubr.msk.bf16.gmra.mxu1 %vm540_vm3, %v403_v47  ;;  %v406_v47 = vpack.c.bf16 %v363_v38, %v362_v37  ;;  %v7615_v37 = vpop.f32.mrf.mxu1 }
 0x177   :  { %910 = vmatprep.mubr.bf16.mxu0 %v11287_v57  ;;  %1223 = vmatprep.mubr.bf16.mxu1 %v11287_v57  ;;  %11517 = vst [vmem:[#allocation25_spill] sm:$0xff] %v7615_v37 }
 0x178   :  { %v7619_v42 = vpop.f32.mrf.mxu1 }
 0x179   :  { %11519 = vst [vmem:[#allocation27_spill] sm:$0xff] %v7619_v42 }
 0x17e   :  { %5632 = vmatmul.mubr.msk.bf16.gmra.mxu0 %vm540_vm3, %v404_v19  ;;  %5661 = vmatmul.mubr.msk.bf16.gmra.mxu1 %vm540_vm3, %v404_v19  ;;  %v7587_v19 = vpop.f32.mrf.mxu0 }
 0x17f   :  { %920 = vmatprep.mubr.bf16.mxu0 %v11287_v57  ;;  %1233 = vmatprep.mubr.bf16.mxu1 %v11287_v57  ;;  %11504 = vst [vmem:[#allocation12_spill] sm:$0xff] %v7587_v19 }
 0x180   :  { %v7593_v62 = vpop.f32.mrf.mxu0 }
 0x181   :  { %11506 = vst [vmem:[#allocation14_spill] sm:$0xff] %v7593_v62 }
 0x182   :  { %v7597_v5 = vpop.f32.mrf.mxu0 }
 0x183   :  { %11508 = vst [vmem:[#allocation16_spill] sm:$0xff] %v7597_v5 }
 0x184   :  { %v7601_v15 = vpop.f32.mrf.mxu0 }
 0x185   :  { %11510 = vst [vmem:[#allocation18_spill] sm:$0xff] %v7601_v15 }
 0x186   :  { %5633 = vmatmul.mubr.msk.bf16.gmra.mxu0 %vm540_vm3, %v405_v24  ;;  %5662 = vmatmul.mubr.msk.bf16.gmra.mxu1 %vm540_vm3, %v405_v24  ;;  %v7605_v24 = vpop.f32.mrf.mxu0 }
 0x187   :  { %930 = vmatprep.mubr.bf16.mxu0 %v11287_v57  ;;  %1243 = vmatprep.mubr.bf16.mxu1 %v11287_v57  ;;  %11512 = vst [vmem:[#allocation20_spill] sm:$0xff] %v7605_v24 }
 0x188   :  { %v7609_v28 = vpop.f32.mrf.mxu0 }
 0x189   :  { %11514 = vst [vmem:[#allocation22_spill] sm:$0xff] %v7609_v28 }
 0x18a   :  { %v7613_v32 = vpop.f32.mrf.mxu0 }
 0x18b   :  { %11516 = vst [vmem:[#allocation24_spill] sm:$0xff] %v7613_v32 }
 0x18c   :  { %v7617_v38 = vpop.f32.mrf.mxu0 }
 0x18d   :  { %11518 = vst [vmem:[#allocation26_spill] sm:$0xff] %v7617_v38 }
 0x18e   :  { %5634 = vmatmul.mubr.msk.bf16.gmra.mxu0 %vm540_vm3, %v406_v47  ;;  %5663 = vmatmul.mubr.msk.bf16.gmra.mxu1 %vm540_vm3, %v406_v47  ;;  %v7621_v1 = vpop.f32.mrf.mxu0  ;;  %v7623_v47 = vpop.f32.mrf.mxu1 }
 0x18f   :  { %940 = vmatprep.mubr.bf16.mxu0 %v11287_v57  ;;  %1253 = vmatprep.mubr.bf16.mxu1 %v11287_v57  ;;  %11520 = vst [vmem:[#allocation28_spill] sm:$0xff] %v7621_v1  ;;  %11521 = vst [vmem:[#allocation29_spill] sm:$0xff] %v7623_v47 }
 0x196   :  { %5635 = vmatmul.mubr.msk.bf16.gmra.mxu0 %vm540_vm3, %v407_v21  ;;  %5664 = vmatmul.mubr.msk.bf16.gmra.mxu1 %vm540_vm3, %v407_v21 }
 0x1b6   :  { %v7625_v48 = vpop.f32.mrf.mxu0  ;;  %v1055_v2 = vpop.f32.mrf.mxu1 }
 0x1b7   :  { %v1266_v50 = vmax.f32 %v7457_v36, %v1055_v2 }
 0x1b8   :  { %v744_v51 = vpop.f32.mrf.mxu0  ;;  %v1057_v56 = vpop.f32.mrf.mxu1 }
 0x1b9   :  { %v7629_v58 = vmax.f32 %v7461_v0, %v744_v51  ;;  %1420 = vrot.lane.b32.xlu1 %v1266_v50, %s7046_s26  ;;  %v1267_v36 = vmax.f32 %v7463_v41, %v1057_v56 }
 0x1ba   :  { %v7632_v21 = vpop.f32.mrf.mxu0  ;;  %v1059_v57 = vpop.f32.mrf.mxu1 }
 0x1bb   :  { %11522 = vst [vmem:[#allocation30_spill] sm:$0xff] %v7629_v58  ;;  %v1270_v38 = vmax.f32 %v7471_v45, %v1059_v57  ;;  %1418 = vrot.lane.b32.xlu0 %v7629_v58, %s7046_s26 }
 0x1bc   :  { %v748_v28 = vpop.f32.mrf.mxu0  ;;  %v1061_v15 = vpop.f32.mrf.mxu1 }
 0x1bd   :  { %1426 = vrot.lane.b32.xlu1 %v1270_v38, %s7046_s26  ;;  %v1271_v51 = vmax.f32 %v7477_v12, %v1061_v15  ;;  %v7644_v57 = vmax.f32 %v7475_v49, %v748_v28 }
 0x1be   :  { %v7639_v2 = vpop.f32.mrf.mxu0  ;;  %v1065_v0 = vpop.f32.mrf.mxu1 }
 0x1bf   :  { %1422 = vrot.lane.b32.xlu0 %v1267_v36, %s7046_s26  ;;  %11523 = vst [vmem:[#allocation31_spill] sm:$0xff] %v7644_v57  ;;  %v1274_v41 = vmax.f32 %v7485_v13, %v1065_v0 }
 0x1c0   :  { %v754_v50 = vpop.f32.mrf.mxu0  ;;  %v1067_v53 = vpop.f32.mrf.mxu1 }
 0x1c1   :  { %1428 = vrot.lane.b32.xlu1 %v1271_v51, %s7046_s26  ;;  %v7653_v12 = vmax.f32 %v7489_v60, %v754_v50  ;;  %v1275_v28 = vmax.f32 %v7491_v61, %v1067_v53 }
 0x1c2   :  { %v7647_v45 = vpop.f32.mrf.mxu0  ;;  %v1069_v58 = vpop.f32.mrf.mxu1 }
 0x1c3   :  { %1424 = vrot.lane.b32.xlu0 %v7644_v57, %s7046_s26  ;;  %11524 = vst [vmem:[#allocation32_spill] sm:$0xff] %v7653_v12  ;;  %v1278_v50 = vmax.f32 %v7499_v26, %v1069_v58 }
 0x1c4   :  { %v758_v38 = vpop.f32.mrf.mxu0  ;;  %v1071_v56 = vpop.f32.mrf.mxu1 }
 0x1c5   :  { %1432 = vrot.lane.b32.xlu1 %v1274_v41, %s7046_s26  ;;  %v7662_v0 = vmax.f32 %v7503_v9, %v758_v38  ;;  %v1279_v53 = vmax.f32 %v7505_v10, %v1071_v56 }
 0x1c6   :  { %v7656_v15 = vpop.f32.mrf.mxu0  ;;  %v1075_v49 = vpop.f32.mrf.mxu1 }
 0x1c7   :  { %1430 = vrot.lane.b32.xlu0 %v7653_v12, %s7046_s26  ;;  %11525 = vst [vmem:[#allocation33_spill] sm:$0xff] %v7662_v0  ;;  %v1282_v38 = vmax.f32 %v7513_v23, %v1075_v49 }
 0x1c8   :  { %v764_v36 = vpop.f32.mrf.mxu0  ;;  %v1077_v13 = vpop.f32.mrf.mxu1 }
 0x1c9   :  { %1434 = vrot.lane.b32.xlu1 %v1275_v28, %s7046_s26  ;;  %v7679_v26 = vmax.f32 %v7517_v30, %v764_v36 }
 0x1ca   :  { %v7665_v51 = vpop.f32.mrf.mxu0  ;;  %v1079_v60 = vpop.f32.mrf.mxu1 }
 0x1cb   :  { %1436 = vrot.lane.b32.xlu0 %v7662_v0, %s7046_s26  ;;  %11527 = vst [vmem:[#allocation35_spill] sm:$0xff] %v7679_v26 }
 0x1cc   :  { %v768_v41 = vpop.f32.mrf.mxu0  ;;  %v1081_v61 = vpop.f32.mrf.mxu1 }
 0x1cd   :  { %1438 = vrot.lane.b32.xlu1 %v1278_v50, %s7046_s26  ;;  %v7685_v56 = vmax.f32 %v7531_v7, %v768_v41  ;;  %v1283_v50 = vmax.f32 %v7519_v31, %v1077_v13 }
 0x1ce   :  { %v7672_v12 = vpop.f32.mrf.mxu0  ;;  %v1085_v9 = vpop.f32.mrf.mxu1 }
 0x1cf   :  { %1440 = vrot.lane.b32.xlu0 %v1279_v53, %s7046_s26  ;;  %11529 = vst [vmem:[#allocation37_spill] sm:$0xff] %v7685_v56  ;;  %v1287_v53 = vmax.f32 %v7533_v46, %v1081_v61  ;;  %v1290_v61 = vmax.f32 %v7541_v8, %v1085_v9 }
 0x1d0   :  { %v774_v28 = vpop.f32.mrf.mxu0  ;;  %v7676_v57 = vpop.f32.mrf.mxu1 }
 0x1d1   :  { %11526 = vst [vmem:[#allocation34_spill] sm:$0xff] %v7676_v57  ;;  %1444 = vrot.lane.b32.xlu1 %v1282_v38, %s7046_s26  ;;  %v1286_v38 = vmax.f32 %v7527_v40, %v1079_v60  ;;  %v7707_v13 = vmax.f32 %v7545_v59, %v774_v28 }
 0x1d2   :  { %v7682_v58 = vpop.f32.mrf.mxu0  ;;  %v1089_v10 = vpop.f32.mrf.mxu1 }
 0x1d3   :  { %11528 = vst [vmem:[#allocation36_spill] sm:$0xff] %v7682_v58  ;;  %1442 = vrot.lane.b32.xlu0 %v7679_v26, %s7046_s26  ;;  %11535 = vst [vmem:[#allocation43_spill] sm:$0xff] %v7707_v13 }
 0x1d4   :  { %v778_v23 = vpop.f32.mrf.mxu0  ;;  %v7689_v49 = vpop.f32.mrf.mxu1 }
 0x1d5   :  { %11530 = vst [vmem:[#allocation38_spill] sm:$0xff] %v7689_v49  ;;  %1448 = vrot.lane.b32.xlu1 %v7685_v56, %s7046_s26 }
 0x1d6   :  { %v7694_v30 = vpop.f32.mrf.mxu0  ;;  %v1095_v36 = vpop.f32.mrf.mxu1 }
 0x1d7   :  { %11531 = vst [vmem:[#allocation39_spill] sm:$0xff] %v7694_v30  ;;  %1446 = vrot.lane.b32.xlu0 %v1283_v50, %s7046_s26  ;;  %v1294_v50 = vmax.f32 %v7555_v4, %v1089_v10 }
 0x1d8   :  { %v784_v7 = vpop.f32.mrf.mxu0  ;;  %v7698_v41 = vpop.f32.mrf.mxu1 }
 0x1d9   :  { %11532 = vst [vmem:[#allocation40_spill] sm:$0xff] %v7698_v41  ;;  %1452 = vrot.lane.b32.xlu1 %v1287_v53, %s7046_s26  ;;  %v7728_v53 = vmax.f32 %v7559_v17, %v778_v23 }
 0x1da   :  { %v7702_v26 = vpop.f32.mrf.mxu0  ;;  %v7704_v31 = vpop.f32.mrf.mxu1 }
 0x1db   :  { %11533 = vst [vmem:[#allocation41_spill] sm:$0xff] %v7702_v26  ;;  %11534 = vst [vmem:[#allocation42_spill] sm:$0xff] %v7704_v31  ;;  %1450 = vrot.lane.b32.xlu0 %v1286_v38, %s7046_s26  ;;  %v1298_v38 = vmax.f32 %v7569_v34, %v1095_v36 }
 0x1dc   :  { %v7710_v56 = vpop.f32.mrf.mxu0  ;;  %v7712_v46 = vpop.f32.mrf.mxu1  ;;  %11542 = vst [vmem:[#allocation50_spill] sm:$0xff] %v7728_v53 }
 0x1dd   :  { %11536 = vst [vmem:[#allocation44_spill] sm:$0xff] %v7710_v56  ;;  %11537 = vst [vmem:[#allocation45_spill] sm:$0xff] %v7712_v46  ;;  %1454 = vrot.lane.b32.xlu1 %v7707_v13, %s7046_s26 }
 0x1de   :  { %v7717_v40 = vpop.f32.mrf.mxu0  ;;  %v7719_v60 = vpop.f32.mrf.mxu1 }
 0x1df   :  { %11538 = vst [vmem:[#allocation46_spill] sm:$0xff] %v7717_v40  ;;  %11539 = vst [vmem:[#allocation47_spill] sm:$0xff] %v7719_v60  ;;  %1456 = vrot.lane.b32.xlu0 %v1290_v61, %s7046_s26  ;;  %v7743_v61 = vmax.f32 %v7573_v6, %v784_v7 }
 0x1e0   :  { %v7723_v59 = vpop.f32.mrf.mxu0  ;;  %v7725_v28 = vpop.f32.mrf.mxu1 }
 0x1e1   :  { %11540 = vst [vmem:[#allocation48_spill] sm:$0xff] %v7723_v59  ;;  %11541 = vst [vmem:[#allocation49_spill] sm:$0xff] %v7725_v28  ;;  %1462 = vrot.lane.b32.xlu1 %v1294_v50, %s7046_s26 }
 0x1e2   :  { %v7731_v8 = vpop.f32.mrf.mxu0  ;;  %v7733_v9 = vpop.f32.mrf.mxu1  ;;  %11547 = vst [vmem:[#allocation55_spill] sm:$0xff] %v7743_v61 }
 0x1e3   :  { %11543 = vst [vmem:[#allocation51_spill] sm:$0xff] %v7731_v8  ;;  %11544 = vst [vmem:[#allocation52_spill] sm:$0xff] %v7733_v9  ;;  %1460 = vrot.lane.b32.xlu0 %v7728_v53, %s7046_s26 }
 0x1e4   :  { %v7738_v4 = vpop.f32.mrf.mxu0  ;;  %v7740_v10 = vpop.f32.mrf.mxu1 }
 0x1e5   :  { %11545 = vst [vmem:[#allocation53_spill] sm:$0xff] %v7738_v4  ;;  %11546 = vst [vmem:[#allocation54_spill] sm:$0xff] %v7740_v10  ;;  %1468 = vrot.lane.b32.xlu1 %v1298_v38, %s7046_s26 }
 0x1e6   :  { %v7746_v17 = vpop.f32.mrf.mxu0  ;;  %v7748_v23 = vpop.f32.mrf.mxu1 }
 0x1e7   :  { %11548 = vst [vmem:[#allocation56_spill] sm:$0xff] %v7746_v17  ;;  %11549 = vst [vmem:[#allocation57_spill] sm:$0xff] %v7748_v23  ;;  %1466 = vrot.lane.b32.xlu0 %v7743_v61, %s7046_s26 }
 0x1e8   :  { %v7752_v34 = vpop.f32.mrf.mxu0  ;;  %v7754_v36 = vpop.f32.mrf.mxu1 }
 0x1e9   :  { %11550 = vst [vmem:[#allocation58_spill] sm:$0xff] %v7752_v34  ;;  %11551 = vst [vmem:[#allocation59_spill] sm:$0xff] %v7754_v36 }
 0x1ea   :  { %v7756_v50 = vpop.f32.mrf.mxu0  ;;  %v7758_v53 = vpop.f32.mrf.mxu1 }
 0x1eb   :  { %11552 = vst [vmem:[#allocation60_spill] sm:$0xff] %v7756_v50  ;;  %11553 = vst [vmem:[#allocation61_spill] sm:$0xff] %v7758_v53 }
 0x1ec   :  { %v7760_v13 = vpop.f32.mrf.mxu0  ;;  %v7762_v6 = vpop.f32.mrf.mxu1 }
 0x1ed   :  { %11554 = vst [vmem:[#allocation62_spill] sm:$0xff] %v7760_v13  ;;  %11555 = vst [vmem:[#allocation63_spill] sm:$0xff] %v7762_v6 }
 0x1ee   :  { %v7764_v7 = vpop.f32.mrf.mxu0  ;;  %v7766_v38 = vpop.f32.mrf.mxu1 }
 0x1f0   :  { %v814_v17 = vpop.f32.mrf.mxu0  ;;  %v7768_v8 = vpop.f32.mrf.mxu1 }
 0x1f2   :  { %v7770_v61 = vpop.f32.mrf.mxu0  ;;  %v7772_v0 = vpop.f32.mrf.mxu1 }
 0x1f4   :  { %v7774_v26 = vpop.f32.mrf.mxu0  ;;  %v7776_v50 = vpop.f32.mrf.mxu1 }
 0x1f6   :  { %v7778_v62 = vpop.f32.mrf.mxu0  ;;  %v7780_v40 = vpop.f32.mrf.mxu1 }
 0x1f8   :  { %v7782_v47 = vpop.f32.mrf.mxu0  ;;  %v7784_v6 = vpop.f32.mrf.mxu1 }
 0x1fa   :  { %v7786_v37 = vpop.f32.mrf.mxu0  ;;  %v7788_v36 = vpop.f32.mrf.mxu1 }
 0x1fc   :  { %v7790_v1 = vpop.f32.mrf.mxu0  ;;  %v7792_v13 = vpop.f32.mrf.mxu1 }
 0x1fe   :  { %v7794_v42 = vpop.f32.mrf.mxu0  ;;  %v7796_v53 = vpop.f32.mrf.mxu1 }
 0x200   :  { %v7798_v11 = vpop.f32.mrf.mxu0  ;;  %v7800_v28 = vpop.f32.mrf.mxu1 }
 0x202   :  { %v7802_v25 = vpop.f32.mrf.mxu0  ;;  %v7804_v10 = vpop.f32.mrf.mxu1 }
 0x204   :  { %v7806_v29 = vpop.f32.mrf.mxu0  ;;  %v7808_v23 = vpop.f32.mrf.mxu1 }
 0x206   :  { %v7810_v16 = vpop.f32.mrf.mxu0  ;;  %v7812_v9 = vpop.f32.mrf.mxu1 }
 0x208   :  { %v7814_v32 = vpop.f32.mrf.mxu0  ;;  %v7816_v34 = vpop.f32.mrf.mxu1 }
 0x209   :  { %11556 = vst [vmem:[#allocation64_spill] sm:$0xff] %v7816_v34 }
 0x20a   :  { %v7818_v24 = vpop.f32.mrf.mxu0  ;;  %v7820_v4 = vpop.f32.mrf.mxu1 }
 0x20c   :  { %v7822_v43 = vpop.f32.mrf.mxu0  ;;  %v7824_v41 = vpop.f32.mrf.mxu1 }
 0x20d   :  { %11557 = vst [vmem:[#allocation65_spill] sm:$0xff] %v7824_v41 }
 0x20e   :  { %v7826_v20 = vpop.f32.mrf.mxu0  ;;  %v7828_v46 = vpop.f32.mrf.mxu1 }
 0x210   :  { %v7830_v27 = vpop.f32.mrf.mxu0  ;;  %v7832_v60 = vpop.f32.mrf.mxu1 }
 0x211   :  { %11558 = vst [vmem:[#allocation66_spill] sm:$0xff] %v7830_v27 }
 0x212   :  { %v7834_v5 = vpop.f32.mrf.mxu0  ;;  %v7836_v59 = vpop.f32.mrf.mxu1 }
 0x213   :  { %11559 = vst [vmem:[#allocation67_spill] sm:$0xff] %v7836_v59 }
 0x214   :  { %v7838_v34 = vpop.f32.mrf.mxu0  ;;  %v7840_v55 = vpop.f32.mrf.mxu1 }
 0x215   :  { %11560 = vst [vmem:[#allocation68_spill] sm:$0xff] %v7838_v34  ;;  %11561 = vst [vmem:[#allocation69_spill] sm:$0xff] %v7840_v55 }
 0x216   :  { %v7842_v31 = vpop.f32.mrf.mxu0  ;;  %v7844_v19 = vpop.f32.mrf.mxu1 }
 0x217   :  { %11562 = vst [vmem:[#allocation70_spill] sm:$0xff] %v7844_v19 }
 0x218   :  { %v7846_v41 = vpop.f32.mrf.mxu0  ;;  %v7848_v56 = vpop.f32.mrf.mxu1 }
 0x219   :  { %11563 = vst [vmem:[#allocation71_spill] sm:$0xff] %v7846_v41 }
 0x21a   :  { %v7850_v18 = vpop.f32.mrf.mxu0  ;;  %v7852_v49 = vpop.f32.mrf.mxu1 }
 0x21b   :  { %11564 = vst [vmem:[#allocation72_spill] sm:$0xff] %v7850_v18  ;;  %11565 = vst [vmem:[#allocation73_spill] sm:$0xff] %v7852_v49 }
 0x21c   :  { %v7854_v14 = vpop.f32.mrf.mxu0  ;;  %v7856_v57 = vpop.f32.mrf.mxu1 }
 0x21d   :  { %11566 = vst [vmem:[#allocation74_spill] sm:$0xff] %v7854_v14  ;;  %11567 = vst [vmem:[#allocation75_spill] sm:$0xff] %v7856_v57  ;;  %v1589_v57 = vlaneseq }
 0x21e   :  { %v7858_v33 = vpop.f32.mrf.mxu0  ;;  %v7860_v34 = vpop.f32.mrf.mxu1 }
 0x21f   :  { %11568 = vst [vmem:[#allocation76_spill] sm:$0xff] %v7858_v33  ;;  %11569 = vst [vmem:[#allocation77_spill] sm:$0xff] %v7860_v34 }
 0x220   :  { %v7862_v55 = vpop.f32.mrf.mxu0  ;;  %v7864_v30 = vpop.f32.mrf.mxu1 }
 0x221   :  { %11570 = vst [vmem:[#allocation78_spill] sm:$0xff] %v7862_v55  ;;  %11571 = vst [vmem:[#allocation79_spill] sm:$0xff] %v7864_v30 }
 0x222   :  { %v7866_v19 = vpop.f32.mrf.mxu0  ;;  %v7868_v41 = vpop.f32.mrf.mxu1 }
 0x223   :  { %11572 = vst [vmem:[#allocation80_spill] sm:$0xff] %v7866_v19  ;;  %11573 = vst [vmem:[#allocation81_spill] sm:$0xff] %v7868_v41  ;;  %v7884_v19 = vshrl.u32 %v1589_v57, 7 }
 0x224   :  { %v7870_v59 = vpop.f32.mrf.mxu0  ;;  %v7872_v27 = vpop.f32.mrf.mxu1 }
 0x225   :  { %11574 = vst [vmem:[#allocation82_spill] sm:$0xff] %v7870_v59  ;;  %11575 = vst [vmem:[#allocation83_spill] sm:$0xff] %v7872_v27 }
 0x226   :  { %v7874_v49 = vpop.f32.mrf.mxu0  ;;  %v1195_v14 = vpop.f32.mrf.mxu1  ;;  %11577 = vst [vmem:[#allocation85_spill] sm:$0xff] %v7884_v19 }
 0x227   :  { %v1322_v34 = vmax.f32 %v7766_v38, %v1195_v14 }
 0x228   :  { %v884_v55 = vpop.f32.mrf.mxu0  ;;  %v1197_v3 = vpop.f32.mrf.mxu1 }
 0x229   :  { %v7879_v30 = vmax.f32 %v814_v17, %v884_v55  ;;  %1699 = vrot.lane.b32.xlu1 %v1322_v34, %s7046_s26  ;;  %v1323_v17 = vmax.f32 %v7768_v8, %v1197_v3 }
 0x22a   :  { %v7882_v41 = vpop.f32.mrf.mxu0  ;;  %v1199_v59 = vpop.f32.mrf.mxu1 }
 0x22b   :  { %11576 = vst [vmem:[#allocation84_spill] sm:$0xff] %v7879_v30  ;;  %v1326_v58 = vmax.f32 %v7772_v0, %v1199_v59  ;;  %v7889_v18 = vpop.permute.xlu1 %1420  ;;  %1697 = vrot.lane.b32.xlu0 %v7879_v30, %s7046_s26  ;;  %v7902_v59 = vld [vmem:[%s11278_s2] sm:$0x3]  ;;  %s7047_s2 = smov 80  }
 0x22c   :  { %11578 = vst [vmem:[#allocation86_spill] sm:$0xff] %v7889_v18  ;;  %v888_v14 = vpop.f32.mrf.mxu0  ;;  %v1201_v55 = vpop.f32.mrf.mxu1  ;;  %11580 = vst [vmem:[#allocation88_spill] sm:$0xff] %v7902_v59 }
 0x22d   :  { %v1419_v34 = vpop.permute.xlu0 %1418  ;;  %1705 = vrot.lane.b32.xlu1 %v1326_v58, %s7046_s26  ;;  %v1327_v0 = vmax.f32 %v7776_v50, %v1201_v55  ;;  %v1264_v58 = vmax.f32 %v7455_v35, %v7625_v48  ;;  %v7914_v55 = vmax.f32 %v7774_v26, %v888_v14 }
 0x22e   :  { %v7896_v38 = vpop.f32.mrf.mxu0  ;;  %v1205_v27 = vpop.f32.mrf.mxu1  ;;  %v1503_v33 = vsel %vm1502_vm6, %v1419_v34, %v7889_v18  ;;  %v11584_v34 = vsub.s32 0, %v7884_v19 }
 0x22f   :  { %11579 = vst [vmem:[#allocation87_spill] sm:$0xff] %v7896_v38  ;;  %v7908_v8 = vpop.permute.xlu1 %1426  ;;  %1701 = vrot.lane.b32.xlu0 %v1323_v17, %s7046_s26  ;;  %11582 = vst [vmem:[#allocation90_spill] sm:$0xff] %v7914_v55  ;;  %v1559_v18 = vmax.f32 %v1264_v58, %v1503_v33  ;;  %v1330_v35 = vmax.f32 %v7780_v40, %v1205_v27 }
 0x230   :  { %11581 = vst [vmem:[#allocation89_spill] sm:$0xff] %v7908_v8  ;;  %v894_v57 = vpop.f32.mrf.mxu0  ;;  %v1207_v50 = vpop.f32.mrf.mxu1  ;;  %v7922_v3 = vrot.slane %v7902_v59, %v11584_v34  ;;  %v1268_v34 = vmax.f32 %v7469_v44, %v7632_v21 }
 0x231   :  { %v7916_v30 = vpop.permute.xlu0 %1422  ;;  %1707 = vrot.lane.b32.xlu1 %v1327_v0, %s7046_s26  ;;  %v7936_v33 = vmax.f32 %v7782_v47, %v894_v57 }
 0x232   :  { %11583 = vst [vmem:[#allocation91_spill] sm:$0xff] %v7916_v30  ;;  %v7924_v38 = vpop.f32.mrf.mxu0  ;;  %v1209_v17 = vpop.f32.mrf.mxu1  ;;  %v1599_v27 = vadd.f32 %v7922_v3, %v1559_v18  ;;  %v1331_v30 = vmax.f32 %v7784_v6, %v1207_v50  ;;  %v1272_v18 = vmax.f32 %v7483_v54, %v7639_v2 }
 0x233   :  { %v7929_v26 = vpop.permute.xlu1 %1428  ;;  %1703 = vrot.lane.b32.xlu0 %v7914_v55, %s7046_s26  ;;  %11586 = vst [vmem:[#allocation93_spill] sm:$0xff] %v7936_v33 }
 0x234   :  { %11585 = vst [vmem:[#allocation92_spill] sm:$0xff] %v7929_v26  ;;  %v898_v14 = vpop.f32.mrf.mxu0  ;;  %v1211_v0 = vpop.f32.mrf.mxu1 }
 0x235   :  { %v1425_v58 = vpop.permute.xlu0 %1424  ;;  %1711 = vrot.lane.b32.xlu1 %v1330_v35, %s7046_s26  ;;  %v7956_v35 = vmax.f32 %v7790_v1, %v898_v14 }
 0x236   :  { %v1505_v40 = vsel %vm1502_vm6, %v1425_v58, %v7908_v8  ;;  %v7942_v48 = vpop.f32.mrf.mxu0  ;;  %v1215_v26 = vpop.f32.mrf.mxu1  ;;  %v1334_v8 = vmax.f32 %v7788_v36, %v1209_v17 }
 0x237   :  { %v1561_v59 = vmax.f32 %v1268_v34, %v1505_v40  ;;  %v7947_v21 = vpop.permute.xlu1 %1432  ;;  %1709 = vrot.lane.b32.xlu0 %v7936_v33, %s7046_s26  ;;  %11588 = vst [vmem:[#allocation95_spill] sm:$0xff] %v7956_v35  ;;  %v1627_v34 = vmax.f32 %v1599_v27, 0.0 }
 0x238   :  { %11587 = vst [vmem:[#allocation94_spill] sm:$0xff] %v7947_v21  ;;  %v904_v47 = vpop.f32.mrf.mxu0  ;;  %v7951_v57 = vpop.f32.mrf.mxu1 }
 0x239   :  { %v1601_v6 = vadd.f32 %v7922_v3, %v1561_v59  ;;  %v1431_v50 = vpop.permute.xlu0 %1430  ;;  %1713 = vrot.lane.b32.xlu1 %v1331_v30, %s7046_s26  ;;  %v1335_v59 = vmax.f32 %v7792_v13, %v1211_v0 }
 0x23a   :  { %v1507_v58 = vsel %vm1502_vm6, %v1431_v50, %v7947_v21  ;;  %v7962_v40 = vpop.f32.mrf.mxu0  ;;  %v1219_v44 = vpop.f32.mrf.mxu1  ;;  %v7993_v21 = vmax.f32 %v7798_v11, %v904_v47  ;;  %v6804_v47 = vld [vmem:[%s11279_s3 + $0xa8] ss:$12 sps:$4 sm:$0xff]  }
 0x23b   :  { %v1629_v33 = vmax.f32 %v1601_v6, 0.0  ;;  %v1563_v55 = vmax.f32 %v1272_v18, %v1507_v58  ;;  %v7967_v1 = vpop.permute.xlu1 %1434  ;;  %1715 = vrot.lane.b32.xlu0 %v7956_v35, %s7046_s26  ;;  %v1276_v18 = vmax.f32 %v7497_v63, %v7647_v45  ;;  %v1338_v6 = vmax.f32 %v7796_v53, %v1215_v26 }
 0x23c   :  { %11589 = vst [vmem:[#allocation96_spill] sm:$0xff] %v7967_v1  ;;  %v908_v2 = vpop.f32.mrf.mxu0  ;;  %v1221_v30 = vpop.f32.mrf.mxu1  ;;  %11592 = vst [vmem:[#allocation99_spill] sm:$0xff] %v7993_v21 }
 0x23d   :  { %v7972_v14 = vpack.c.bf16 %v1629_v33, %v1627_v34  ;;  %v1603_v27 = vadd.f32 %v7922_v3, %v1563_v55  ;;  %v1437_v50 = vpop.permute.xlu0 %1436  ;;  %1717 = vrot.lane.b32.xlu1 %v1334_v8, %s7046_s26 }
 0x23e   :  { %v7976_v36 = vpop.f32.mrf.mxu0  ;;  %v7978_v17 = vpop.f32.mrf.mxu1 }
 0x23f   :  { %11590 = vst [vmem:[#allocation97_spill] sm:$0xff] %v7972_v14  ;;  %v1631_v58 = vmax.f32 %v1603_v27, 0.0  ;;  %v7985_v0 = vpop.permute.xlu1 %1438  ;;  %1719 = vrot.lane.b32.xlu0 %v1335_v59, %s7046_s26  ;;  %v1950_v14 = vrot.slane %v1629_v33, 1  ;;  %v8002_v59 = vrot.slane %v1627_v34, 1  ;;  %v6806_v34 = vld [vmem:[%s11279_s3 + $0xac] ss:$12 sps:$4 sm:$0xff]  }
 0x240   :  { %11591 = vst [vmem:[#allocation98_spill] sm:$0xff] %v7985_v0  ;;  %v1509_v8 = vsel %vm1502_vm6, %v1437_v50, %v7985_v0  ;;  %v914_v55 = vpop.f32.mrf.mxu0  ;;  %v7990_v54 = vpop.f32.mrf.mxu1  ;;  %v1342_v50 = vmax.f32 %v7804_v10, %v1219_v44  ;;  %3471 = vmatprep.subr.bf16.mxu0 %v6806_v34 }
 0x241   :  { %v1955_v63 = vrot.slane %v1631_v58, 1  ;;  %v1565_v45 = vmax.f32 %v1276_v18, %v1509_v8  ;;  %v7995_v53 = vpop.permute.xlu0 %1440  ;;  %1723 = vrot.lane.b32.xlu1 %v1338_v6, %s7046_s26  ;;  %11594 = vst [vmem:[#allocation101_spill] sm:$0xff] %v8002_v59  ;;  %v1280_v6 = vmax.f32 %v7511_v22, %v7656_v15  ;;  %v1339_v8 = vmax.f32 %v7800_v28, %v7951_v57 }
 0x242   :  { %11593 = vst [vmem:[#allocation100_spill] sm:$0xff] %v7995_v53  ;;  %v7998_v26 = vpop.f32.mrf.mxu0  ;;  %v8000_v27 = vpop.f32.mrf.mxu1  ;;  %v1951_v0 = vsel %vm65_vm0, %v8002_v59, %v1950_v14  ;;  %3472 = vmatpush1.bf16.msra.mxu0 %v6804_v47  ;;  %v1343_v15 = vmax.f32 %v7808_v23, %v1221_v30  ;;  %v8045_v59 = vmax.f32 %v7806_v29, %v908_v2 }
 0x243   :  { %v1605_v13 = vadd.f32 %v7922_v3, %v1565_v45  ;;  %v8008_v33 = vpop.permute.xlu1 %1444  ;;  %1721 = vrot.lane.b32.xlu0 %v7993_v21, %s7046_s26  ;;  %v1956_v44 = vsel %vm65_vm0, %v1950_v14, %v1955_v63  ;;  %v1350_v23 = vmax.f32 %v7820_v4, %v8000_v27 }
 0x244   :  { %11595 = vst [vmem:[#allocation102_spill] sm:$0xff] %v8008_v33  ;;  %v918_v18 = vpop.f32.mrf.mxu0  ;;  %v8018_v10 = vpop.f32.mrf.mxu1  ;;  %v8034_v22 = vpack.i.bf16 %v1956_v44, %v1951_v0  ;;  %11598 = vst [vmem:[#allocation105_spill] sm:$0xff] %v8045_v59 }
 0x245   :  { %v1633_v45 = vmax.f32 %v1605_v13, 0.0  ;;  %v1443_v11 = vpop.permute.xlu0 %1442  ;;  %1729 = vrot.lane.b32.xlu1 %v1342_v50, %s7046_s26 }
 0x246   :  { %v1511_v53 = vsel %vm1502_vm6, %v1443_v11, %v8008_v33  ;;  %v8030_v1 = vpop.f32.mrf.mxu0  ;;  %v8032_v21 = vpop.f32.mrf.mxu1  ;;  %11596 = vst [vmem:[#allocation103_spill] sm:$0xff] %v8034_v22 }
 0x247   :  { %v1959_v28 = vrot.slane %v1633_v45, 1  ;;  %v1567_v57 = vmax.f32 %v1280_v6, %v1511_v53  ;;  %v1449_v50 = vpop.permute.xlu1 %1448  ;;  %1725 = vrot.lane.b32.xlu0 %v1339_v8, %s7046_s26  ;;  %v8042_v11 = vpack.c.bf16 %v1633_v45, %v1631_v58  ;;  %v1346_v58 = vmax.f32 %v7812_v9, %v7978_v17 }
 0x248   :  { %v924_v14 = vpop.f32.mrf.mxu0  ;;  %v8040_v34 = vpop.f32.mrf.mxu1 }
 0x249   :  { %11597 = vst [vmem:[#allocation104_spill] sm:$0xff] %v8042_v11  ;;  %v1607_v0 = vadd.f32 %v7922_v3, %v1567_v57  ;;  %v8050_v30 = vpop.permute.xlu0 %1446  ;;  %1731 = vrot.lane.b32.xlu1 %v1343_v15, %s7046_s26  ;;  %v1960_v44 = vsel %vm65_vm0, %v1955_v63, %v1959_v28  ;;  %v1284_v15 = vmax.f32 %v7525_v39, %v7665_v51 }
 0x24a   :  { %11599 = vst [vmem:[#allocation106_spill] sm:$0xff] %v8050_v30  ;;  %v8053_v53 = vpop.f32.mrf.mxu0  ;;  %v8055_v47 = vpop.f32.mrf.mxu1  ;;  %v8071_v63 = vmax.f32 %v7814_v32, %v914_v55  ;;  %v8094_v11 = vmax.f32 %v7822_v43, %v918_v18  ;;  %v11610_v30 = vld [vmem:[#allocation66_spill] sm:$0xff] }
 0x24b   :  { %v1635_v29 = vmax.f32 %v1607_v0, 0.0  ;;  %v8062_v6 = vpop.permute.xlu1 %1452  ;;  %1727 = vrot.lane.b32.xlu0 %v8045_v59, %s7046_s26 }
 0x24c   :  { %11600 = vst [vmem:[#allocation107_spill] sm:$0xff] %v8062_v6  ;;  %v928_v8 = vpop.f32.mrf.mxu0  ;;  %v8066_v45 = vpop.f32.mrf.mxu1  ;;  %11601 = vst [vmem:[#allocation108_spill] sm:$0xff] %v8071_v63 }
 0x24d   :  { %v1963_v57 = vrot.slane %v1635_v29, 1  ;;  %v8073_v9 = vpop.permute.xlu0 %1450  ;;  %1735 = vrot.lane.b32.xlu1 %v1346_v58, %s7046_s26  ;;  %v1288_v58 = vmax.f32 %v7539_v52, %v7672_v12  ;;  %11603 = vst [vmem:[#allocation110_spill] sm:$0xff] %v8094_v11 }
 0x24e   :  { %11602 = vst [vmem:[#allocation109_spill] sm:$0xff] %v8073_v9  ;;  %v1513_v17 = vsel %vm1502_vm6, %v1449_v50, %v8073_v9  ;;  %v8078_v0 = vpop.f32.mrf.mxu0  ;;  %v8080_v2 = vpop.f32.mrf.mxu1  ;;  %v11606_v9 = vld [vmem:[#allocation72_spill] sm:$0xff] }
 0x24f   :  { %v1569_v13 = vmax.f32 %v1284_v15, %v1513_v17  ;;  %v1455_v32 = vpop.permute.xlu1 %1454  ;;  %1733 = vrot.lane.b32.xlu0 %v8071_v63, %s7046_s26  ;;  %v1964_v50 = vsel %vm65_vm0, %v1959_v28, %v1963_v57  ;;  %v6807_v15 = vld [vmem:[%s11279_s3 + $0x90] ss:$12 sps:$4 sm:$0xff]   ;;  %v6809_v28 = vld [vmem:[%s11279_s3 + $0x94] ss:$12 sps:$4 sm:$0xff]  }
 0x250   :  { %v934_v51 = vpop.f32.mrf.mxu0  ;;  %v8088_v55 = vpop.f32.mrf.mxu1  ;;  %3473 = vmatprep.subr.bf16.mxu0 %v6809_v28 }
 0x251   :  { %v1609_v4 = vadd.f32 %v7922_v3, %v1569_v13  ;;  %v8097_v27 = vpop.permute.xlu0 %1456  ;;  %1741 = vrot.lane.b32.xlu1 %v1350_v23, %s7046_s26  ;;  %v8112_v13 = vpack.i.bf16 %v1964_v50, %v1960_v44  ;;  %v1354_v23 = vmax.f32 %v7828_v46, %v8032_v21  ;;  %3474 = vmatpush1.bf16.msra.mxu0 %v6807_v15  ;;  %v11608_v44 = vld [vmem:[#allocation36_spill] sm:$0xff]  ;;  %v11609_v50 = vld [vmem:[#allocation6_spill] sm:$0xff]  ;;  %v11613_v15 = vld [vmem:[#allocation67_spill] sm:$0xff] }
 0x252   :  { %11604 = vst [vmem:[#allocation111_spill] sm:$0xff] %v8097_v27  ;;  %v1515_v43 = vsel %vm1502_vm6, %v1455_v32, %v8097_v27  ;;  %v8110_v12 = vpop.f32.mrf.mxu0  ;;  %v1249_v18 = vpop.f32.mrf.mxu1  ;;  %v1292_v27 = vmax.f32 %v11609_v50, %v11608_v44  ;;  %v8127_v46 = vmax.f32 %v11610_v30, %v924_v14  ;;  %v1358_v44 = vmax.f32 %v11613_v15, %v8055_v47  ;;  %v11614_v30 = vld [vmem:[#allocation76_spill] sm:$0xff] }
 0x253   :  { %11605 = vst [vmem:[#allocation112_spill] sm:$0xff] %v8112_v13  ;;  %v1637_v17 = vmax.f32 %v1609_v4, 0.0  ;;  %v1571_v39 = vmax.f32 %v1288_v58, %v1515_v43  ;;  %v8118_v33 = vpop.permute.xlu1 %1462  ;;  %1739 = vrot.lane.b32.xlu0 %v8094_v11, %s7046_s26 }
 0x254   :  { %11607 = vst [vmem:[#allocation72_spill] sm:$0xff] %v8118_v33  ;;  %v938_v32 = vpop.f32.mrf.mxu0  ;;  %v8122_v52 = vpop.f32.mrf.mxu1  ;;  %11611 = vst [vmem:[#allocation36_spill] sm:$0xff] %v8127_v46 }
 0x255   :  { %v1967_v21 = vrot.slane %v1637_v17, 1  ;;  %v1611_v58 = vadd.f32 %v7922_v3, %v1571_v39  ;;  %1747 = vrot.lane.b32.xlu1 %v1354_v23, %s7046_s26  ;;  %v1461_v4 = vpop.permute.xlu0 %1460  ;;  %v8135_v63 = vpack.c.bf16 %v1637_v17, %v1635_v29  ;;  %v11615_v39 = vld [vmem:[#allocation39_spill] sm:$0xff]  ;;  %v11616_v23 = vld [vmem:[#allocation8_spill] sm:$0xff] }
 0x256   :  { %v1517_v43 = vsel %vm1502_vm6, %v1461_v4, %v8118_v33  ;;  %v8133_v28 = vpop.f32.mrf.mxu0  ;;  %v1255_v6 = vpop.f32.mrf.mxu1  ;;  %v1296_v13 = vmax.f32 %v11616_v23, %v11615_v39  ;;  %v11617_v17 = vld [vmem:[#allocation68_spill] sm:$0xff] }
 0x257   :  { %11612 = vst [vmem:[#allocation6_spill] sm:$0xff] %v8135_v63  ;;  %v1639_v50 = vmax.f32 %v1611_v58, 0.0  ;;  %v1573_v14 = vmax.f32 %v1292_v27, %v1517_v43  ;;  %1745 = vrot.lane.b32.xlu0 %v8127_v46, %s7046_s26  ;;  %v1968_v29 = vsel %vm65_vm0, %v1963_v57, %v1967_v21  ;;  %v8149_v63 = vmax.f32 %v11617_v17, %v928_v8  ;;  %v8152_v58 = vpop.permute.xlu1 %1468  ;;  %v11619_v43 = vld [vmem:[#allocation79_spill] sm:$0xff]  ;;  %v11620_v57 = vld [vmem:[#allocation70_spill] sm:$0xff] }
 0x258   :  { %v944_v4 = vpop.f32.mrf.mxu0  ;;  %v8145_v33 = vpop.f32.mrf.mxu1  ;;  %11618 = vst [vmem:[#allocation66_spill] sm:$0xff] %v8152_v58  ;;  %v1362_v8 = vmax.f32 %v11620_v57, %v8080_v2  ;;  %v6810_v2 = vld [vmem:[%s11279_s3 + $0x78] ss:$12 sps:$4 sm:$0xff]  }
 0x259   :  { %v1971_v47 = vrot.slane %v1639_v50, 1  ;;  %v1613_v27 = vadd.f32 %v7922_v3, %v1573_v14  ;;  %1753 = vrot.lane.b32.xlu1 %v1358_v44, %s7046_s26  ;;  %v1467_v11 = vpop.permute.xlu0 %1466  ;;  %v11621_v14 = vld [vmem:[#allocation80_spill] sm:$0xff]  ;;  %v11622_v44 = vld [vmem:[#allocation71_spill] sm:$0xff] }
 0x25a   :  { %v1519_v39 = vsel %vm1502_vm6, %v1467_v11, %v8152_v58  ;;  %v8159_v23 = vpop.f32.mrf.mxu0  ;;  %v8169_v59 = vmax.f32 %v11622_v44, %v934_v51  ;;  %v11626_v51 = vld [vmem:[#allocation73_spill] sm:$0xff]  ;;  %v11630_v44 = vld [vmem:[#allocation78_spill] sm:$0xff] }
 0x25b   :  { %v1641_v17 = vmax.f32 %v1613_v27, 0.0  ;;  %v1575_v46 = vmax.f32 %v1296_v13, %v1519_v39  ;;  %1751 = vrot.lane.b32.xlu0 %v8149_v63, %s7046_s26  ;;  %v1972_v15 = vsel %vm65_vm0, %v1967_v21, %v1971_v47  ;;  %v6812_v13 = vld [vmem:[%s11279_s3 + $0x7c] ss:$12 sps:$4 sm:$0xff]   ;;  %v1366_v27 = vmax.f32 %v11626_v51, %v1249_v18 }
 0x25c   :  { %11623 = vst [vmem:[#allocation67_spill] sm:$0xff] %v8169_v59  ;;  %v8183_v21 = vpack.i.bf16 %v1972_v15, %v1968_v29  ;;  %3475 = vmatprep.subr.bf16.mxu0 %v6812_v13  ;;  %v11627_v39 = vld [vmem:[#allocation74_spill] sm:$0xff]  ;;  %v11629_v29 = vld [vmem:[#allocation77_spill] sm:$0xff] }
 0x25d   :  { %v1975_v35 = vrot.slane %v1641_v17, 1  ;;  %v8171_v11 = vpack.c.bf16 %v1641_v17, %v1639_v50  ;;  %v8174_v58 = vadd.f32 %v7922_v3, %v1575_v46  ;;  %1759 = vrot.lane.b32.xlu1 %v1362_v8, %s7046_s26  ;;  %3476 = vmatpush1.bf16.msra.mxu0 %v6810_v2  ;;  %v8191_v57 = vmax.f32 %v11627_v39, %v938_v32  ;;  %v1259_v17 = vpop.f32.mrf.mxu1  ;;  %v948_v2 = vpop.f32.mrf.mxu0  ;;  %v11632_v13 = vld [vmem:[#allocation81_spill] sm:$0xff] }
 0x25e   :  { %v1370_v18 = vmax.f32 %v11629_v29, %v1255_v6  ;;  %v8206_v32 = vmax.f32 %v11630_v44, %v944_v4  ;;  %v1374_v51 = vmax.f32 %v11632_v13, %v1259_v17  ;;  %v11633_v6 = vld [vmem:[#allocation82_spill] sm:$0xff]  ;;  %v11636_v39 = vld [vmem:[#allocation5_spill] sm:$0xff]  ;;  %v11638_v29 = vld [vmem:[#allocation7_spill] sm:$0xff] }
 0x25f   :  { %11624 = vst [vmem:[#allocation76_spill] sm:$0xff] %v8171_v11  ;;  %11625 = vst [vmem:[#allocation39_spill] sm:$0xff] %v8174_v58  ;;  %v11328_v50 = vmax.f32 %v8174_v58, 0.0  ;;  %1757 = vrot.lane.b32.xlu0 %v8169_v59, %s7046_s26  ;;  %v1976_v46 = vsel %vm65_vm0, %v1971_v47, %v1975_v35  ;;  %v11637_v4 = vld [vmem:[#allocation38_spill] sm:$0xff]  ;;  %v6815_v17 = vld [vmem:[%s11279_s3 + $0x64] ss:$12 sps:$4 sm:$0xff]  }
 0x260   :  { %11628 = vst [vmem:[#allocation8_spill] sm:$0xff] %v8191_v57  ;;  %11631 = vst [vmem:[#allocation68_spill] sm:$0xff] %v8206_v32  ;;  %v6816_v44 = vld [vmem:[%s11279_s3 + $0x228] ss:$12 sps:$4 sm:$0xff]   ;;  %3477 = vmatprep.subr.bf16.mxu0 %v6815_v17 }
 0x261   :  { %v8195_v8 = vrot.slane %v11328_v50, 1  ;;  %1765 = vrot.lane.b32.xlu1 %v1366_v27, %s7046_s26  ;;  %v8213_v27 = vmax.f32 %v11633_v6, %v948_v2  ;;  %v6818_v2 = vld [vmem:[%s11279_s3 + $0x22c] ss:$12 sps:$4 sm:$0xff]   ;;  %v6819_v17 = vld [vmem:[%s11279_s3 + $0x48] ss:$12 sps:$4 sm:$0xff]  }
 0x262   :  { %v11639_v13 = vld [vmem:[#allocation44_spill] sm:$0xff]  ;;  %3644 = vmatprep.subr.bf16.mxu1 %v6818_v2  ;;  %v6822_v2 = vld [vmem:[%s11279_s3 + $0x210] ss:$12 sps:$4 sm:$0xff]  }
 0x263   :  { %1763 = vrot.lane.b32.xlu0 %v8191_v57, %s7046_s26  ;;  %v1980_v15 = vsel %vm65_vm0, %v1975_v35, %v8195_v8  ;;  %11634 = vst [vmem:[#allocation79_spill] sm:$0xff] %v8213_v27  ;;  %v11635_v35 = vld [vmem:[#allocation34_spill] sm:$0xff]  ;;  %3645 = vmatpush1.bf16.msra.mxu1 %v6816_v44 }
 0x264   :  { %v8203_v47 = vpack.i.bf16 %v1980_v15, %v1976_v46  ;;  %v1291_v46 = vmax.f32 %v11636_v39, %v11635_v35  ;;  %v6813_v15 = vld [vmem:[%s11279_s3 + $0x60] ss:$12 sps:$4 sm:$0xff]   ;;  %v11641_v35 = vld [vmem:[#allocation42_spill] sm:$0xff] }
 0x265   :  { %1771 = vrot.lane.b32.xlu1 %v1370_v18, %s7046_s26  ;;  %v1295_v18 = vmax.f32 %v11638_v29, %v11637_v4  ;;  %3478 = vmatpush1.bf16.msra.mxu0 %v6813_v15  ;;  %v11642_v39 = vld [vmem:[#allocation11_spill] sm:$0xff]  ;;  %v11643_v4 = vld [vmem:[#allocation48_spill] sm:$0xff] }
 0x266   :  { %v11644_v29 = vld [vmem:[#allocation16_spill] sm:$0xff] }
 0x267   :  { %1769 = vrot.lane.b32.xlu0 %v8206_v32, %s7046_s26  ;;  %v8246_v50 = vmax.f32 %v11644_v29, %v11643_v4  ;;  %v6821_v44 = vld [vmem:[%s11279_s3 + $0x4c] ss:$12 sps:$4 sm:$0xff]   ;;  %v6825_v29 = vld [vmem:[%s11279_s3 + $0x30] ss:$12 sps:$4 sm:$0xff]  }
 0x268   :  { %3479 = vmatprep.subr.bf16.mxu0 %v6821_v44  ;;  %v6836_v44 = vld [vmem:[%s11279_s3 + $0x1fc] ss:$12 sps:$4 sm:$0xff]   ;;  %v11659_v32 = vld [vmem:[#allocation9_spill] sm:$0xff] }
 0x269   :  { %1777 = vrot.lane.b32.xlu1 %v1374_v51, %s7046_s26  ;;  %v11640_v51 = vld [vmem:[#allocation12_spill] sm:$0xff]  ;;  %11645 = vst [vmem:[#allocation70_spill] sm:$0xff] %v8246_v50  ;;  %3480 = vmatpush1.bf16.msra.mxu0 %v6819_v17  ;;  %v6834_v17 = vld [vmem:[%s11279_s3 + $0x1f8] ss:$12 sps:$4 sm:$0xff]  }
 0x26a   :  { %v8237_v6 = vmax.f32 %v11640_v51, %v11639_v13  ;;  %v11646_v13 = vld [vmem:[#allocation47_spill] sm:$0xff] }
 0x26b   :  { %1775 = vrot.lane.b32.xlu0 %v8213_v27, %s7046_s26  ;;  %v11647_v51 = vld [vmem:[#allocation15_spill] sm:$0xff] }
 0x26c   :  { %v1306_v22 = vmax.f32 %v11647_v51, %v11646_v13  ;;  %v6827_v13 = vld [vmem:[%s11279_s3 + $0x34] ss:$12 sps:$4 sm:$0xff]   ;;  %v6830_v51 = vld [vmem:[%s11279_s3 + $0x1c] ss:$12 sps:$4 sm:$0xff]  }
 0x26d   :  { %1458 = vrot.lane.b32.xlu1 %v1291_v46, %s7046_s26  ;;  %v1302_v46 = vmax.f32 %v11642_v39, %v11641_v35  ;;  %v6824_v35 = vld [vmem:[%s11279_s3 + $0x214] ss:$12 sps:$4 sm:$0xff]   ;;  %3481 = vmatprep.subr.bf16.mxu0 %v6827_v13  ;;  %v6863_v13 = vld [vmem:[%s11279_s3 + $0x1cc] ss:$12 sps:$4 sm:$0xff]  }
 0x26e   :  { %3646 = vmatprep.subr.bf16.mxu1 %v6824_v35  ;;  %3482 = vmatpush1.bf16.msra.mxu0 %v6825_v29  ;;  %v6839_v35 = vld [vmem:[%s11279_s3 + $0x16c] ss:$12 sps:$4 sm:$0xff]   ;;  %v6861_v29 = vld [vmem:[%s11279_s3 + $0x1c8] ss:$12 sps:$4 sm:$0xff]  }
 0x26f   :  { %1464 = vrot.lane.b32.xlu0 %v1295_v18, %s7046_s26  ;;  %v11648_v18 = vld [vmem:[#allocation64_spill] sm:$0xff]  ;;  %3647 = vmatpush1.bf16.msra.mxu1 %v6822_v2 }
 0x270   :  { %v1347_v15 = vmax.f32 %v11648_v18, %v7990_v54  ;;  %v11649_v54 = vld [vmem:[#allocation65_spill] sm:$0xff]  ;;  %3483 = vmatprep.subr.bf16.mxu0 %v6830_v51  ;;  %v6831_v18 = vld [vmem:[%s11279_s3] ss:$12 sps:$4 sm:$0xff]   ;;  %3648 = vmatprep.subr.bf16.mxu1 %v6836_v44 }
 0x271   :  { %1472 = vrot.lane.b32.xlu1 %v8237_v6, %s7046_s26  ;;  %v1351_v39 = vmax.f32 %v11649_v54, %v8018_v10  ;;  %v6828_v10 = vld [vmem:[%s11279_s3 + $0x18] ss:$12 sps:$4 sm:$0xff]   ;;  %v6837_v2 = vld [vmem:[%s11279_s3 + $0x168] ss:$12 sps:$4 sm:$0xff]  }
 0x272   :  { %3484 = vmatpush1.bf16.msra.mxu0 %v6828_v10  ;;  %v6842_v54 = vld [vmem:[%s11279_s3 + $0x154] ss:$12 sps:$4 sm:$0xff]   ;;  %v6843_v10 = vld [vmem:[%s11279_s3 + $0x138] ss:$12 sps:$4 sm:$0xff]  }
 0x273   :  { %1474 = vrot.lane.b32.xlu0 %v1302_v46, %s7046_s26  ;;  %v11651_v46 = vld [vmem:[#allocation13_spill] sm:$0xff]  ;;  %3649 = vmatpush1.bf16.msra.mxu1 %v6834_v17 }
 0x274   :  { %v6851_v51 = vld [vmem:[%s11279_s3 + $0x124] ss:$12 sps:$4 sm:$0xff]   ;;  %v6852_v17 = vld [vmem:[%s11279_s3 + $0x108] ss:$12 sps:$4 sm:$0xff]  }
 0x275   :  { %1478 = vrot.lane.b32.xlu1 %v8246_v50, %s7046_s26  ;;  %v6857_v44 = vld [vmem:[%s11279_s3 + $0xf4] ss:$12 sps:$4 sm:$0xff]  }
 0x277   :  { %1480 = vrot.lane.b32.xlu0 %v1306_v22, %s7046_s26  ;;  %v11650_v22 = vld [vmem:[#allocation45_spill] sm:$0xff] }
 0x278   :  { %v1303_v4 = vmax.f32 %v11651_v46, %v11650_v22  ;;  %v6848_v22 = vld [vmem:[%s11279_s3 + $0x1e4] ss:$12 sps:$4 sm:$0xff]  }
 0x279   :  { %1737 = vrot.lane.b32.xlu1 %v1347_v15, %s7046_s26  ;;  %v6833_v15 = vld [vmem:[%s11279_s3 + $0x4] ss:$12 sps:$4 sm:$0xff]   ;;  %3650 = vmatprep.subr.bf16.mxu1 %v6848_v22 }
 0x27a   :  { %3485 = vmatprep.subr.bf16.mxu0 %v6833_v15  ;;  %v6840_v46 = vld [vmem:[%s11279_s3 + $0x150] ss:$12 sps:$4 sm:$0xff]   ;;  %v6854_v15 = vld [vmem:[%s11279_s3 + $0x10c] ss:$12 sps:$4 sm:$0xff]  }
 0x27b   :  { %1743 = vrot.lane.b32.xlu0 %v1351_v39, %s7046_s26  ;;  %3486 = vmatpush1.bf16.msra.mxu0 %v6831_v18  ;;  %v6846_v39 = vld [vmem:[%s11279_s3 + $0x1e0] ss:$12 sps:$4 sm:$0xff]  }
 0x27c   :  { %3487 = vmatprep.subr.bf16.mxu0 %v6839_v35  ;;  %3651 = vmatpush1.bf16.msra.mxu1 %v6846_v39  ;;  %v6849_v18 = vld [vmem:[%s11279_s3 + $0x120] ss:$12 sps:$4 sm:$0xff]  }
 0x27d   :  { %1476 = vrot.lane.b32.xlu1 %v1303_v4, %s7046_s26  ;;  %v6845_v4 = vld [vmem:[%s11279_s3 + $0x13c] ss:$12 sps:$4 sm:$0xff]   ;;  %3652 = vmatprep.subr.bf16.mxu1 %v6863_v13 }
 0x27f   :  { %3488 = vmatpush2.bf16.msra.mxu0 %v6837_v2  ;;  %v6855_v2 = vld [vmem:[%s11279_s3 + $0xf0] ss:$12 sps:$4 sm:$0xff]  }
 0x280   :  { %3489 = vmatprep.subr.bf16.mxu0 %v6842_v54  ;;  %3653 = vmatpush1.bf16.msra.mxu1 %v6861_v29  ;;  %v6860_v54 = vld [vmem:[%s11279_s3 + $0xdc] ss:$12 sps:$4 sm:$0xff]   ;;  %v11652_v29 = vmax.f32 %v7764_v7, %v7874_v49  ;;  %v11653_v7 = vmax.f32 %v7770_v61, %v7882_v41 }
 0x283   :  { %3490 = vmatpush2.bf16.msra.mxu0 %v6840_v46  ;;  %v6858_v46 = vld [vmem:[%s11279_s3 + $0xd8] ss:$12 sps:$4 sm:$0xff]  }
 0x284   :  { %3491 = vmatprep.subr.bf16.mxu0 %v6845_v4 }
 0x287   :  { %3492 = vmatpush2.bf16.msra.mxu0 %v6843_v10 }
 0x288   :  { %3493 = vmatprep.subr.bf16.mxu0 %v6851_v51  ;;  %v6864_v51 = vld [vmem:[%s11279_s3 + $0xc0] ss:$12 sps:$4 sm:$0xff]  }
 0x28b   :  { %3494 = vmatpush2.bf16.msra.mxu0 %v6849_v18  ;;  %v6866_v18 = vld [vmem:[%s11279_s3 + $0xc4] ss:$12 sps:$4 sm:$0xff]  }
 0x28c   :  { %3495 = vmatprep.subr.bf16.mxu0 %v6854_v15 }
 0x28f   :  { %3496 = vmatpush2.bf16.msra.mxu0 %v6852_v17 }
 0x290   :  { %3497 = vmatprep.subr.bf16.mxu0 %v6857_v44 }
 0x293   :  { %3498 = vmatpush2.bf16.msra.mxu0 %v6855_v2 }
 0x294   :  { %3499 = vmatprep.subr.bf16.mxu0 %v6860_v54 }
 0x297   :  { %3500 = vmatpush2.bf16.msra.mxu0 %v6858_v46 }
 0x298   :  { %3501 = vmatprep.subr.bf16.mxu0 %v6866_v18  ;;  %v11654_v18 = vld [vmem:[#allocation87_spill] sm:$0xff] }
 0x299   :  { %v11655_v27 = vmax.f32 %v7778_v62, %v11654_v18 }
 0x29b   :  { %v8347_v35 = vpop.permute.xlu1 %1699  ;;  %3502 = vmatpush2.bf16.msra.mxu0 %v6864_v51 }
 0x29d   :  { %v1698_v39 = vpop.permute.xlu0 %1697 }
 0x29e   :  { %v1781_v22 = vsel %vm1502_vm6, %v1698_v39, %v8347_v35 }
 0x29f   :  { %v8357_v4 = vpop.permute.xlu1 %1705  ;;  %v1837_v13 = vmax.f32 %v11652_v29, %v1781_v22 }
 0x2a1   :  { %v8362_v10 = vpop.permute.xlu0 %1701  ;;  %v1865_v17 = vadd.f32 %v1837_v13, %v7922_v3 }
 0x2a3   :  { %v8370_v15 = vpop.permute.xlu1 %1707  ;;  %v8380_v39 = vmax.f32 %v1865_v17, 0.0 }
 0x2a5   :  { %v1704_v44 = vpop.permute.xlu0 %1703  ;;  %v11334_v41 = vrot.slane %v8380_v39, 1 }
 0x2a6   :  { %v1783_v49 = vsel %vm1502_vm6, %v1704_v44, %v8357_v4 }
 0x2a7   :  { %v1839_v2 = vmax.f32 %v11653_v7, %v1783_v49  ;;  %v8378_v54 = vpop.permute.xlu1 %1711 }
 0x2a9   :  { %v1867_v22 = vadd.f32 %v1839_v2, %v7922_v3  ;;  %v1710_v46 = vpop.permute.xlu0 %1709  ;;  %v6867_v2 = vld [vmem:[%s11279_s3 + $0x1b0] ss:$12 sps:$4 sm:$0xff]  }
 0x2aa   :  { %v1785_v29 = vsel %vm1502_vm6, %v1710_v46, %v8378_v54 }
 0x2ab   :  { %v1895_v13 = vmax.f32 %v1867_v22, 0.0  ;;  %v1841_v44 = vmax.f32 %v11655_v27, %v1785_v29  ;;  %v8388_v51 = vpop.permute.xlu1 %1713  ;;  %v6869_v22 = vld [vmem:[%s11279_s3 + $0x1b4] ss:$12 sps:$4 sm:$0xff]  }
 0x2ac   :  { %3654 = vmatprep.subr.bf16.mxu1 %v6869_v22 }
 0x2ad   :  { %v2038_v61 = vrot.slane %v1895_v13, 1  ;;  %v1869_v49 = vadd.f32 %v1841_v44, %v7922_v3  ;;  %v1716_v17 = vpop.permute.xlu0 %1715  ;;  %v6460_v7 = vpack.i.bf16 %v1895_v13, %v8380_v39  ;;  %v8400_v62 = vpack.c.bf16 %v1895_v13, %v8380_v39  ;;  %3655 = vmatpush1.bf16.msra.mxu1 %v6867_v2  ;;  %v11658_v44 = vld [vmem:[#allocation40_spill] sm:$0xff] }
 0x2ae   :  { %v1299_v13 = vmax.f32 %v11659_v32, %v11658_v44  ;;  %v11662_v32 = vld [vmem:[#allocation53_spill] sm:$0xff]  ;;  %v11663_v2 = vld [vmem:[#allocation20_spill] sm:$0xff] }
 0x2af   :  { %11656 = vst [vmem:[#allocation80_spill] sm:$0xff] %v8400_v62  ;;  %v1897_v27 = vmax.f32 %v1869_v49, 0.0  ;;  %v8402_v46 = vpop.permute.xlu1 %1717  ;;  %6461 = vrot.lane.b32.xlu0 %v6460_v7, %s7047_s2  ;;  %v8408_v29 = vsel %vm65_vm0, %v11334_v41, %v2038_v61  ;;  %v11660_v49 = vmax.f32 %v7786_v37, %v7924_v38  ;;  %v8430_v44 = vmax.f32 %v11663_v2, %v11662_v32  ;;  %v11666_v32 = vld [vmem:[#allocation58_spill] sm:$0xff]  ;;  %v11667_v2 = vld [vmem:[#allocation24_spill] sm:$0xff] }
 0x2b0   :  { %11657 = vst [vmem:[#allocation71_spill] sm:$0xff] %v8408_v29  ;;  %v1787_v18 = vsel %vm1502_vm6, %v1716_v17, %v8402_v46 }
 0x2b1   :  { %v2043_v62 = vrot.slane %v1897_v27, 1  ;;  %v1843_v57 = vmax.f32 %v11660_v49, %v1787_v18  ;;  %v8417_v59 = vpop.permute.xlu0 %1719  ;;  %v11664_v49 = vmax.f32 %v7794_v42, %v7942_v48  ;;  %v11670_v48 = vld [vmem:[#allocation52_spill] sm:$0xff] }
 0x2b3   :  { %v1871_v7 = vadd.f32 %v1843_v57, %v7922_v3  ;;  %v8420_v22 = vpop.permute.xlu1 %1723  ;;  %1470 = vrot.lane.b32.xlu0 %v1299_v13, %s7046_s26  ;;  %v8424_v41 = vsel %vm65_vm0, %v2038_v61, %v2043_v62 }
 0x2b4   :  { %11661 = vst [vmem:[#allocation73_spill] sm:$0xff] %v8424_v41 }
 0x2b5   :  { %v1899_v37 = vmax.f32 %v1871_v7, 0.0  ;;  %v1722_v38 = vpop.permute.xlu0 %1721  ;;  %v8445_v7 = vmax.f32 %v11667_v2, %v11666_v32  ;;  %v11673_v32 = vld [vmem:[#allocation23_spill] sm:$0xff]  ;;  %v11674_v2 = vmax.f32 %v7802_v25, %v7962_v40 }
 0x2b6   :  { %v1789_v18 = vsel %vm1502_vm6, %v1722_v38, %v8420_v22 }
 0x2b7   :  { %v2047_v57 = vrot.slane %v1899_v37, 1  ;;  %v1845_v13 = vmax.f32 %v11664_v49, %v1789_v18  ;;  %v8437_v58 = vpop.permute.xlu1 %1729  ;;  %1484 = vrot.lane.b32.xlu0 %v8430_v44, %s7046_s26  ;;  %v6465_v61 = vpack.i.bf16 %v1899_v37, %v1897_v27  ;;  %v8441_v17 = vpack.c.bf16 %v1899_v37, %v1897_v27  ;;  %11668 = vst [vmem:[#allocation77_spill] sm:$0xff] %v8445_v7  ;;  %v11671_v18 = vld [vmem:[#allocation19_spill] sm:$0xff] }
 0x2b8   :  { %v1310_v49 = vmax.f32 %v11671_v18, %v11670_v48  ;;  %v6870_v18 = vld [vmem:[%s11279_s3 + $0x198] ss:$12 sps:$4 sm:$0xff]  }
 0x2b9   :  { %11665 = vst [vmem:[#allocation74_spill] sm:$0xff] %v8441_v17  ;;  %v1873_v29 = vadd.f32 %v1845_v13, %v7922_v3  ;;  %6466 = vrot.lane.b32.xlu1 %v6465_v61, %s7047_s2  ;;  %v8449_v38 = vpop.permute.xlu0 %1725  ;;  %v8452_v42 = vsel %vm65_vm0, %v2043_v62, %v2047_v57  ;;  %v11672_v61 = vld [vmem:[#allocation57_spill] sm:$0xff] }
 0x2ba   :  { %11669 = vst [vmem:[#allocation78_spill] sm:$0xff] %v8452_v42  ;;  %v1314_v62 = vmax.f32 %v11673_v32, %v11672_v61 }
 0x2bb   :  { %v1901_v41 = vmax.f32 %v1873_v29, 0.0  ;;  %v8456_v50 = vpop.permute.xlu1 %1731  ;;  %1490 = vrot.lane.b32.xlu0 %v8445_v7, %s7046_s26 }
 0x2bd   :  { %v2051_v27 = vrot.slane %v1901_v41, 1  ;;  %1486 = vrot.lane.b32.xlu1 %v1310_v49, %s7046_s26  ;;  %v1728_v37 = vpop.permute.xlu0 %1727  ;;  %v6872_v49 = vld [vmem:[%s11279_s3 + $0x19c] ss:$12 sps:$4 sm:$0xff]  }
 0x2be   :  { %v1791_v13 = vsel %vm1502_vm6, %v1728_v37, %v8437_v58  ;;  %3656 = vmatprep.subr.bf16.mxu1 %v6872_v49 }
 0x2bf   :  { %v1847_v48 = vmax.f32 %v11674_v2, %v1791_v13  ;;  %v8468_v29 = vpop.permute.xlu1 %1735  ;;  %v8477_v17 = vsel %vm65_vm0, %v2047_v57, %v2051_v27  ;;  %3657 = vmatpush1.bf16.msra.mxu1 %v6870_v18  ;;  %v11675_v13 = vld [vmem:[#allocation69_spill] sm:$0xff]  ;;  %v11676_v57 = vmax.f32 %v7810_v16, %v7976_v36 }
 0x2c0   :  { %v1359_v32 = vmax.f32 %v11675_v13, %v8066_v45  ;;  %v6873_v13 = vld [vmem:[%s11279_s3 + $0x180] ss:$12 sps:$4 sm:$0xff]  }
 0x2c1   :  { %v1875_v61 = vadd.f32 %v1847_v48, %v7922_v3  ;;  %1492 = vrot.lane.b32.xlu1 %v1314_v62, %s7046_s26  ;;  %v1734_v25 = vpop.permute.xlu0 %1733 }
 0x2c2   :  { %v1793_v40 = vsel %vm1502_vm6, %v1734_v25, %v8468_v29 }
 0x2c3   :  { %v1903_v2 = vmax.f32 %v1875_v61, 0.0  ;;  %v1849_v7 = vmax.f32 %v11676_v57, %v1793_v40  ;;  %v8490_v11 = vpop.permute.xlu1 %1741  ;;  %v11677_v61 = vmax.f32 %v7818_v24, %v7998_v26  ;;  %v6875_v24 = vld [vmem:[%s11279_s3 + $0x184] ss:$12 sps:$4 sm:$0xff]  }
 0x2c4   :  { %3658 = vmatprep.subr.bf16.mxu1 %v6875_v24 }
 0x2c5   :  { %v2055_v37 = vrot.slane %v1903_v2, 1  ;;  %v1877_v48 = vadd.f32 %v1849_v7, %v7922_v3  ;;  %1755 = vrot.lane.b32.xlu1 %v1359_v32, %s7046_s26  ;;  %v1740_v62 = vpop.permute.xlu0 %1739  ;;  %v6470_v49 = vpack.i.bf16 %v1903_v2, %v1901_v41  ;;  %v8494_v42 = vpack.c.bf16 %v1903_v2, %v1901_v41  ;;  %3659 = vmatpush1.bf16.msra.mxu1 %v6873_v13 }
 0x2c6   :  { %v1795_v18 = vsel %vm1502_vm6, %v1740_v62, %v8490_v11 }
 0x2c7   :  { %v1905_v45 = vmax.f32 %v1877_v48, 0.0  ;;  %v1851_v16 = vmax.f32 %v11677_v61, %v1795_v18  ;;  %v8501_v36 = vpop.permute.xlu1 %1747  ;;  %6471 = vrot.lane.b32.xlu0 %v6470_v49, %s7047_s2  ;;  %v8505_v7 = vsel %vm65_vm0, %v2051_v27, %v2055_v37  ;;  %v11678_v27 = vmax.f32 %v7826_v20, %v8030_v1  ;;  %v11680_v49 = vld [vmem:[#allocation54_spill] sm:$0xff]  ;;  %v11681_v18 = vld [vmem:[#allocation21_spill] sm:$0xff] }
 0x2c8   :  { %v11679_v48 = vmax.f32 %v7832_v60, %v8040_v34  ;;  %v1311_v61 = vmax.f32 %v11681_v18, %v11680_v49  ;;  %v6876_v60 = vld [vmem:[%s11279_s3 + $0x2e8] ss:$12 sps:$4 sm:$0xff]   ;;  %v6878_v34 = vld [vmem:[%s11279_s3 + $0x2ec] ss:$12 sps:$4 sm:$0xff]  }
 0x2c9   :  { %v2059_v25 = vrot.slane %v1905_v45, 1  ;;  %v1879_v40 = vadd.f32 %v1851_v16, %v7922_v3  ;;  %v1746_v41 = vpop.permute.xlu0 %1745  ;;  %3660 = vmatprep.subr.bf16.mxu1 %v6878_v34  ;;  %v11686_v18 = vld [vmem:[#allocation61_spill] sm:$0xff] }
 0x2ca   :  { %v1797_v26 = vsel %vm1502_vm6, %v1746_v41, %v8501_v36  ;;  %3661 = vmatpush2.bf16.msra.mxu1 %v6876_v60 }
 0x2cb   :  { %v1907_v32 = vmax.f32 %v1879_v40, 0.0  ;;  %v1853_v2 = vmax.f32 %v11678_v27, %v1797_v26  ;;  %v8519_v57 = vpop.permute.xlu1 %1753  ;;  %1749 = vrot.lane.b32.xlu0 %v11679_v48, %s7046_s26  ;;  %v8526_v62 = vsel %vm65_vm0, %v2055_v37, %v2059_v25  ;;  %v11683_v26 = vmax.f32 %v7834_v5, %v8053_v53 }
 0x2cd   :  { %v2063_v20 = vrot.slane %v1907_v32, 1  ;;  %v1881_v1 = vadd.f32 %v1853_v2, %v7922_v3  ;;  %v1752_v40 = vpop.permute.xlu0 %1751  ;;  %v6475_v41 = vpack.i.bf16 %v1907_v32, %v1905_v45  ;;  %v8539_v37 = vpack.c.bf16 %v1907_v32, %v1905_v45  ;;  %v11684_v45 = vld [vmem:[#allocation49_spill] sm:$0xff] }
 0x2ce   :  { %v1799_v13 = vsel %vm1502_vm6, %v1752_v40, %v8519_v57  ;;  %v11685_v32 = vld [vmem:[#allocation17_spill] sm:$0xff]  ;;  %v11687_v40 = vld [vmem:[#allocation27_spill] sm:$0xff] }
 0x2cf   :  { %11682 = vst [vmem:[#allocation81_spill] sm:$0xff] %v8539_v37  ;;  %v1909_v24 = vmax.f32 %v1881_v1, 0.0  ;;  %v1855_v27 = vmax.f32 %v11683_v26, %v1799_v13  ;;  %v8546_v2 = vpop.permute.xlu1 %1759  ;;  %6476 = vrot.lane.b32.xlu1 %v6475_v41, %s7047_s2  ;;  %1488 = vrot.lane.b32.xlu0 %v1311_v61, %s7046_s26  ;;  %v8551_v48 = vsel %vm65_vm0, %v2059_v25, %v2063_v20  ;;  %v6879_v41 = vld [vmem:[%s11279_s3 + $0x2d0] ss:$12 sps:$4 sm:$0xff]   ;;  %v6881_v25 = vld [vmem:[%s11279_s3 + $0x2d4] ss:$12 sps:$4 sm:$0xff]  }
 0x2d0   :  { %v1307_v49 = vmax.f32 %v11685_v32, %v11684_v45  ;;  %v1318_v1 = vmax.f32 %v11687_v40, %v11686_v18  ;;  %v11688_v13 = vmax.f32 %v7842_v31, %v8078_v0  ;;  %v11690_v32 = vld [vmem:[#allocation28_spill] sm:$0xff]  ;;  %3662 = vmatprep.subr.bf16.mxu1 %v6881_v25 }
 0x2d1   :  { %v2067_v16 = vrot.slane %v1909_v24, 1  ;;  %v1883_v5 = vadd.f32 %v1855_v27, %v7922_v3  ;;  %v1758_v53 = vpop.permute.xlu0 %1757  ;;  %v11689_v27 = vld [vmem:[#allocation62_spill] sm:$0xff]  ;;  %3663 = vmatpush2.bf16.msra.mxu1 %v6879_v41 }
 0x2d2   :  { %v1801_v61 = vsel %vm1502_vm6, %v1758_v53, %v8546_v2  ;;  %v8578_v18 = vmax.f32 %v11690_v32, %v11689_v27  ;;  %v1784_v32 = vsel %vm1502_vm6, %v8357_v4, %v8370_v15  ;;  %v11695_v4 = vmax.f32 %v11614_v30, %v8133_v28  ;;  %v11700_v30 = vld [vmem:[#allocation90_spill] sm:$0xff] }
 0x2d3   :  { %v1911_v34 = vmax.f32 %v1883_v5, 0.0  ;;  %v1857_v26 = vmax.f32 %v11688_v13, %v1801_v61  ;;  %v8569_v45 = vpop.permute.xlu1 %1765  ;;  %1482 = vrot.lane.b32.xlu1 %v1307_v49, %s7046_s26  ;;  %1498 = vrot.lane.b32.xlu0 %v1318_v1, %s7046_s26  ;;  %v8574_v60 = vsel %vm65_vm0, %v2063_v20, %v2067_v16  ;;  %v6882_v49 = vld [vmem:[%s11279_s3 + $0x2b8] ss:$12 sps:$4 sm:$0xff]   ;;  %v6884_v20 = vld [vmem:[%s11279_s3 + $0x2bc] ss:$12 sps:$4 sm:$0xff]   ;;  %v11692_v13 = vmax.f32 %v11606_v9, %v8110_v12 }
 0x2d4   :  { %3664 = vmatprep.subr.bf16.mxu1 %v6884_v20  ;;  %v1782_v28 = vsel %vm1502_vm6, %v8347_v35, %v8362_v10  ;;  %v6890_v35 = vld [vmem:[%s11279_s3 + $0x28c] ss:$12 sps:$4 sm:$0xff]  }
 0x2d5   :  { %v2071_v5 = vrot.slane %v1911_v34, 1  ;;  %v1885_v31 = vadd.f32 %v1857_v26, %v7922_v3  ;;  %v1764_v0 = vpop.permute.xlu0 %1763  ;;  %v6480_v53 = vpack.i.bf16 %v1911_v34, %v1909_v24  ;;  %v8589_v1 = vpack.c.bf16 %v1911_v34, %v1909_v24  ;;  %v11694_v24 = vld [vmem:[#allocation75_spill] sm:$0xff]  ;;  %3665 = vmatpush2.bf16.msra.mxu1 %v6882_v49 }
 0x2d6   :  { %v1803_v25 = vsel %vm1502_vm6, %v1764_v0, %v8569_v45  ;;  %v1367_v34 = vmax.f32 %v11694_v24, %v8122_v52  ;;  %v6885_v0 = vld [vmem:[%s11279_s3 + $0x2a0] ss:$12 sps:$4 sm:$0xff]   ;;  %v11696_v49 = vmax.f32 %v7848_v56, %v8088_v55  ;;  %v11699_v24 = vld [vmem:[#allocation25_spill] sm:$0xff] }
 0x2d7   :  { %11691 = vst [vmem:[#allocation82_spill] sm:$0xff] %v8589_v1  ;;  %v1913_v61 = vmax.f32 %v1885_v31, 0.0  ;;  %v1859_v26 = vmax.f32 %v11692_v13, %v1803_v25  ;;  %v8596_v27 = vpop.permute.xlu1 %1771  ;;  %1496 = vrot.lane.b32.xlu1 %v8578_v18, %s7046_s26  ;;  %6481 = vrot.lane.b32.xlu0 %v6480_v53, %s7047_s2  ;;  %v8602_v41 = vsel %vm65_vm0, %v2067_v16, %v2071_v5  ;;  %v6887_v16 = vld [vmem:[%s11279_s3 + $0x2a4] ss:$12 sps:$4 sm:$0xff]   ;;  %v11343_v53 = vsub.s32 1, %v7884_v19 }
 0x2d8   :  { %11693 = vst [vmem:[#allocation34_spill] sm:$0xff] %v8602_v41  ;;  %3666 = vmatprep.subr.bf16.mxu1 %v6887_v16  ;;  %v11750_v41 = vld [vmem:[#allocation104_spill] sm:$0xff] }
 0x2d9   :  { %v2075_v9 = vrot.slane %v1913_v61, 1  ;;  %v1887_v12 = vadd.f32 %v1859_v26, %v7922_v3  ;;  %v1770_v31 = vpop.permute.xlu0 %1769  ;;  %v11698_v26 = vld [vmem:[#allocation59_spill] sm:$0xff]  ;;  %3667 = vmatpush2.bf16.msra.mxu1 %v6885_v0 }
 0x2da   :  { %v1805_v52 = vsel %vm1502_vm6, %v1770_v31, %v8596_v27  ;;  %v1315_v31 = vmax.f32 %v11699_v24, %v11698_v26  ;;  %v11704_v24 = vmax.f32 %v11621_v14, %v8159_v23  ;;  %3668 = vmatprep.subr.bf16.mxu1 %v6890_v35 }
 0x2db   :  { %v1915_v20 = vmax.f32 %v1887_v12, 0.0  ;;  %v1861_v15 = vmax.f32 %v11695_v4, %v1805_v52  ;;  %v8622_v25 = vpop.permute.xlu1 %1777  ;;  %1761 = vrot.lane.b32.xlu1 %v11696_v49, %s7046_s26  ;;  %1767 = vrot.lane.b32.xlu0 %v1367_v34, %s7046_s26  ;;  %v8630_v13 = vsel %vm65_vm0, %v2071_v5, %v2075_v9  ;;  %v1840_v12 = vmax.f32 %v11700_v30, %v1784_v32  ;;  %v6888_v5 = vld [vmem:[%s11279_s3 + $0x288] ss:$12 sps:$4 sm:$0xff]  }
 0x2dc   :  { %11697 = vst [vmem:[#allocation5_spill] sm:$0xff] %v8630_v13  ;;  %v11702_v32 = vld [vmem:[#allocation88_spill] sm:$0xff] }
 0x2dd   :  { %v2079_v56 = vrot.slane %v1915_v20, 1  ;;  %v1889_v55 = vadd.f32 %v1861_v15, %v7922_v3  ;;  %v1776_v34 = vpop.permute.xlu0 %1775  ;;  %v6485_v4 = vpack.i.bf16 %v1915_v20, %v1913_v61  ;;  %v8647_v10 = vpack.c.bf16 %v1915_v20, %v1913_v61  ;;  %v11703_v49 = vld [vmem:[#allocation84_spill] sm:$0xff]  ;;  %v11706_v20 = vld [vmem:[#allocation63_spill] sm:$0xff]  ;;  %3669 = vmatpush2.bf16.msra.mxu1 %v6888_v5 }
 0x2de   :  { %v8652_v16 = vrot.slane %v11702_v32, %v11343_v53  ;;  %v1807_v15 = vsel %vm1502_vm6, %v1776_v34, %v8622_v25  ;;  %v1838_v0 = vmax.f32 %v11703_v49, %v1782_v28  ;;  %v11707_v32 = vld [vmem:[#allocation29_spill] sm:$0xff]  ;;  %v1261_v53 = vpop.f32.mrf.mxu1  ;;  %v11708_v49 = vmax.f32 %v11619_v43, %v8145_v33 }
 0x2df   :  { %11701 = vst [vmem:[#allocation38_spill] sm:$0xff] %v8647_v10  ;;  %v1917_v26 = vmax.f32 %v1889_v55, 0.0  ;;  %v1863_v30 = vmax.f32 %v11704_v24, %v1807_v15  ;;  %v8660_v52 = vpop.permute.xlu1 %1458  ;;  %6486 = vrot.lane.b32.xlu1 %v6485_v4, %s7047_s2  ;;  %1494 = vrot.lane.b32.xlu0 %v1315_v31, %s7046_s26  ;;  %v8665_v61 = vsel %vm65_vm0, %v2075_v9, %v2079_v56  ;;  %v6891_v31 = vld [vmem:[%s11279_s3 + $0x270] ss:$12 sps:$4 sm:$0xff]   ;;  %v6893_v9 = vld [vmem:[%s11279_s3 + $0x274] ss:$12 sps:$4 sm:$0xff]  }
 0x2e0   :  { %11705 = vst [vmem:[#allocation7_spill] sm:$0xff] %v8665_v61  ;;  %v1319_v34 = vmax.f32 %v11707_v32, %v11706_v20  ;;  %v1868_v28 = vadd.f32 %v1840_v12, %v8652_v16  ;;  %v1788_v4 = vsel %vm1502_vm6, %v8402_v46, %v8417_v59  ;;  %v6896_v12 = vld [vmem:[%s11279_s3 + $0x25c] ss:$12 sps:$4 sm:$0xff]   ;;  %v1866_v35 = vadd.f32 %v1838_v0, %v8652_v16  ;;  %v11711_v32 = vld [vmem:[#allocation95_spill] sm:$0xff]  ;;  %v11746_v10 = vld [vmem:[#allocation109_spill] sm:$0xff] }
 0x2e1   :  { %v2083_v55 = vrot.slane %v1917_v26, 1  ;;  %v1891_v23 = vadd.f32 %v1863_v30, %v7922_v3  ;;  %v8671_v14 = vpop.permute.xlu0 %1464  ;;  %v11710_v30 = vld [vmem:[#allocation83_spill] sm:$0xff]  ;;  %v1786_v46 = vsel %vm1502_vm6, %v8378_v54, %v8388_v51  ;;  %3670 = vmatprep.subr.bf16.mxu1 %v6893_v9  ;;  %v1792_v54 = vsel %vm1502_vm6, %v8437_v58, %v8456_v50  ;;  %v11713_v9 = vld [vmem:[#allocation93_spill] sm:$0xff]  ;;  %v11761_v61 = vld [vmem:[#allocation6_spill] sm:$0xff] }
 0x2e2   :  { %v1375_v59 = vmax.f32 %v11710_v30, %v1261_v53  ;;  %v8700_v20 = vmax.f32 %v1868_v28, 0.0  ;;  %3671 = vmatpush2.bf16.msra.mxu1 %v6891_v31  ;;  %v6894_v53 = vld [vmem:[%s11279_s3 + $0x258] ss:$12 sps:$4 sm:$0xff]   ;;  %v8716_v28 = vmax.f32 %v1866_v35, 0.0  ;;  %v1790_v58 = vsel %vm1502_vm6, %v8420_v22, %v8449_v38  ;;  %v11717_v35 = vld [vmem:[#allocation105_spill] sm:$0xff] }
 0x2e3   :  { %v1919_v15 = vmax.f32 %v1891_v23, 0.0  ;;  %v1473_v5 = vpop.permute.xlu1 %1472  ;;  %1500 = vrot.lane.b32.xlu1 %v1319_v34, %s7046_s26  ;;  %1773 = vrot.lane.b32.xlu0 %v11708_v49, %s7046_s26  ;;  %v8692_v24 = vsel %vm65_vm0, %v2079_v56, %v2083_v55  ;;  %v1844_v34 = vmax.f32 %v11711_v32, %v1788_v4  ;;  %v6899_v51 = vld [vmem:[%s11279_s3 + $0x244] ss:$12 sps:$4 sm:$0xff]   ;;  %v1842_v4 = vmax.f32 %v11713_v9, %v1786_v46 }
 0x2e4   :  { %11709 = vst [vmem:[#allocation44_spill] sm:$0xff] %v8692_v24  ;;  %3672 = vmatprep.subr.bf16.mxu1 %v6896_v12  ;;  %v11715_v50 = vrot.slane %v8380_v39, 1  ;;  %v11718_v38 = vld [vmem:[#allocation99_spill] sm:$0xff] }
 0x2e5   :  { %v2087_v23 = vrot.slane %v1919_v15, 1  ;;  %v8703_v33 = vpop.permute.xlu0 %1474  ;;  %v6490_v43 = vpack.i.bf16 %v1919_v15, %v1917_v26  ;;  %v8714_v56 = vpack.c.bf16 %v1919_v15, %v1917_v26  ;;  %v1872_v12 = vadd.f32 %v1844_v34, %v8652_v16  ;;  %v11719_v34 = vld [vmem:[#allocation103_spill] sm:$0xff] }
 0x2e6   :  { %v1848_v15 = vmax.f32 %v11717_v35, %v1792_v54  ;;  %3673 = vmatpush2.bf16.msra.mxu1 %v6894_v53  ;;  %v1870_v22 = vadd.f32 %v1842_v4, %v8652_v16  ;;  %v1846_v46 = vmax.f32 %v11718_v38, %v1790_v58  ;;  %v1521_v9 = vsel %vm1502_vm6, %v1473_v5, %v8703_v33  ;;  %v11724_v5 = vld [vmem:[#allocation112_spill] sm:$0xff] }
 0x2e7   :  { %11712 = vst [vmem:[#allocation12_spill] sm:$0xff] %v8714_v56  ;;  %v1479_v31 = vpop.permute.xlu1 %1478  ;;  %1779 = vrot.lane.b32.xlu1 %v1375_v59, %s7046_s26  ;;  %6491 = vrot.lane.b32.xlu0 %v6490_v43, %s7047_s2  ;;  %v8722_v49 = vsel %vm65_vm0, %v2083_v55, %v2087_v23  ;;  %v8730_v26 = vsel %vm65_vm0, %v2087_v23, %v11715_v50  ;;  %v6897_v55 = vld [vmem:[%s11279_s3 + $0x240] ss:$12 sps:$4 sm:$0xff]   ;;  %v11720_v23 = vld [vmem:[#allocation46_spill] sm:$0xff]  ;;  %v8752_v54 = vmax.f32 %v1872_v12, 0.0  ;;  %v11722_v50 = vld [vmem:[#allocation41_spill] sm:$0xff] }
 0x2e8   :  { %11714 = vst [vmem:[#allocation42_spill] sm:$0xff] %v8722_v49  ;;  %11716 = vst [vmem:[#allocation11_spill] sm:$0xff] %v8730_v26  ;;  %v6500_v59 = vpack.i.bf16 %v8700_v20, %v8716_v28  ;;  %3674 = vmatprep.subr.bf16.mxu1 %v6899_v51  ;;  %v11721_v43 = vld [vmem:[#allocation14_spill] sm:$0xff]  ;;  %v1876_v51 = vadd.f32 %v1848_v15, %v8652_v16  ;;  %v8761_v39 = vmax.f32 %v1870_v22, 0.0  ;;  %s7019_s26 = scalar_lea.vmem %s5573_s1, 256 }
 0x2e9   :  { %v8734_v30 = vpop.permute.xlu0 %1480  ;;  %v1304_v53 = vmax.f32 %v11721_v43, %v11720_v23  ;;  %v1874_v12 = vadd.f32 %v1846_v46, %v8652_v16  ;;  %p7020_p0 = scmp.ne.s32.totalorder %s5573_s1, %s7019_s26  ;;  %p7025_p2 = scmp.lt.s32.totalorder %s7019_s26, %s7019_s26 }
 0x2ea   :  { %v1523_v32 = vsel %vm1502_vm6, %v1479_v31, %v8734_v30  ;;  %3675 = vmatpush2.bf16.msra.mxu1 %v6897_v55  ;;  %v11723_v31 = vld [vmem:[#allocation10_spill] sm:$0xff]  ;;  %v8770_v23 = vmax.f32 %v1876_v51, 0.0 }
 0x2eb   :  { %6496 = vrot.lane.b32.xlu1 %v11719_v34, %s7047_s2  ;;  %6501 = vrot.lane.b32.xlu0 %v6500_v59, %s7047_s2  ;;  %v1738_v4 = vpop.permute.xlu1 %1737  ;;  %v1300_v35 = vmax.f32 %v11723_v31, %v11722_v50  ;;  %v1579_v38 = vmax.f32 %v1304_v53, %v1523_v32  ;;  %v11725_v32 = vld [vmem:[#allocation110_spill] sm:$0xff]  ;;  %v8778_v46 = vmax.f32 %v1874_v12, 0.0  ;;  %p7026_p3 = por %p7025_p2, %p7024_p1 }
 0x2ec   :  { %v1794_v55 = vsel %vm1502_vm6, %v8468_v29, %v1738_v4 }
 0x2ed   :  { %v1744_v58 = vpop.permute.xlu0 %1743  ;;  %v1577_v15 = vmax.f32 %v1300_v35, %v1521_v9  ;;  %v8776_v22 = vadd.f32 %v7922_v3, %v1579_v38  ;;  %v6530_v9 = vpack.i.bf16 %v8770_v23, %v8778_v46  ;;  %p7027_p4 = pnand %p7026_p3, %p7020_p0 }
 0x2ee   :  { %v1796_v59 = vsel %vm1502_vm6, %v8490_v11, %v1744_v58  ;;  %v6515_v11 = vpack.i.bf16 %v8752_v54, %v8761_v39 }
 0x2ef   :  { %6506 = vrot.lane.b32.xlu1 %v11719_v34, %s7048_s0  ;;  %6511 = vrot.lane.b32.xlu0 %v11724_v5, %s7047_s2  ;;  %v1852_v43 = vmax.f32 %v11725_v32, %v1796_v59  ;;  %v11726_v34 = vld [vmem:[#allocation108_spill] sm:$0xff]  ;;  %v8785_v29 = vadd.f32 %v7922_v3, %v1577_v15  ;;  %v11347_v4 = vmax.f32 %v8776_v22, 0.0  ;;  %v11728_v32 = vld [vmem:[#allocation86_spill] sm:$0xff] }
 0x2f0   :  { %v1850_v53 = vmax.f32 %v11726_v34, %v1794_v55  ;;  %v11727_v55 = vld [vmem:[#allocation91_spill] sm:$0xff]  ;;  %v11730_v34 = vld [vmem:[#allocation89_spill] sm:$0xff] }
 0x2f1   :  { %v1880_v51 = vadd.f32 %v1852_v43, %v8652_v16  ;;  %v11349_v50 = vmax.f32 %v8785_v29, 0.0  ;;  %v8800_v35 = vrot.slane %v11347_v4, 1  ;;  %v1504_v43 = vsel %vm1502_vm6, %v11728_v32, %v11727_v55  ;;  %v11735_v55 = vld [vmem:[#allocation100_spill] sm:$0xff]  ;;  %v11736_v32 = vld [vmem:[#allocation98_spill] sm:$0xff] }
 0x2f2   :  { %v1878_v58 = vadd.f32 %v1850_v53, %v8652_v16 }
 0x2f3   :  { %6516 = vrot.lane.b32.xlu1 %v6515_v11, %s7047_s2  ;;  %6521 = vrot.lane.b32.xlu0 %v11724_v5, %s7048_s0  ;;  %v8796_v31 = vmax.f32 %v1880_v51, 0.0  ;;  %v1983_v59 = vrot.slane %v11349_v50, 1  ;;  %v11729_v11 = vld [vmem:[#allocation92_spill] sm:$0xff]  ;;  %v11731_v51 = vld [vmem:[#allocation30_spill] sm:$0xff] }
 0x2f4   :  { %v8802_v38 = vmax.f32 %v1878_v58, 0.0  ;;  %v1506_v53 = vsel %vm1502_vm6, %v11730_v34, %v11729_v11  ;;  %v11742_v50 = vld [vmem:[#allocation102_spill] sm:$0xff] }
 0x2f5   :  { %v1988_v5 = vsel %vm65_vm0, %v1983_v59, %v8800_v35 }
 0x2f6   :  { %v6545_v12 = vpack.i.bf16 %v8796_v31, %v8802_v38 }
 0x2f7   :  { %6526 = vrot.lane.b32.xlu1 %v8183_v21, %s7047_s2  ;;  %6531 = vrot.lane.b32.xlu0 %v6530_v9, %s7047_s2  ;;  %v11732_v9 = vld [vmem:[#allocation31_spill] sm:$0xff] }
 0x2f8   :  { %v1562_v58 = vmax.f32 %v11732_v9, %v1506_v53  ;;  %v11737_v9 = vld [vmem:[#allocation32_spill] sm:$0xff] }
 0x2fb   :  { %6536 = vrot.lane.b32.xlu1 %v8183_v21, %s7048_s0  ;;  %6541 = vrot.lane.b32.xlu0 %v8203_v47, %s7047_s2  ;;  %v1984_v21 = vsel %vm65_vm0, %v8195_v8, %v1983_v59  ;;  %v6902_v8 = vld [vmem:[%s11279_s3 + $0x394] ss:$12 sps:$4 sm:$0xff]  }
 0x2fc   :  { %v6555_v15 = vpack.i.bf16 %v1988_v5, %v1984_v21  ;;  %3819 = vmatprep.subr.bf16.mxu0 %v6902_v8  ;;  %v11733_v5 = vld [vmem:[#allocation96_spill] sm:$0xff]  ;;  %v11734_v21 = vld [vmem:[#allocation94_spill] sm:$0xff]  ;;  %v11738_v8 = vld [vmem:[#allocation33_spill] sm:$0xff] }
 0x2ff   :  { %6551 = vrot.lane.b32.xlu0 %v8203_v47, %s7048_s0  ;;  %6546 = vrot.lane.b32.xlu1 %v6545_v12, %s7047_s2  ;;  %v1560_v47 = vmax.f32 %v11731_v51, %v1504_v43  ;;  %v8836_v12 = vadd.f32 %v8652_v16, %v1562_v58  ;;  %v1510_v43 = vsel %vm1502_vm6, %v11736_v32, %v11735_v55  ;;  %v6905_v32 = vld [vmem:[%s11279_s3 + $0x37c] ss:$12 sps:$4 sm:$0xff]  }
 0x300   :  { %v1566_v0 = vmax.f32 %v11738_v8, %v1510_v43  ;;  %v1477_v43 = vpop.permute.xlu1 %1476 }
 0x301   :  { %v8833_v59 = vadd.f32 %v8652_v16, %v1560_v47  ;;  %v11348_v53 = vmax.f32 %v8836_v12, 0.0 }
 0x302   :  { %v8875_v40 = vadd.f32 %v8652_v16, %v1566_v0 }
 0x303   :  { %6556 = vrot.lane.b32.xlu1 %v6555_v15, %s7047_s2  ;;  %v11346_v34 = vmax.f32 %v8833_v59, 0.0 }
 0x307   :  { %6566 = vrot.lane.b32.xlu1 %v6555_v15, %s7048_s0  ;;  %v1508_v15 = vsel %vm1502_vm6, %v11734_v21, %v11733_v5 }
 0x308   :  { %v1564_v58 = vmax.f32 %v11737_v9, %v1508_v15  ;;  %v6900_v15 = vld [vmem:[%s11279_s3 + $0x390] ss:$12 sps:$4 sm:$0xff]  }
 0x30a   :  { %v8872_v8 = vadd.f32 %v8652_v16, %v1564_v58 }
 0x321   :  { %v8844_v11 = vpop.permute.xlu0 %6461 }
 0x322   :  { %v11344_v51 = vunpack.i.h.bf16 %v8844_v11  ;;  %v11345_v47 = vunpack.i.l.bf16 %v8844_v11 }
 0x324   :  { %v2311_v5 = vsel %vm2153_vm7, %v11346_v34, %v11345_v47  ;;  %v2312_v21 = vsel %vm2153_vm7, %v11348_v53, %v11344_v51  ;;  %v11357_v47 = vmax.f32 %v8872_v8, 0.0  ;;  %v11361_v34 = vmax.f32 %v8875_v40, 0.0  ;;  %v11741_v53 = vld [vmem:[#allocation106_spill] sm:$0xff] }
 0x325   :  { %v8862_v55 = vpack.c.bf16 %v2312_v21, %v2311_v5  ;;  %v1471_v9 = vpop.permute.xlu0 %1470  ;;  %v11740_v5 = vld [vmem:[#allocation97_spill] sm:$0xff]  ;;  %v6903_v21 = vld [vmem:[%s11279_s3 + $0x378] ss:$12 sps:$4 sm:$0xff]  }
 0x327   :  { %11739 = vst [vmem:[#allocation48_spill] sm:$0xff] %v8862_v55  ;;  %3503 = vmatprep.mubr.bf16.mxu0 %v8862_v55  ;;  %v11744_v55 = vld [vmem:[#allocation18_spill] sm:$0xff] }
 0x328   :  { %3504 = vmatmul.mubr.bf16.vlgmr.msra.gmra.mxu0 %v11740_v5  ;;  %v11743_v5 = vld [vmem:[#allocation51_spill] sm:$0xff] }
 0x329   :  { %3820 = vmatpush1.bf16.msra.mxu0 %v6900_v15  ;;  %v1485_v0 = vpop.permute.xlu0 %1484  ;;  %v1512_v15 = vsel %vm1502_vm6, %v11742_v50, %v11741_v53  ;;  %v1308_v56 = vmax.f32 %v11744_v55, %v11743_v5  ;;  %v11751_v55 = vld [vmem:[#allocation56_spill] sm:$0xff]  ;;  %v11752_v5 = vld [vmem:[#allocation22_spill] sm:$0xff] }
 0x32a   :  { %3821 = vmatprep.subr.bf16.mxu0 %v6905_v32  ;;  %v1312_v13 = vmax.f32 %v11752_v5, %v11751_v55  ;;  %v11755_v55 = vld [vmem:[#allocation72_spill] sm:$0xff] }
 0x32b   :  { %v8881_v51 = vpop.permute.xlu1 %6466  ;;  %v1518_v5 = vsel %vm1502_vm6, %v11755_v55, %v8671_v14 }
 0x32c   :  { %v11360_v58 = vunpack.i.h.bf16 %v8881_v51  ;;  %v11356_v4 = vunpack.i.l.bf16 %v8881_v51 }
 0x32d   :  { %3822 = vmatpush1.bf16.msra.mxu0 %v6903_v21  ;;  %v11745_v21 = vld [vmem:[#allocation107_spill] sm:$0xff] }
 0x32e   :  { %v2313_v32 = vsel %vm2153_vm7, %v11357_v47, %v11356_v4  ;;  %v2314_v19 = vsel %vm2153_vm7, %v11361_v34, %v11360_v58  ;;  %v1514_v49 = vsel %vm1502_vm6, %v11746_v10, %v11745_v21  ;;  %v11748_v47 = vld [vmem:[#allocation35_spill] sm:$0xff]  ;;  %v11749_v58 = vld [vmem:[#allocation37_spill] sm:$0xff]  ;;  %v1491_v10 = vpop.permute.xlu0 %1490 }
 0x32f   :  { %v8905_v50 = vpop.permute.xlu1 %1486  ;;  %v8907_v53 = vpack.c.bf16 %v2314_v19, %v2313_v32  ;;  %v1568_v26 = vmax.f32 %v11748_v47, %v1512_v15  ;;  %v1570_v34 = vmax.f32 %v11749_v58, %v1514_v49 }
 0x330   :  { %v1525_v4 = vsel %vm1502_vm6, %v1485_v0, %v8905_v50  ;;  %v11753_v0 = vld [vmem:[#allocation111_spill] sm:$0xff] }
 0x331   :  { %11747 = vst [vmem:[#allocation16_spill] sm:$0xff] %v8907_v53  ;;  %v1581_v1 = vmax.f32 %v1308_v56, %v1525_v4  ;;  %3513 = vmatprep.mubr.bf16.mxu0 %v8907_v53  ;;  %v1516_v47 = vsel %vm1502_vm6, %v11753_v0, %v8660_v52  ;;  %v8928_v49 = vadd.f32 %v8652_v16, %v1568_v26 }
 0x332   :  { %3514 = vmatmul.mubr.bf16.gmra.mxu0 %v11750_v41  ;;  %v8932_v15 = vadd.f32 %v8652_v16, %v1570_v34 }
 0x333   :  { %v8918_v21 = vadd.f32 %v7922_v3, %v1581_v1  ;;  %v8920_v19 = vpop.permute.xlu1 %1492  ;;  %v11754_v1 = vld [vmem:[#allocation43_spill] sm:$0xff] }
 0x334   :  { %v1527_v56 = vsel %vm1502_vm6, %v1491_v10, %v8920_v19  ;;  %v1572_v32 = vmax.f32 %v11754_v1, %v1516_v47  ;;  %v11370_v10 = vmax.f32 %v8928_v49, 0.0  ;;  %v11369_v14 = vmax.f32 %v8932_v15, 0.0  ;;  %v11756_v1 = vld [vmem:[#allocation50_spill] sm:$0xff] }
 0x335   :  { %v11364_v4 = vmax.f32 %v8918_v21, 0.0  ;;  %v1583_v58 = vmax.f32 %v1312_v13, %v1527_v56 }
 0x337   :  { %v8939_v52 = vadd.f32 %v7922_v3, %v1583_v58  ;;  %v1756_v0 = vpop.permute.xlu1 %1755  ;;  %v1991_v13 = vrot.slane %v11364_v4, 1  ;;  %v1574_v58 = vmax.f32 %v11756_v1, %v1518_v5  ;;  %v11757_v1 = vld [vmem:[#allocation66_spill] sm:$0xff] }
 0x338   :  { %v1800_v26 = vsel %vm1502_vm6, %v8519_v57, %v1756_v0  ;;  %v8955_v57 = vadd.f32 %v8652_v16, %v1572_v32  ;;  %v1520_v4 = vsel %vm1502_vm6, %v11757_v1, %v1471_v9  ;;  %v11760_v1 = vld [vmem:[#allocation55_spill] sm:$0xff] }
 0x339   :  { %v11365_v34 = vmax.f32 %v8939_v52, 0.0  ;;  %v1856_v47 = vmax.f32 %v8149_v63, %v1800_v26  ;;  %v8948_v56 = vpop.permute.xlu0 %6471  ;;  %v1522_v63 = vsel %vm1502_vm6, %v8703_v33, %v1477_v43  ;;  %v1992_v33 = vsel %vm65_vm0, %v8800_v35, %v1991_v13 }
 0x33a   :  { %v11367_v55 = vunpack.i.h.bf16 %v8948_v56  ;;  %v11368_v41 = vunpack.i.l.bf16 %v8948_v56  ;;  %v1578_v35 = vmax.f32 %v8237_v6, %v1522_v63 }
 0x33b   :  { %v8959_v0 = vrot.slane %v11365_v34, 1  ;;  %v1884_v26 = vadd.f32 %v1856_v47, %v8652_v16  ;;  %v6906_v47 = vld [vmem:[%s11279_s3 + $0x360] ss:$12 sps:$4 sm:$0xff]  }
 0x33c   :  { %v2315_v5 = vsel %vm2153_vm7, %v11370_v10, %v11368_v41  ;;  %v2316_v32 = vsel %vm2153_vm7, %v11369_v14, %v11367_v55  ;;  %v6908_v55 = vld [vmem:[%s11279_s3 + $0x364] ss:$12 sps:$4 sm:$0xff]   ;;  %v8989_v41 = vadd.f32 %v8652_v16, %v1574_v58  ;;  %v1576_v14 = vmax.f32 %v11760_v1, %v1520_v4 }
 0x33d   :  { %v1750_v34 = vpop.permute.xlu0 %1749  ;;  %v8976_v53 = vpack.c.bf16 %v2316_v32, %v2315_v5  ;;  %v1996_v43 = vsel %vm65_vm0, %v1991_v13, %v8959_v0  ;;  %v11759_v32 = vld [vmem:[#allocation36_spill] sm:$0xff]  ;;  %3823 = vmatprep.subr.bf16.mxu0 %v6908_v55  ;;  %v8999_v10 = vmax.f32 %v1884_v26, 0.0  ;;  %v9010_v4 = vadd.f32 %v8652_v16, %v1578_v35  ;;  %v6909_v35 = vld [vmem:[%s11279_s3 + $0x170] ss:$12 sps:$4 sm:$0xff]  }
 0x33e   :  { %v1798_v9 = vsel %vm1502_vm6, %v8501_v36, %v1750_v34  ;;  %v8993_v5 = vpack.i.bf16 %v1996_v43, %v1992_v33  ;;  %3824 = vmatpush1.bf16.msra.mxu0 %v6906_v47  ;;  %v11376_v34 = vmax.f32 %v8955_v57, 0.0  ;;  %v11375_v6 = vmax.f32 %v8989_v41, 0.0  ;;  %5878 = vmatprep.subr.bf16.mxu1 %v6909_v35 }
 0x33f   :  { %11758 = vst [vmem:[#allocation47_spill] sm:$0xff] %v8976_v53  ;;  %v1854_v13 = vmax.f32 %v11759_v32, %v1798_v9  ;;  %3523 = vmatprep.mubr.bf16.mxu0 %v8976_v53  ;;  %v9015_v33 = vadd.f32 %v8652_v16, %v1576_v14  ;;  %v11379_v43 = vrot.slane %v8999_v10, 1  ;;  %v11772_v53 = vld [vmem:[#allocation67_spill] sm:$0xff] }
 0x340   :  { %3524 = vmatmul.mubr.bf16.gmra.mxu0 %v11761_v61 }
 0x341   :  { %v1882_v58 = vadd.f32 %v1854_v13, %v8652_v16  ;;  %v9003_v24 = vpop.permute.xlu1 %6476  ;;  %v1489_v36 = vpop.permute.xlu0 %1488 }
 0x342   :  { %v11374_v63 = vunpack.i.h.bf16 %v9003_v24  ;;  %v11373_v55 = vunpack.i.l.bf16 %v9003_v24  ;;  %v1526_v32 = vsel %vm1502_vm6, %v8905_v50, %v1489_v36 }
 0x343   :  { %v9012_v26 = vmax.f32 %v1882_v58, 0.0  ;;  %v1582_v36 = vmax.f32 %v8430_v44, %v1526_v32 }
 0x344   :  { %v2317_v47 = vsel %vm2153_vm7, %v11376_v34, %v11373_v55  ;;  %v2318_v9 = vsel %vm2153_vm7, %v11375_v6, %v11374_v63  ;;  %v11763_v6 = vld [vmem:[#allocation76_spill] sm:$0xff] }
 0x345   :  { %v11378_v14 = vrot.slane %v9012_v26, 1  ;;  %v1483_v13 = vpop.permute.xlu1 %1482  ;;  %v9034_v1 = vpop.permute.xlu0 %1498  ;;  %v6560_v58 = vpack.i.bf16 %v8999_v10, %v9012_v26  ;;  %v9038_v55 = vpack.c.bf16 %v2318_v9, %v2317_v47  ;;  %v11764_v47 = vld [vmem:[#allocation60_spill] sm:$0xff]  ;;  %v11765_v9 = vld [vmem:[#allocation26_spill] sm:$0xff] }
 0x346   :  { %v1524_v63 = vsel %vm1502_vm6, %v8734_v30, %v1483_v13  ;;  %v1316_v35 = vmax.f32 %v11765_v9, %v11764_v47  ;;  %v11383_v30 = vmax.f32 %v9010_v4, 0.0  ;;  %v11381_v13 = vmax.f32 %v9015_v33, 0.0 }
 0x347   :  { %11762 = vst [vmem:[#allocation15_spill] sm:$0xff] %v9038_v55  ;;  %6561 = vrot.lane.b32.xlu0 %v6560_v58, %s7047_s2  ;;  %3533 = vmatprep.mubr.bf16.mxu0 %v9038_v55  ;;  %v9049_v50 = vsel %vm65_vm0, %v11378_v14, %v11379_v43  ;;  %v11767_v55 = vld [vmem:[#allocation70_spill] sm:$0xff]  ;;  %v9067_v47 = vadd.f32 %v8652_v16, %v1582_v36  ;;  %v6911_v36 = vld [vmem:[%s11279_s3 + $0x348] ss:$12 sps:$4 sm:$0xff]  }
 0x348   :  { %3534 = vmatmul.mubr.bf16.gmra.mxu0 %v11763_v6  ;;  %v1580_v61 = vmax.f32 %v11767_v55, %v1524_v63 }
 0x349   :  { %v1497_v58 = vpop.permute.xlu1 %1496  ;;  %v9057_v34 = vpop.permute.xlu0 %6481 }
 0x34a   :  { %11766 = vst [vmem:[#allocation64_spill] sm:$0xff] %v9057_v34  ;;  %v1529_v14 = vsel %vm1502_vm6, %v1497_v58, %v9034_v1  ;;  %v11382_v43 = vunpack.i.h.bf16 %v9057_v34  ;;  %v11380_v44 = vunpack.i.l.bf16 %v9057_v34  ;;  %v9086_v6 = vadd.f32 %v8652_v16, %v1580_v61  ;;  %v11773_v34 = vld [vmem:[#allocation8_spill] sm:$0xff] }
 0x34b   :  { %v1585_v32 = vmax.f32 %v1316_v35, %v1529_v14  ;;  %6571 = vrot.lane.b32.xlu0 %v8993_v5, %s7047_s2 }
 0x34c   :  { %v2319_v63 = vsel %vm2153_vm7, %v11381_v13, %v11380_v44  ;;  %v2320_v55 = vsel %vm2153_vm7, %v11383_v30, %v11382_v43  ;;  %v11768_v43 = vld [vmem:[#allocation39_spill] sm:$0xff] }
 0x34d   :  { %v1625_v14 = vadd.f32 %v7922_v3, %v1585_v32  ;;  %v1762_v9 = vpop.permute.xlu1 %1761  ;;  %v1768_v35 = vpop.permute.xlu0 %1767  ;;  %v9080_v58 = vpack.c.bf16 %v2320_v55, %v2319_v63  ;;  %v11769_v30 = vmax.f32 %v11768_v43, 0.0  ;;  %v11770_v3 = vmax.f32 %v8785_v29, 0.0  ;;  %v6913_v63 = vld [vmem:[%s11279_s3 + $0x34c] ss:$12 sps:$4 sm:$0xff]  }
 0x34e   :  { %v1802_v44 = vsel %vm1502_vm6, %v8546_v2, %v1762_v9  ;;  %v1804_v13 = vsel %vm1502_vm6, %v8569_v45, %v1768_v35  ;;  %v11391_v2 = vmax.f32 %v9067_v47, 0.0  ;;  %3825 = vmatprep.subr.bf16.mxu0 %v6913_v63  ;;  %v11774_v29 = vmax.f32 %v8939_v52, 0.0 }
 0x34f   :  { %v9096_v32 = vpack.c.bf16 %v11770_v3, %v11769_v30  ;;  %v1653_v55 = vmax.f32 %v1625_v14, 0.0  ;;  %v1858_v61 = vmax.f32 %v11772_v53, %v1802_v44  ;;  %v1860_v37 = vmax.f32 %v11773_v34, %v1804_v13  ;;  %6581 = vrot.lane.b32.xlu0 %v8993_v5, %s7048_s0  ;;  %3543 = vmatprep.mubr.bf16.mxu0 %v9080_v58  ;;  %v11776_v3 = vld [vmem:[#allocation77_spill] sm:$0xff] }
 0x350   :  { %3826 = vmatpush1.bf16.msra.mxu0 %v6911_v36  ;;  %v11389_v5 = vmax.f32 %v9086_v6, 0.0  ;;  %v6914_v36 = vld [vmem:[%s11279_s3 + $0x330] ss:$12 sps:$4 sm:$0xff]  }
 0x351   :  { %11771 = vst [vmem:[#allocation65_spill] sm:$0xff] %v9096_v32  ;;  %3544 = vmatmul.mubr.bf16.gmra.mxu0 %v9096_v32  ;;  %v1999_v45 = vrot.slane %v1653_v55, 1  ;;  %v9110_v43 = vpack.c.bf16 %v1653_v55, %v11774_v29  ;;  %v1886_v30 = vadd.f32 %v1858_v61, %v8652_v16  ;;  %v1888_v53 = vadd.f32 %v1860_v37, %v8652_v16  ;;  %v9114_v34 = vpop.permute.xlu1 %6486  ;;  %v1495_v13 = vpop.permute.xlu0 %1494  ;;  %v6916_v55 = vld [vmem:[%s11279_s3 + $0x334] ss:$12 sps:$4 sm:$0xff]  }
 0x352   :  { %v11390_v44 = vunpack.i.h.bf16 %v9114_v34  ;;  %v11388_v14 = vunpack.i.l.bf16 %v9114_v34  ;;  %v1528_v9 = vsel %vm1502_vm6, %v8920_v19, %v1495_v13  ;;  %v11777_v61 = vmax.f32 %v8836_v12, 0.0  ;;  %3827 = vmatprep.subr.bf16.mxu0 %v6916_v55 }
 0x353   :  { %11775 = vst [vmem:[#allocation45_spill] sm:$0xff] %v9110_v43  ;;  %v9121_v52 = vmax.f32 %v1886_v30, 0.0  ;;  %v9123_v35 = vmax.f32 %v1888_v53, 0.0  ;;  %v1584_v63 = vmax.f32 %v11776_v3, %v1528_v9  ;;  %v2000_v37 = vsel %vm65_vm0, %v8959_v0, %v1999_v45  ;;  %v11778_v30 = vld [vmem:[#allocation101_spill] sm:$0xff] }
 0x354   :  { %v1953_v19 = vrot.slane %v11777_v61, 1  ;;  %v2321_v29 = vsel %vm2153_vm7, %v11389_v5, %v11388_v14  ;;  %v2322_v0 = vsel %vm2153_vm7, %v11391_v2, %v11390_v44  ;;  %v2007_v53 = vsel %vm65_vm0, %v1999_v45, %v11778_v30  ;;  %3828 = vmatpush1.bf16.msra.mxu0 %v6914_v36 }
 0x355   :  { %v11779_v13 = vmax.f32 %v8872_v8, 0.0  ;;  %v9154_v3 = vadd.f32 %v8652_v16, %v1584_v63  ;;  %v1501_v61 = vpop.permute.xlu1 %1500  ;;  %v1774_v14 = vpop.permute.xlu0 %1773  ;;  %v6575_v5 = vpack.i.bf16 %v9123_v35, %v9121_v52  ;;  %v9162_v8 = vpack.c.bf16 %v2322_v0, %v2321_v29  ;;  %v11780_v63 = vld [vmem:[#allocation68_spill] sm:$0xff] }
 0x356   :  { %v1530_v44 = vsel %vm1502_vm6, %v9034_v1, %v1501_v61  ;;  %v1806_v45 = vsel %vm1502_vm6, %v8596_v27, %v1774_v14  ;;  %v6585_v30 = vpack.i.bf16 %v2007_v53, %v2000_v37  ;;  %v11781_v12 = vmax.f32 %v8776_v22, 0.0  ;;  %v6920_v61 = vld [vmem:[%s11279_s3 + $0x31c] ss:$12 sps:$4 sm:$0xff]  }
 0x357   :  { %v9150_v9 = vrot.slane %v11779_v13, 1  ;;  %v1586_v13 = vmax.f32 %v8578_v18, %v1530_v44  ;;  %v1862_v2 = vmax.f32 %v11780_v63, %v1806_v45  ;;  %6576 = vrot.lane.b32.xlu1 %v6575_v5, %s7047_s2  ;;  %v11782_v55 = vmax.f32 %v8918_v21, 0.0  ;;  %3553 = vmatprep.mubr.bf16.mxu0 %v9162_v8 }
 0x358   :  { %v11783_v27 = vrot.slane %v9121_v52, 1  ;;  %v11784_v1 = vrot.slane %v8999_v10, 1  ;;  %v11785_v18 = vmax.f32 %v8833_v59, 0.0  ;;  %v11394_v29 = vmax.f32 %v9154_v3, 0.0  ;;  %3829 = vmatprep.subr.bf16.mxu0 %v6920_v61 }
 0x359   :  { %v9171_v32 = vpack.c.bf16 %v11782_v55, %v11781_v12  ;;  %v9186_v5 = vadd.f32 %v8652_v16, %v1586_v13  ;;  %v1780_v22 = vpop.permute.xlu1 %1779  ;;  %v9189_v21 = vpop.permute.xlu0 %6491  ;;  %v1958_v37 = vsel %vm65_vm0, %v1953_v19, %v9150_v9  ;;  %v6918_v12 = vld [vmem:[%s11279_s3 + $0x318] ss:$12 sps:$4 sm:$0xff]   ;;  %v11786_v45 = vmax.f32 %v8928_v49, 0.0 }
 0x35a   :  { %v9179_v14 = vsel %vm65_vm0, %v11784_v1, %v11783_v27  ;;  %v9183_v44 = vrot.slane %v11785_v18, 1  ;;  %v1808_v59 = vsel %vm1502_vm6, %v8622_v25, %v1780_v22  ;;  %v11395_v0 = vunpack.i.h.bf16 %v9189_v21  ;;  %v11787_v55 = vld [vmem:[#allocation79_spill] sm:$0xff]  ;;  %3830 = vmatpush1.bf16.msra.mxu0 %v6918_v12 }
 0x35b   :  { %3554 = vmatmul.mubr.bf16.gmra.mxu0 %v9171_v32  ;;  %v11393_v53 = vunpack.i.l.bf16 %v9189_v21  ;;  %v9208_v13 = vrot.slane %v11786_v45, 1  ;;  %v11396_v63 = vmax.f32 %v9186_v5, 0.0  ;;  %v1890_v25 = vadd.f32 %v1862_v2, %v8652_v16  ;;  %6586 = vrot.lane.b32.xlu1 %v6585_v30, %s7047_s2 }
 0x35c   :  { %v1864_v27 = vmax.f32 %v11787_v55, %v1808_v59  ;;  %v1954_v18 = vsel %vm65_vm0, %v9183_v44, %v1953_v19  ;;  %v11788_v49 = vmax.f32 %v8875_v40, 0.0 }
 0x35d   :  { %v2323_v1 = vsel %vm2153_vm7, %v11394_v29, %v11393_v53  ;;  %v9224_v2 = vpop.permute.xlu1 %6496  ;;  %v6502_v59 = vpop.permute.xlu0 %6501  ;;  %v2324_v55 = vsel %vm2153_vm7, %v11396_v63, %v11395_v0  ;;  %v6605_v36 = vpack.i.bf16 %v1958_v37, %v1954_v18  ;;  %v11790_v18 = vunpack.i.l.bf16 %v8844_v11 }
 0x35e   :  { %v1961_v22 = vrot.slane %v11788_v49, 1  ;;  %v1892_v45 = vadd.f32 %v1864_v27, %v8652_v16  ;;  %v11398_v53 = vunpack.i.h.bf16 %v9224_v2  ;;  %v11397_v19 = vunpack.i.l.bf16 %v9224_v2  ;;  %v6922_v16 = vld [vmem:[%s11279_s3 + $0x300] ss:$12 sps:$4 sm:$0xff]   ;;  %v6924_v27 = vld [vmem:[%s11279_s3 + $0x304] ss:$12 sps:$4 sm:$0xff]  }
 0x35f   :  { %v6504_v61 = vunpack.i.h.bf16 %v6502_v59  ;;  %v6503_v40 = vunpack.i.l.bf16 %v6502_v59  ;;  %v9239_v49 = vmax.f32 %v1890_v25, 0.0  ;;  %6591 = vrot.lane.b32.xlu1 %v6585_v30, %s7048_s0  ;;  %v9244_v37 = vpack.c.bf16 %v2324_v55, %v2323_v1  ;;  %3831 = vmatprep.subr.bf16.mxu0 %v6924_v27 }
 0x360   :  { %v9241_v29 = vmax.f32 %v1892_v45, 0.0  ;;  %v1966_v12 = vsel %vm65_vm0, %v1961_v22, %v9208_v13  ;;  %v11791_v0 = vunpack.i.h.bf16 %v8844_v11  ;;  %v2551_v25 = vsel %vm2153_vm7, %v8716_v28, %v11397_v19  ;;  %3832 = vmatpush1.bf16.msra.mxu0 %v6922_v16 }
 0x361   :  { %11789 = vst [vmem:[#allocation13_spill] sm:$0xff] %v9244_v37  ;;  %v2154_v59 = vsel %vm2153_vm7, %v11790_v18, %v6503_v40  ;;  %v2552_v30 = vsel %vm2153_vm7, %v8700_v20, %v11398_v53  ;;  %3563 = vmatprep.mubr.bf16.mxu0 %v9244_v37  ;;  %v9265_v45 = vpop.permute.xlu1 %6506  ;;  %v9267_v11 = vpop.permute.xlu0 %6511  ;;  %v11794_v53 = vmax.f32 %v8955_v57, 0.0  ;;  %v6910_v57 = vld [vmem:[%s11279_s3 + $0xb0] ss:$12 sps:$4 sm:$0xff]  }
 0x362   :  { %v2155_v63 = vsel %vm2153_vm7, %v11791_v0, %v6504_v61  ;;  %v9269_v0 = vpack.c.bf16 %v2552_v30, %v2551_v25  ;;  %v6595_v55 = vpack.i.bf16 %v9241_v29, %v9239_v49  ;;  %v11402_v18 = vunpack.i.h.bf16 %v9265_v45 }
 0x363   :  { %v9262_v1 = vpack.c.bf16 %v2155_v63, %v2154_v59  ;;  %v11401_v19 = vunpack.i.l.bf16 %v9265_v45  ;;  %3564 = vmatmul.mubr.bf16.gmra.mxu0 %v9110_v43  ;;  %6606 = vrot.lane.b32.xlu1 %v6605_v36, %s7047_s2  ;;  %v1962_v59 = vsel %vm65_vm0, %v9150_v9, %v1961_v22  ;;  %v1973_v63 = vrot.slane %v11794_v53, 1 }
 0x364   :  { %11793 = vst [vmem:[#allocation40_spill] sm:$0xff] %v9269_v0  ;;  %3573 = vmatprep.mubr.bf16.mxu0 %v9269_v0  ;;  %6596 = vrot.lane.b32.xlu0 %v6595_v55, %s7047_s2  ;;  %v6615_v16 = vpack.i.bf16 %v1966_v12, %v1962_v59  ;;  %v2326_v30 = vsel %vm2268_vm8, %v6504_v61, %v11402_v18  ;;  %v11796_v9 = vunpack.i.l.bf16 %v9267_v11  ;;  %v11797_v12 = vunpack.i.h.bf16 %v9267_v11 }
 0x365   :  { %11792 = vst [vmem:[#allocation87_spill] sm:$0xff] %v9262_v1  ;;  %v2325_v25 = vsel %vm2268_vm8, %v6503_v40, %v11401_v19  ;;  %v6517_v27 = vpop.permute.xlu1 %6516  ;;  %v9291_v43 = vpop.permute.xlu0 %6521 }
 0x366   :  { %v9293_v0 = vpack.c.bf16 %v2326_v30, %v2325_v25  ;;  %v2553_v22 = vsel %vm2153_vm7, %v8761_v39, %v11796_v9  ;;  %v2554_v40 = vsel %vm2153_vm7, %v8752_v54, %v11797_v12  ;;  %v6519_v53 = vunpack.i.h.bf16 %v6517_v27  ;;  %v6917_v25 = vld [vmem:[%s11279_s3 + $0x158] ss:$12 sps:$4 sm:$0xff]  }
 0x367   :  { %v6518_v61 = vunpack.i.l.bf16 %v6517_v27  ;;  %v11405_v59 = vunpack.i.l.bf16 %v9291_v43  ;;  %6616 = vrot.lane.b32.xlu1 %v6615_v16, %s7048_s0  ;;  %v11798_v30 = vmax.f32 %v8932_v15, 0.0  ;;  %v11799_v12 = vunpack.i.h.bf16 %v8881_v51 }
 0x368   :  { %11795 = vst [vmem:[#allocation9_spill] sm:$0xff] %v9293_v0  ;;  %3676 = vmatprep.mubr.bf16.mxu1 %v9293_v0  ;;  %v11800_v27 = vunpack.i.l.bf16 %v8881_v51  ;;  %6601 = vrot.lane.b32.xlu0 %v6605_v36, %s7048_s0  ;;  %v11801_v0 = vmax.f32 %v9015_v33, 0.0  ;;  %v9334_v51 = vpack.c.bf16 %v2554_v40, %v2553_v22  ;;  %v6925_v22 = vld [vmem:[%s11279_s3 + $0x140] ss:$12 sps:$4 sm:$0xff]   ;;  %v11806_v40 = vmax.f32 %v8989_v41, 0.0  ;;  %v11810_v33 = vld [vmem:[#allocation73_spill] sm:$0xff] }
 0x369   :  { %v1969_v9 = vrot.slane %v11798_v30, 1  ;;  %v2157_v19 = vsel %vm2153_vm7, %v11799_v12, %v6519_v53  ;;  %3677 = vmatmul.mubr.bf16.vlgmr.msra.gmra.mxu1 %v9262_v1  ;;  %v2327_v55 = vsel %vm2268_vm8, %v6518_v61, %v11405_v59  ;;  %v9332_v37 = vpop.permute.xlu1 %6526  ;;  %v6532_v12 = vpop.permute.xlu0 %6531 }
 0x36a   :  { %v2156_v18 = vsel %vm2153_vm7, %v11800_v27, %v6518_v61  ;;  %v9328_v15 = vrot.slane %v11801_v0, 1  ;;  %11803 = vst [vmem:[#allocation20_spill] sm:$0xff] %v9334_v51  ;;  %v11804_v27 = vunpack.i.h.bf16 %v9291_v43  ;;  %5879 = vmatpush3.bf16.msra.mxu1 %v6910_v57  ;;  %v6921_v61 = vld [vmem:[%s11279_s3 + $0x98] ss:$12 sps:$4 sm:$0xff]   ;;  %v1977_v57 = vrot.slane %v11806_v40, 1 }
 0x36b   :  { %v9330_v30 = vpack.c.bf16 %v2157_v19, %v2156_v18  ;;  %v11805_v19 = vld [vmem:[#allocation80_spill] sm:$0xff]  ;;  %v1974_v18 = vsel %vm65_vm0, %v1969_v9, %v1973_v63  ;;  %5880 = vmatprep.subr.bf16.mxu1 %v6917_v25  ;;  %v11811_v0 = vld [vmem:[#allocation71_spill] sm:$0xff]  ;;  %v6534_v1 = vunpack.i.h.bf16 %v6532_v12  ;;  %v6533_v41 = vunpack.i.l.bf16 %v6532_v12 }
 0x36c   :  { %v2328_v36 = vsel %vm2268_vm8, %v6519_v53, %v11804_v27  ;;  %3574 = vmatmul.mubr.bf16.gmra.mxu0 %v11805_v19  ;;  %v11807_v53 = vld [vmem:[#allocation78_spill] sm:$0xff]  ;;  %v11812_v25 = vpack.i.bf16 %v11810_v33, %v11811_v0  ;;  %v1970_v19 = vsel %vm65_vm0, %v9208_v13, %v1969_v9  ;;  %v11813_v9 = vunpack.i.l.bf16 %v9332_v37 }
 0x36d   :  { %11802 = vst [vmem:[#allocation53_spill] sm:$0xff] %v9330_v30  ;;  %3583 = vmatprep.mubr.bf16.mxu0 %v9334_v51  ;;  %v11808_v27 = vpack.i.bf16 %v8477_v17, %v11807_v53  ;;  %v9356_v59 = vpack.c.bf16 %v2328_v36, %v2327_v55  ;;  %v9365_v40 = vpop.permute.xlu1 %6536  ;;  %v9367_v51 = vpop.permute.xlu0 %6541  ;;  %v6635_v17 = vpack.i.bf16 %v1974_v18, %v1970_v19  ;;  %v6926_v36 = vld [vmem:[%s11279_s3 + $0x80] ss:$12 sps:$4 sm:$0xff]   ;;  %v11814_v0 = vunpack.i.h.bf16 %v9332_v37 }
 0x36e   :  { %6611 = vrot.lane.b32.xlu0 %v11812_v25, %s7048_s0  ;;  %v1982_v55 = vsel %vm65_vm0, %v1977_v57, %v9328_v15  ;;  %5881 = vmatpush3.bf16.msra.mxu1 %v6921_v61  ;;  %v11410_v33 = vunpack.i.h.bf16 %v9365_v40  ;;  %v11408_v13 = vunpack.i.l.bf16 %v9365_v40  ;;  %v2555_v12 = vsel %vm2153_vm7, %v8778_v46, %v11813_v9 }
 0x36f   :  { %6626 = vrot.lane.b32.xlu1 %v11808_v27, %s7048_s0  ;;  %11809 = vst [vmem:[#allocation58_spill] sm:$0xff] %v9356_v59  ;;  %3686 = vmatprep.mubr.bf16.mxu1 %v9356_v59  ;;  %v2556_v19 = vsel %vm2153_vm7, %v8770_v23, %v11814_v0  ;;  %v1978_v61 = vsel %vm65_vm0, %v1973_v63, %v1977_v57  ;;  %v11815_v18 = vmax.f32 %v9086_v6, 0.0  ;;  %v11818_v63 = vunpack.i.l.bf16 %v8948_v56 }
 0x370   :  { %5882 = vmatprep.subr.bf16.mxu1 %v6925_v22  ;;  %v6645_v27 = vpack.i.bf16 %v1982_v55, %v1978_v61  ;;  %v2329_v25 = vsel %vm2268_vm8, %v6533_v41, %v11408_v13  ;;  %v2330_v22 = vsel %vm2268_vm8, %v6534_v1, %v11410_v33  ;;  %v9400_v0 = vpack.c.bf16 %v2556_v19, %v2555_v12 }
 0x371   :  { %v1989_v53 = vrot.slane %v11815_v18, 1  ;;  %3687 = vmatmul.mubr.bf16.gmra.mxu1 %v9330_v30  ;;  %v6547_v57 = vpop.permute.xlu1 %6546  ;;  %v9398_v6 = vpop.permute.xlu0 %6551  ;;  %v11816_v30 = vld [vmem:[#allocation74_spill] sm:$0xff]  ;;  %v11817_v33 = vmax.f32 %v9010_v4, 0.0  ;;  %v2158_v59 = vsel %vm2153_vm7, %v11818_v63, %v6533_v41  ;;  %v11819_v12 = vunpack.i.h.bf16 %v8948_v56 }
 0x372   :  { %6621 = vrot.lane.b32.xlu0 %v6615_v16, %s7047_s2  ;;  %v9402_v16 = vpack.c.bf16 %v2330_v22, %v2329_v25  ;;  %5883 = vmatpush3.bf16.msra.mxu1 %v6926_v36  ;;  %v6549_v55 = vunpack.i.h.bf16 %v6547_v57  ;;  %v6548_v61 = vunpack.i.l.bf16 %v6547_v57  ;;  %v11412_v18 = vunpack.i.h.bf16 %v9398_v6  ;;  %v6927_v57 = vld [vmem:[%s11279_s3 + $0x128] ss:$12 sps:$4 sm:$0xff]  }
 0x373   :  { %6636 = vrot.lane.b32.xlu1 %v6635_v17, %s7047_s2  ;;  %v11413_v13 = vunpack.i.l.bf16 %v9398_v6  ;;  %v1985_v9 = vrot.slane %v11817_v33, 1  ;;  %v2159_v19 = vsel %vm2153_vm7, %v11819_v12, %v6534_v1  ;;  %v11820_v1 = vmax.f32 %v9154_v3, 0.0  ;;  %v6928_v3 = vld [vmem:[%s11279_s3 + $0x68] ss:$12 sps:$4 sm:$0xff]   ;;  %5884 = vmatprep.subr.bf16.mxu1 %v6927_v57 }
 0x374   :  { %3584 = vmatmul.mubr.bf16.gmra.mxu0 %v11816_v30  ;;  %3696 = vmatprep.mubr.bf16.mxu1 %v9402_v16  ;;  %v2332_v41 = vsel %vm2268_vm8, %v6549_v55, %v11412_v18  ;;  %v9428_v33 = vpack.c.bf16 %v2159_v19, %v2158_v59  ;;  %v11821_v25 = vunpack.i.l.bf16 %v9367_v51  ;;  %v11822_v22 = vunpack.i.h.bf16 %v9367_v51 }
 0x375   :  { %3593 = vmatprep.mubr.bf16.mxu0 %v9400_v0  ;;  %v2331_v4 = vsel %vm2268_vm8, %v6548_v61, %v11413_v13  ;;  %v1990_v56 = vsel %vm65_vm0, %v1985_v9, %v1989_v53  ;;  %v1997_v36 = vrot.slane %v11820_v1, 1  ;;  %v9444_v59 = vpop.permute.xlu1 %6556  ;;  %v11823_v12 = vpack.i.bf16 %v8574_v60, %v8551_v48 }
 0x376   :  { %6631 = vrot.lane.b32.xlu0 %v6635_v17, %s7048_s0  ;;  %v2557_v17 = vsel %vm2153_vm7, %v8802_v38, %v11821_v25  ;;  %v2558_v63 = vsel %vm2153_vm7, %v8796_v31, %v11822_v22  ;;  %v9450_v19 = vpack.c.bf16 %v2332_v41, %v2331_v4  ;;  %v11824_v1 = vmax.f32 %v9067_v47, 0.0  ;;  %5885 = vmatpush3.bf16.msra.mxu1 %v6928_v3  ;;  %v11830_v3 = vld [vmem:[#allocation44_spill] sm:$0xff] }
 0x377   :  { %6646 = vrot.lane.b32.xlu1 %v6645_v27, %s7048_s0  ;;  %v11825_v22 = vpack.i.bf16 %v8526_v62, %v8505_v7  ;;  %v1986_v18 = vsel %vm65_vm0, %v9328_v15, %v1985_v9  ;;  %v9462_v13 = vpack.c.bf16 %v2558_v63, %v2557_v17  ;;  %v11417_v60 = vunpack.i.h.bf16 %v9444_v59 }
 0x378   :  { %v1993_v25 = vrot.slane %v11824_v1, 1  ;;  %v6665_v48 = vpack.i.bf16 %v1990_v56, %v1986_v18  ;;  %v11416_v47 = vunpack.i.l.bf16 %v9444_v59  ;;  %v11826_v62 = vunpack.i.h.bf16 %v9003_v24 }
 0x379   :  { %3697 = vmatmul.mubr.bf16.gmra.mxu1 %v9428_v33  ;;  %v11827_v15 = vunpack.i.l.bf16 %v9003_v24  ;;  %v11828_v56 = vmax.f32 %v9186_v5, 0.0 }
 0x37a   :  { %6641 = vrot.lane.b32.xlu0 %v11825_v22, %s7048_s0  ;;  %3706 = vmatprep.mubr.bf16.mxu1 %v9450_v19  ;;  %v1998_v7 = vsel %vm65_vm0, %v1993_v25, %v1997_v36  ;;  %v2161_v4 = vsel %vm2153_vm7, %v11826_v62, %v6549_v55  ;;  %v1994_v18 = vsel %vm65_vm0, %v1989_v53, %v1993_v25  ;;  %v2045_v53 = vrot.slane %v8761_v39, 1  ;;  %v11833_v25 = vld [vmem:[#allocation5_spill] sm:$0xff]  ;;  %v11834_v22 = vld [vmem:[#allocation34_spill] sm:$0xff] }
 0x37b   :  { %6656 = vrot.lane.b32.xlu1 %v11823_v12, %s7048_s0  ;;  %v2160_v9 = vsel %vm2153_vm7, %v11827_v15, %v6548_v61  ;;  %v6675_v41 = vpack.i.bf16 %v1998_v7, %v1994_v18  ;;  %v2001_v17 = vrot.slane %v11828_v56, 1  ;;  %v2559_v24 = vsel %vm2153_vm7, %v9012_v26, %v11416_v47  ;;  %v11831_v12 = vld [vmem:[#allocation7_spill] sm:$0xff]  ;;  %v11836_v56 = vld [vmem:[#allocation82_spill] sm:$0xff] }
 0x37c   :  { %3594 = vmatmul.mubr.bf16.gmra.mxu0 %v8494_v42  ;;  %v9480_v63 = vpack.c.bf16 %v2161_v4, %v2160_v9  ;;  %v2560_v55 = vsel %vm2153_vm7, %v8999_v10, %v11417_v60  ;;  %v6929_v10 = vld [vmem:[%s11279_s3 + $0x110] ss:$12 sps:$4 sm:$0xff]   ;;  %v11832_v1 = vpack.i.bf16 %v11830_v3, %v11831_v12  ;;  %v2041_v39 = vrot.slane %v8700_v20, 1 }
 0x37d   :  { %3603 = vmatprep.mubr.bf16.mxu0 %v9462_v13  ;;  %v9493_v5 = vpack.c.bf16 %v2560_v55, %v2559_v24  ;;  %v2002_v61 = vsel %vm65_vm0, %v1997_v36, %v2001_v17  ;;  %v2008_v57 = vsel %vm65_vm0, %v2001_v17, %v9183_v44  ;;  %v11835_v36 = vpack.i.bf16 %v11833_v25, %v11834_v22  ;;  %v6931_v24 = vld [vmem:[%s11279_s3 + $0x2f0] ss:$12 sps:$4 sm:$0xff]   ;;  %v6933_v25 = vld [vmem:[%s11279_s3 + $0xf8] ss:$12 sps:$4 sm:$0xff]  }
 0x37e   :  { %6651 = vrot.lane.b32.xlu0 %v6645_v27, %s7047_s2  ;;  %v11829_v27 = vld [vmem:[#allocation81_spill] sm:$0xff]  ;;  %5886 = vmatprep.subr.bf16.mxu1 %v6929_v10  ;;  %v6695_v44 = vpack.i.bf16 %v2008_v57, %v2002_v61  ;;  %v2040_v7 = vrot.slane %v8716_v28, 1  ;;  %v2061_v62 = vrot.slane %v8802_v38, 1  ;;  %v2046_v4 = vsel %vm65_vm0, %v2041_v39, %v2045_v53  ;;  %v11837_v61 = vld [vmem:[#allocation11_spill] sm:$0xff]  ;;  %v11838_v57 = vld [vmem:[#allocation42_spill] sm:$0xff] }
 0x37f   :  { %6666 = vrot.lane.b32.xlu1 %v6665_v48, %s7047_s2  ;;  %v2057_v20 = vrot.slane %v8770_v23, 1  ;;  %v2053_v18 = vrot.slane %v8778_v46, 1  ;;  %v2049_v17 = vrot.slane %v8752_v54, 1  ;;  %v2085_v55 = vrot.slane %v9239_v49, 1  ;;  %5978 = vmatprep.subr.bf16.mxu0 %v6931_v24  ;;  %v6934_v22 = vld [vmem:[%s11279_s3 + $0x38] ss:$12 sps:$4 sm:$0xff]  }
 0x380   :  { %v2042_v15 = vsel %vm65_vm0, %v2040_v7, %v2041_v39  ;;  %v11839_v10 = vpack.i.bf16 %v11837_v61, %v11838_v57  ;;  %v2065_v54 = vrot.slane %v8796_v31, 1  ;;  %v11841_v31 = vrot.slane %v9012_v26, 1  ;;  %v6936_v26 = vld [vmem:[%s11279_s3 + $0x20] ss:$12 sps:$4 sm:$0xff]  }
 0x381   :  { %3707 = vmatmul.mubr.bf16.gmra.mxu1 %v9480_v63  ;;  %v6705_v9 = vpack.i.bf16 %v2046_v4, %v2042_v15  ;;  %v2062_v28 = vsel %vm65_vm0, %v2057_v20, %v2061_v62  ;;  %v2058_v38 = vsel %vm65_vm0, %v2053_v18, %v2057_v20  ;;  %v2054_v46 = vsel %vm65_vm0, %v2049_v17, %v2053_v18  ;;  %v6935_v20 = vld [vmem:[%s11279_s3 + $0xe0] ss:$12 sps:$4 sm:$0xff]   ;;  %v6937_v15 = vld [vmem:[%s11279_s3 + $0xc8] ss:$12 sps:$4 sm:$0xff]  }
 0x382   :  { %6661 = vrot.lane.b32.xlu0 %v6665_v48, %s7048_s0  ;;  %v6930_v48 = vld [vmem:[%s11279_s3 + $0x50] ss:$12 sps:$4 sm:$0xff]   ;;  %v6715_v23 = vpack.i.bf16 %v2062_v28, %v2058_v38  ;;  %v2050_v3 = vsel %vm65_vm0, %v2045_v53, %v2049_v17  ;;  %v2070_v53 = vsel %vm65_vm0, %v2065_v54, %v11841_v31  ;;  %v9580_v28 = vpop.permute.xlu1 %6566  ;;  %v9585_v17 = vld [vmem:[%s11279_s3 + $0x398] ss:$12 sps:$4 sm:$0xff]   ;;  %v11856_v60 = vunpack.i.l.bf16 %v9265_v45 }
 0x383   :  { %6676 = vrot.lane.b32.xlu1 %v6675_v41, %s7048_s0  ;;  %5887 = vmatpush3.bf16.msra.mxu1 %v6930_v48  ;;  %v6710_v12 = vpack.i.bf16 %v2054_v46, %v2050_v3  ;;  %v2066_v48 = vsel %vm65_vm0, %v2061_v62, %v2065_v54 }
 0x384   :  { %3604 = vmatmul.mubr.bf16.gmra.mxu0 %v11829_v27  ;;  %5888 = vmatprep.subr.bf16.mxu1 %v6933_v25  ;;  %v6720_v4 = vpack.i.bf16 %v2070_v53, %v2066_v48  ;;  %v11846_v48 = vld [vmem:[#allocation38_spill] sm:$0xff] }
 0x385   :  { %3613 = vmatprep.mubr.bf16.mxu0 %v9493_v5 }
 0x386   :  { %6671 = vrot.lane.b32.xlu0 %v11835_v36, %s7048_s0  ;;  %v11840_v36 = vpack.i.bf16 %v9179_v14, %v9049_v50  ;;  %v11842_v14 = vrot.slane %v9121_v52, 1 }
 0x387   :  { %6686 = vrot.lane.b32.xlu1 %v11832_v1, %s7048_s0  ;;  %5889 = vmatpush3.bf16.msra.mxu1 %v6934_v22 }
 0x388   :  { %5890 = vmatprep.subr.bf16.mxu1 %v6935_v20 }
 0x38a   :  { %6681 = vrot.lane.b32.xlu0 %v6675_v41, %s7047_s2  ;;  %v2089_v41 = vrot.slane %v9241_v29, 1 }
 0x38b   :  { %6696 = vrot.lane.b32.xlu1 %v6695_v44, %s7047_s2  ;;  %5891 = vmatpush3.bf16.msra.mxu1 %v6936_v26 }
 0x38c   :  { %3614 = vmatmul.mubr.bf16.gmra.mxu0 %v11836_v56  ;;  %v2090_v1 = vsel %vm65_vm0, %v2085_v55, %v2089_v41  ;;  %v2096_v39 = vsel %vm65_vm0, %v2089_v41, %v2040_v7  ;;  %5892 = vmatprep.subr.bf16.mxu1 %v6937_v15  ;;  %v11428_v41 = vunpack.i.l.bf16 %v9580_v28 }
 0x38d   :  { %v6735_v7 = vpack.i.bf16 %v2096_v39, %v2090_v1 }
 0x38e   :  { %6691 = vrot.lane.b32.xlu0 %v6695_v44, %s7048_s0  ;;  %v2081_v44 = vrot.slane %v9123_v35, 1 }
 0x38f   :  { %6706 = vrot.lane.b32.xlu1 %v6705_v9, %s7048_s0  ;;  %v6938_v9 = vld [vmem:[%s11279_s3 + $0x8] ss:$12 sps:$4 sm:$0xff]  }
 0x390   :  { %v2086_v50 = vsel %vm65_vm0, %v2081_v44, %v2085_v55  ;;  %v2082_v62 = vsel %vm65_vm0, %v11842_v14, %v2081_v44  ;;  %5893 = vmatpush3.bf16.msra.mxu1 %v6938_v9  ;;  %v11843_v55 = vld [vmem:[#allocation64_spill] sm:$0xff]  ;;  %v11847_v14 = vunpack.i.h.bf16 %v9114_v34 }
 0x391   :  { %v6730_v18 = vpack.i.bf16 %v2086_v50, %v2082_v62  ;;  %6173 = vmatprep.subr.bf16.mxu1 %v9585_v17  ;;  %v11844_v61 = vunpack.i.l.bf16 %v11843_v55 }
 0x392   :  { %6701 = vrot.lane.b32.xlu0 %v11839_v10, %s7048_s0  ;;  %v11845_v10 = vunpack.i.h.bf16 %v11843_v55 }
 0x393   :  { %6716 = vrot.lane.b32.xlu1 %v6715_v23, %s7048_s0  ;;  %v11429_v23 = vunpack.i.h.bf16 %v9580_v28 }
 0x396   :  { %6711 = vrot.lane.b32.xlu0 %v6710_v12, %s7048_s0 }
 0x397   :  { %6726 = vrot.lane.b32.xlu1 %v11840_v36, %s7048_s0 }
 0x39a   :  { %6721 = vrot.lane.b32.xlu0 %v6720_v4, %s7048_s0 }
 0x39b   :  { %6736 = vrot.lane.b32.xlu1 %v6735_v7, %s7048_s0 }
 0x39e   :  { %6731 = vrot.lane.b32.xlu0 %v6730_v18, %s7048_s0 }
 0x3b9   :  { %v6562_v38 = vpop.permute.xlu0 %6561 }
 0x3ba   :  { %v6564_v24 = vunpack.i.h.bf16 %v6562_v38  ;;  %v6563_v46 = vunpack.i.l.bf16 %v6562_v38 }
 0x3bc   :  { %v2162_v57 = vsel %vm2153_vm7, %v11844_v61, %v6563_v46  ;;  %v2163_v54 = vsel %vm2153_vm7, %v11845_v10, %v6564_v24  ;;  %v2333_v3 = vsel %vm2268_vm8, %v6563_v46, %v11428_v41  ;;  %v2334_v12 = vsel %vm2268_vm8, %v6564_v24, %v11429_v23 }
 0x3bd   :  { %v9602_v1 = vpack.c.bf16 %v2163_v54, %v2162_v57  ;;  %v9604_v39 = vpop.permute.xlu0 %6571  ;;  %v9606_v25 = vpack.c.bf16 %v2334_v12, %v2333_v3  ;;  %v11850_v3 = vld [vmem:[#allocation12_spill] sm:$0xff] }
 0x3be   :  { %v11423_v22 = vunpack.i.h.bf16 %v9604_v39  ;;  %v11420_v36 = vunpack.i.l.bf16 %v9604_v39 }
 0x3bf   :  { %3716 = vmatprep.mubr.bf16.mxu1 %v9606_v25 }
 0x3c0   :  { %3717 = vmatmul.mubr.bf16.gmra.mxu1 %v9602_v1  ;;  %v2561_v31 = vsel %vm2153_vm7, %v9121_v52, %v11420_v36  ;;  %v2562_v53 = vsel %vm2153_vm7, %v9123_v35, %v11423_v22  ;;  %v11848_v35 = vunpack.i.l.bf16 %v9114_v34 }
 0x3c1   :  { %v9620_v44 = vpack.c.bf16 %v2562_v53, %v2561_v31  ;;  %v9624_v7 = vpop.permute.xlu0 %6581  ;;  %v11851_v31 = vmov 0  }
 0x3c2   :  { %v11414_v20 = vunpack.i.h.bf16 %v9624_v7  ;;  %v11415_v26 = vunpack.i.l.bf16 %v9624_v7 }
 0x3c3   :  { %3623 = vmatprep.mubr.bf16.mxu0 %v9620_v44 }
 0x3c4   :  { %3624 = vmatmul.mubr.bf16.gmra.mxu0 %v11846_v48 }
 0x3c9   :  { %v6577_v4 = vpop.permute.xlu1 %6576 }
 0x3ca   :  { %v6579_v50 = vunpack.i.h.bf16 %v6577_v4  ;;  %v6578_v52 = vunpack.i.l.bf16 %v6577_v4 }
 0x3cc   :  { %v2165_v62 = vsel %vm2153_vm7, %v11847_v14, %v6579_v50  ;;  %v2164_v15 = vsel %vm2153_vm7, %v11848_v35, %v6578_v52  ;;  %v2335_v9 = vsel %vm2268_vm8, %v6578_v52, %v11415_v26  ;;  %v2336_v18 = vsel %vm2268_vm8, %v6579_v50, %v11414_v20 }
 0x3cd   :  { %v9640_v38 = vpack.c.bf16 %v2165_v62, %v2164_v15  ;;  %v9642_v24 = vpop.permute.xlu1 %6586  ;;  %v9644_v46 = vpack.c.bf16 %v2336_v18, %v2335_v9  ;;  %v11853_v62 = vunpack.i.l.bf16 %v9189_v21 }
 0x3ce   :  { %v11427_v55 = vunpack.i.h.bf16 %v9642_v24  ;;  %v11424_v34 = vunpack.i.l.bf16 %v9642_v24 }
 0x3cf   :  { %3726 = vmatprep.mubr.bf16.mxu1 %v9644_v46 }
 0x3d0   :  { %3727 = vmatmul.mubr.bf16.gmra.mxu1 %v9640_v38  ;;  %v2563_v61 = vsel %vm2153_vm7, %v9239_v49, %v11424_v34  ;;  %v2564_v57 = vsel %vm2153_vm7, %v9241_v29, %v11427_v55  ;;  %v11852_v29 = vunpack.i.h.bf16 %v9189_v21 }
 0x3d1   :  { %v9658_v10 = vpop.permute.xlu1 %6591  ;;  %v9660_v54 = vpack.c.bf16 %v2564_v57, %v2563_v61 }
 0x3d2   :  { %v11418_v4 = vunpack.i.l.bf16 %v9658_v10  ;;  %v11419_v52 = vunpack.i.h.bf16 %v9658_v10 }
 0x3d3   :  { %11849 = vst [vmem:[#allocation24_spill] sm:$0xff] %v9660_v54  ;;  %3633 = vmatprep.mubr.bf16.mxu0 %v9660_v54  ;;  %v11891_v54 = vunpack.i.l.bf16 %v9604_v39 }
 0x3d4   :  { %3634 = vmatmul.mubr.bf16.gmra.mxu0 %v11850_v3 }
 0x3d5   :  { %v6607_v12 = vpop.permute.xlu1 %6606  ;;  %3849 = vmatprep.mubr.bf16.mxu0 %v11851_v31 }
 0x3d6   :  { %v6597_v53 = vpop.permute.xlu0 %6596  ;;  %v6608_v21 = vunpack.i.l.bf16 %v6607_v12 }
 0x3d7   :  { %v6599_v49 = vunpack.i.h.bf16 %v6597_v53  ;;  %v6598_v50 = vunpack.i.l.bf16 %v6597_v53 }
 0x3d9   :  { %v2167_v14 = vsel %vm2153_vm7, %v11852_v29, %v6599_v49  ;;  %v2166_v35 = vsel %vm2153_vm7, %v11853_v62, %v6598_v50  ;;  %v6617_v15 = vpop.permute.xlu1 %6616  ;;  %v2337_v9 = vsel %vm2268_vm8, %v6598_v50, %v11418_v4  ;;  %v2338_v57 = vsel %vm2268_vm8, %v6599_v49, %v11419_v52  ;;  %v6932_v49 = vld [vmem:[%s11279_s3 + $0x230] ss:$12 sps:$4 sm:$0xff]  }
 0x3da   :  { %v9676_v18 = vpack.c.bf16 %v2167_v14, %v2166_v35  ;;  %v6602_v61 = vpop.permute.xlu0 %6601  ;;  %v9681_v26 = vpack.c.bf16 %v2338_v57, %v2337_v9  ;;  %v6609_v29 = vunpack.i.h.bf16 %v6607_v12  ;;  %v11855_v62 = vunpack.i.h.bf16 %v9265_v45  ;;  %v6939_v45 = vld [vmem:[%s11279_s3 + $0x2d8] ss:$12 sps:$4 sm:$0xff]  }
 0x3db   :  { %v6604_v53 = vunpack.i.h.bf16 %v6602_v61  ;;  %v6603_v20 = vunpack.i.l.bf16 %v6602_v61  ;;  %v6618_v35 = vunpack.i.l.bf16 %v6617_v15  ;;  %v11858_v57 = vunpack.i.h.bf16 %v9224_v2 }
 0x3dc   :  { %11854 = vst [vmem:[#allocation52_spill] sm:$0xff] %v9676_v18  ;;  %3736 = vmatprep.mubr.bf16.mxu1 %v9681_v26 }
 0x3dd   :  { %v2270_v47 = vsel %vm2268_vm8, %v11855_v62, %v6604_v53  ;;  %v2269_v50 = vsel %vm2268_vm8, %v11856_v60, %v6603_v20  ;;  %3737 = vmatmul.mubr.bf16.gmra.mxu1 %v9676_v18  ;;  %v6619_v60 = vunpack.i.h.bf16 %v6617_v15  ;;  %v2396_v53 = vsel %vm2153_vm7, %v11858_v57, %v6609_v29  ;;  %v6940_v57 = vld [vmem:[%s11279_s3 + $0x218] ss:$12 sps:$4 sm:$0xff]  }
 0x3de   :  { %v9695_v9 = vpack.c.bf16 %v2270_v47, %v2269_v50  ;;  %v11859_v47 = vunpack.i.l.bf16 %v9224_v2  ;;  %v11860_v2 = vunpack.i.l.bf16 %v9291_v43  ;;  %v11882_v18 = vunpack.i.l.bf16 %v9580_v28 }
 0x3e0   :  { %11857 = vst [vmem:[#allocation19_spill] sm:$0xff] %v9695_v9  ;;  %v9698_v12 = vpop.permute.xlu0 %6611  ;;  %5782 = vmatmul.mubr.msk.bf16.vlgmr.msra.gmra.mxu0 %vm139_vm2, %v9695_v9  ;;  %v2395_v62 = vsel %vm2153_vm7, %v11859_v47, %v6608_v21  ;;  %v2271_v47 = vsel %vm2268_vm8, %v11860_v2, %v6618_v35 }
 0x3e1   :  { %v9690_v14 = vpop.permute.xlu1 %6626  ;;  %v11421_v20 = vunpack.i.h.bf16 %v9698_v12  ;;  %v11422_v61 = vunpack.i.l.bf16 %v9698_v12  ;;  %3859 = vmatprep.mubr.bf16.mxu0 %v11851_v31  ;;  %5979 = vmatpush3.bf16.msra.mxu0 %v6932_v49  ;;  %v9737_v34 = vpack.c.bf16 %v2396_v53, %v2395_v62  ;;  %v6942_v53 = vld [vmem:[%s11279_s3 + $0x200] ss:$12 sps:$4 sm:$0xff]  }
 0x3e2   :  { %5980 = vmatprep.subr.bf16.mxu0 %v6939_v45  ;;  %v11426_v35 = vunpack.i.h.bf16 %v9690_v14 }
 0x3e3   :  { %v2565_v15 = vsel %vm2268_vm8, %v6608_v21, %v11422_v61  ;;  %v2566_v4 = vsel %vm2268_vm8, %v6609_v29, %v11421_v20  ;;  %v6941_v21 = vld [vmem:[%s11279_s3 + $0x2c0] ss:$12 sps:$4 sm:$0xff]   ;;  %v11862_v29 = vunpack.i.h.bf16 %v9291_v43  ;;  %v11425_v20 = vunpack.i.l.bf16 %v9690_v14  ;;  %11863 = vst [vmem:[#allocation23_spill] sm:$0xff] %v9737_v34 }
 0x3e4   :  { %v6622_v52 = vpop.permute.xlu0 %6621  ;;  %v9728_v36 = vpack.c.bf16 %v2566_v4, %v2565_v15 }
 0x3e5   :  { %v9713_v50 = vpop.permute.xlu1 %6636  ;;  %v2272_v49 = vsel %vm2268_vm8, %v11862_v29, %v6619_v60  ;;  %v6624_v61 = vunpack.i.h.bf16 %v6622_v52  ;;  %v6623_v22 = vunpack.i.l.bf16 %v6622_v52  ;;  %5981 = vmatpush3.bf16.msra.mxu0 %v6940_v57  ;;  %v6943_v57 = vld [vmem:[%s11279_s3 + $0x2a8] ss:$12 sps:$4 sm:$0xff]   ;;  %v11866_v29 = vunpack.i.h.bf16 %v9267_v11 }
 0x3e6   :  { %11861 = vst [vmem:[#allocation57_spill] sm:$0xff] %v9728_v36  ;;  %3746 = vmatprep.mubr.bf16.mxu1 %v9728_v36  ;;  %v9746_v43 = vpack.c.bf16 %v2272_v49, %v2271_v47  ;;  %5982 = vmatprep.subr.bf16.mxu0 %v6941_v21  ;;  %v11867_v49 = vunpack.i.l.bf16 %v9267_v11  ;;  %v6944_v11 = vld [vmem:[%s11279_s3 + $0x1e8] ss:$12 sps:$4 sm:$0xff]  }
 0x3e7   :  { %v2567_v45 = vsel %vm2268_vm8, %v6623_v22, %v11425_v20  ;;  %3747 = vmatmul.mubr.bf16.gmra.mxu1 %v9737_v34  ;;  %v2568_v52 = vsel %vm2268_vm8, %v6624_v61, %v11426_v35  ;;  %v2398_v21 = vsel %vm2153_vm7, %v11866_v29, %v6624_v61  ;;  %v11869_v29 = vunpack.i.l.bf16 %v9365_v40 }
 0x3e8   :  { %11864 = vst [vmem:[#allocation69_spill] sm:$0xff] %v9746_v43  ;;  %v6632_v60 = vpop.permute.xlu0 %6631  ;;  %v9755_v2 = vpack.c.bf16 %v2568_v52, %v2567_v45  ;;  %5783 = vmatmul.mubr.msk.bf16.gmra.mxu0 %vm139_vm2, %v9746_v43  ;;  %v9762_v47 = vpop.f32.mrf.mxu0  ;;  %v2397_v20 = vsel %vm2153_vm7, %v11867_v49, %v6623_v22  ;;  %v6638_v52 = vunpack.i.l.bf16 %v9713_v50  ;;  %v11868_v22 = vunpack.i.h.bf16 %v9365_v40 }
 0x3e9   :  { %v9741_v4 = vpop.permute.xlu1 %6646  ;;  %v6634_v62 = vunpack.i.h.bf16 %v6632_v60  ;;  %v6633_v15 = vunpack.i.l.bf16 %v6632_v60  ;;  %3869 = vmatprep.mubr.bf16.mxu0 %v11851_v31  ;;  %v6639_v60 = vunpack.i.h.bf16 %v9713_v50  ;;  %5983 = vmatpush3.bf16.msra.mxu0 %v6942_v53  ;;  %v6946_v53 = vld [vmem:[%s11279_s3 + $0x290] ss:$12 sps:$4 sm:$0xff]   ;;  %v9794_v23 = vpack.c.bf16 %v2398_v21, %v2397_v20 }
 0x3ea   :  { %11865 = vst [vmem:[#allocation54_spill] sm:$0xff] %v9755_v2  ;;  %3756 = vmatprep.mubr.bf16.mxu1 %v9755_v2  ;;  %v9778_v55 = vpop.f32.mrf.mxu0  ;;  %5984 = vmatprep.subr.bf16.mxu0 %v6943_v57  ;;  %v6947_v20 = vld [vmem:[%s11279_s3 + $0x1d0] ss:$12 sps:$4 sm:$0xff]   ;;  %v6649_v21 = vunpack.i.h.bf16 %v9741_v4 }
 0x3eb   :  { %v2274_v61 = vsel %vm2268_vm8, %v11868_v22, %v6634_v62  ;;  %v2273_v49 = vsel %vm2268_vm8, %v11869_v29, %v6633_v15  ;;  %11870 = vst [vmem:[#allocation21_spill] sm:$0xff] %v9794_v23  ;;  %v6648_v29 = vunpack.i.l.bf16 %v9741_v4  ;;  %v11874_v4 = vunpack.i.h.bf16 %v9332_v37 }
 0x3ec   :  { %v9776_v35 = vpop.permute.xlu0 %6641  ;;  %v9796_v43 = vpop.f32.mrf.mxu0  ;;  %v9806_v15 = vpack.c.bf16 %v2274_v61, %v2273_v49  ;;  %v6948_v61 = vld [vmem:[%s11279_s3 + $0x278] ss:$12 sps:$4 sm:$0xff]  }
 0x3ed   :  { %v9771_v45 = vpop.permute.xlu1 %6656  ;;  %v11434_v41 = vunpack.i.h.bf16 %v9776_v35  ;;  %v11432_v50 = vunpack.i.l.bf16 %v9776_v35  ;;  %5985 = vmatpush3.bf16.msra.mxu0 %v6944_v11 }
 0x3ee   :  { %11871 = vst [vmem:[#allocation49_spill] sm:$0xff] %v9806_v15  ;;  %5986 = vmatprep.subr.bf16.mxu0 %v6946_v53  ;;  %v9821_v11 = vpop.f32.mrf.mxu0  ;;  %v11875_v53 = vunpack.i.l.bf16 %v9332_v37  ;;  %v6949_v37 = vld [vmem:[%s11279_s3 + $0x1b8] ss:$12 sps:$4 sm:$0xff]  }
 0x3ef   :  { %v2569_v40 = vsel %vm2268_vm8, %v6638_v52, %v11432_v50  ;;  %v2570_v62 = vsel %vm2268_vm8, %v6639_v60, %v11434_v41  ;;  %3757 = vmatmul.mubr.bf16.gmra.mxu1 %v9794_v23  ;;  %11873 = vst [vmem:[#allocation61_spill] sm:$0xff] %v9821_v11  ;;  %v11876_v11 = vunpack.i.l.bf16 %v9771_v45  ;;  %v11877_v23 = vunpack.i.h.bf16 %v9771_v45 }
 0x3f0   :  { %v6652_v57 = vpop.permute.xlu0 %6651  ;;  %v9809_v22 = vpack.c.bf16 %v2570_v62, %v2569_v40  ;;  %5784 = vmatmul.mubr.msk.bf16.gmra.mxu0 %vm139_vm2, %v9806_v15  ;;  %v2400_v62 = vsel %vm2153_vm7, %v11874_v4, %v6639_v60  ;;  %v11878_v60 = vunpack.i.l.bf16 %v9398_v6  ;;  %v11879_v4 = vunpack.i.h.bf16 %v9398_v6 }
 0x3f1   :  { %v9798_v2 = vpop.permute.xlu1 %6666  ;;  %v6654_v50 = vunpack.i.h.bf16 %v6652_v57  ;;  %v6653_v34 = vunpack.i.l.bf16 %v6652_v57  ;;  %v2399_v57 = vsel %vm2153_vm7, %v11875_v53, %v6638_v52  ;;  %3879 = vmatprep.mubr.bf16.mxu0 %v11851_v31  ;;  %5987 = vmatpush3.bf16.msra.mxu0 %v6947_v20 }
 0x3f2   :  { %11872 = vst [vmem:[#allocation17_spill] sm:$0xff] %v9809_v22  ;;  %3766 = vmatprep.mubr.bf16.mxu1 %v9809_v22  ;;  %v9835_v40 = vpop.f32.mrf.mxu0  ;;  %v2275_v52 = vsel %vm2268_vm8, %v11878_v60, %v6648_v29  ;;  %v2276_v53 = vsel %vm2268_vm8, %v11879_v4, %v6649_v21  ;;  %5988 = vmatprep.subr.bf16.mxu0 %v6948_v61 }
 0x3f3   :  { %v2571_v22 = vsel %vm2268_vm8, %v6653_v34, %v11876_v11  ;;  %v2572_v15 = vsel %vm2268_vm8, %v6654_v50, %v11877_v23  ;;  %v6950_v23 = vld [vmem:[%s11279_s3 + $0x260] ss:$12 sps:$4 sm:$0xff]   ;;  %v9855_v20 = vpack.c.bf16 %v2400_v62, %v2399_v57  ;;  %v11881_v11 = vunpack.i.h.bf16 %v9580_v28 }
 0x3f4   :  { %v6662_v49 = vpop.permute.xlu0 %6661  ;;  %v9865_v21 = vpack.c.bf16 %v2572_v15, %v2571_v22  ;;  %v9871_v60 = vpop.f32.mrf.mxu0  ;;  %v6951_v28 = vld [vmem:[%s11279_s3 + $0x1a0] ss:$12 sps:$4 sm:$0xff]   ;;  %v6668_v15 = vunpack.i.l.bf16 %v9798_v2  ;;  %v11885_v22 = vunpack.i.h.bf16 %v9367_v51 }
 0x3f5   :  { %v9832_v41 = vpop.permute.xlu1 %6676  ;;  %v6664_v9 = vunpack.i.h.bf16 %v6662_v49  ;;  %v6663_v3 = vunpack.i.l.bf16 %v6662_v49  ;;  %11880 = vst [vmem:[#allocation27_spill] sm:$0xff] %v9855_v20  ;;  %v9867_v49 = vpack.c.bf16 %v2276_v53, %v2275_v52  ;;  %5989 = vmatpush3.bf16.msra.mxu0 %v6949_v37  ;;  %v11886_v37 = vunpack.i.l.bf16 %v9367_v51  ;;  %v6954_v51 = vld [vmem:[%s11279_s3 + $0x188] ss:$12 sps:$4 sm:$0xff]  }
 0x3f6   :  { %11883 = vst [vmem:[#allocation62_spill] sm:$0xff] %v9865_v21  ;;  %5990 = vmatprep.subr.bf16.mxu0 %v6950_v23  ;;  %v2402_v57 = vsel %vm2153_vm7, %v11885_v22, %v6654_v50  ;;  %v9896_v53 = vpop.f32.mrf.mxu0 }
 0x3f7   :  { %v2278_v36 = vsel %vm2268_vm8, %v11881_v11, %v6664_v9  ;;  %v2277_v29 = vsel %vm2268_vm8, %v11882_v18, %v6663_v3  ;;  %11884 = vst [vmem:[#allocation28_spill] sm:$0xff] %v9867_v49  ;;  %3767 = vmatmul.mubr.bf16.gmra.mxu1 %v9855_v20  ;;  %v6669_v9 = vunpack.i.h.bf16 %v9798_v2  ;;  %v2401_v52 = vsel %vm2153_vm7, %v11886_v37, %v6653_v34 }
 0x3f8   :  { %v9869_v61 = vpack.c.bf16 %v2278_v36, %v2277_v29  ;;  %v9874_v62 = vpop.permute.xlu0 %6671  ;;  %3776 = vmatprep.mubr.bf16.mxu1 %v9865_v21  ;;  %v6953_v36 = vld [vmem:[%s11279_s3 + $0x248] ss:$12 sps:$4 sm:$0xff]   ;;  %5785 = vmatmul.mubr.msk.bf16.gmra.mxu0 %vm139_vm2, %v9867_v49  ;;  %v9907_v37 = vpack.c.bf16 %v2402_v57, %v2401_v52  ;;  %v9925_v52 = vpop.f32.mrf.mxu0 }
 0x3f9   :  { %v9863_v6 = vpop.permute.xlu1 %6686  ;;  %v11445_v3 = vunpack.i.h.bf16 %v9874_v62  ;;  %v11442_v18 = vunpack.i.l.bf16 %v9874_v62  ;;  %3889 = vmatprep.mubr.bf16.mxu0 %v11851_v31  ;;  %5991 = vmatpush3.bf16.msra.mxu0 %v6951_v28  ;;  %v11890_v28 = vunpack.i.h.bf16 %v9604_v39  ;;  %11893 = vst [vmem:[#allocation25_spill] sm:$0xff] %v9925_v52 }
 0x3fa   :  { %5992 = vmatprep.subr.bf16.mxu0 %v6953_v36  ;;  %v11449_v39 = vunpack.i.h.bf16 %v9863_v6 }
 0x3fb   :  { %v2573_v2 = vsel %vm2268_vm8, %v6668_v15, %v11442_v18  ;;  %v2574_v50 = vsel %vm2268_vm8, %v6669_v9, %v11445_v3  ;;  %v11888_v18 = vunpack.i.l.bf16 %v9642_v24 }
 0x3fc   :  { %v6682_v29 = vpop.permute.xlu0 %6681  ;;  %v9923_v57 = vpack.c.bf16 %v2574_v50, %v2573_v2  ;;  %v11895_v50 = vunpack.i.l.bf16 %v9444_v59 }
 0x3fd   :  { %v6697_v4 = vpop.permute.xlu1 %6696  ;;  %v6684_v34 = vunpack.i.h.bf16 %v6682_v29  ;;  %v6683_v22 = vunpack.i.l.bf16 %v6682_v29  ;;  %5993 = vmatpush3.bf16.msra.mxu0 %v6954_v51 }
 0x3fe   :  { %v6699_v23 = vunpack.i.h.bf16 %v6697_v4  ;;  %v6698_v11 = vunpack.i.l.bf16 %v6697_v4  ;;  %v11887_v4 = vunpack.i.h.bf16 %v9642_v24  ;;  %11892 = vst [vmem:[#allocation59_spill] sm:$0xff] %v9923_v57  ;;  %v2403_v51 = vsel %vm2153_vm7, %v11895_v50, %v6668_v15 }
 0x3ff   :  { %v2406_v3 = vsel %vm2153_vm7, %v11890_v28, %v6684_v34  ;;  %v2405_v36 = vsel %vm2153_vm7, %v11891_v54, %v6683_v22  ;;  %3777 = vmatmul.mubr.bf16.gmra.mxu1 %v9907_v37  ;;  %v11448_v54 = vunpack.i.l.bf16 %v9863_v6  ;;  %v2576_v28 = vsel %vm2268_vm8, %v6684_v34, %v11449_v39 }
 0x400   :  { %v2408_v21 = vsel %vm2153_vm7, %v11887_v4, %v6699_v23  ;;  %v2407_v20 = vsel %vm2153_vm7, %v11888_v18, %v6698_v11  ;;  %v9927_v29 = vpack.c.bf16 %v2406_v3, %v2405_v36  ;;  %v6692_v24 = vpop.permute.xlu0 %6691  ;;  %3786 = vmatprep.mubr.bf16.mxu1 %v9923_v57  ;;  %5786 = vmatmul.mubr.msk.bf16.gmra.mxu0 %vm139_vm2, %v9869_v61  ;;  %v9937_v18 = vpop.f32.mrf.mxu0  ;;  %v11894_v3 = vunpack.i.h.bf16 %v9444_v59 }
 0x401   :  { %v9915_v49 = vpack.c.bf16 %v2408_v21, %v2407_v20  ;;  %v6679_v20 = vunpack.i.h.bf16 %v9832_v41  ;;  %v6678_v21 = vunpack.i.l.bf16 %v9832_v41  ;;  %3899 = vmatprep.mubr.bf16.mxu0 %v11851_v31  ;;  %v2575_v4 = vsel %vm2268_vm8, %v6683_v22, %v11448_v54 }
 0x402   :  { %v2404_v2 = vsel %vm2153_vm7, %v11894_v3, %v6669_v9  ;;  %v9946_v41 = vpop.f32.mrf.mxu0  ;;  %v11896_v36 = vunpack.i.l.bf16 %v9624_v7  ;;  %v11897_v59 = vunpack.i.h.bf16 %v9624_v7  ;;  %v9966_v57 = vpack.c.bf16 %v2576_v28, %v2575_v4 }
 0x403   :  { %11889 = vst [vmem:[#allocation75_spill] sm:$0xff] %v9915_v49  ;;  %v9962_v50 = vpack.c.bf16 %v2404_v2, %v2403_v51  ;;  %v6694_v7 = vunpack.i.h.bf16 %v6692_v24 }
 0x404   :  { %v2279_v9 = vsel %vm2268_vm8, %v11896_v36, %v6678_v21  ;;  %v2280_v15 = vsel %vm2268_vm8, %v11897_v59, %v6679_v20  ;;  %v9960_v3 = vpop.permute.xlu0 %6701  ;;  %v9964_v52 = vpop.f32.mrf.mxu0  ;;  %11898 = vst [vmem:[#allocation90_spill] sm:$0xff] %v9966_v57  ;;  %v6693_v20 = vunpack.i.l.bf16 %v6692_v24  ;;  %v11900_v24 = vunpack.i.h.bf16 %v9658_v10 }
 0x405   :  { %v9968_v22 = vpack.c.bf16 %v2280_v15, %v2279_v9  ;;  %v11452_v34 = vunpack.i.h.bf16 %v9960_v3  ;;  %v11451_v54 = vunpack.i.l.bf16 %v9960_v3  ;;  %v11901_v9 = vunpack.i.l.bf16 %v9658_v10  ;;  %v6707_v15 = vpop.permute.xlu1 %6706 }
 0x406   :  { %v9973_v21 = vpop.f32.mrf.mxu0  ;;  %v2282_v36 = vsel %vm2268_vm8, %v11900_v24, %v6694_v7 }
 0x407   :  { %3787 = vmatmul.mubr.bf16.gmra.mxu1 %v9962_v50  ;;  %11899 = vst [vmem:[#allocation88_spill] sm:$0xff] %v9973_v21  ;;  %v2577_v4 = vsel %vm2268_vm8, %v6698_v11, %v11451_v54  ;;  %v2578_v28 = vsel %vm2268_vm8, %v6699_v23, %v11452_v34  ;;  %v2281_v59 = vsel %vm2268_vm8, %v11901_v9, %v6693_v20  ;;  %v6709_v23 = vunpack.i.h.bf16 %v6707_v15 }
 0x408   :  { %3796 = vmatprep.mubr.bf16.mxu1 %v9966_v57  ;;  %5787 = vmatmul.mubr.msk.bf16.gmra.mxu0 %vm139_vm2, %v9968_v22  ;;  %v9978_v2 = vpop.f32.mrf.mxu0  ;;  %v9997_v21 = vpack.c.bf16 %v2578_v28, %v2577_v4  ;;  %v9999_v57 = vpack.c.bf16 %v2282_v36, %v2281_v59  ;;  %v6708_v54 = vunpack.i.l.bf16 %v6707_v15  ;;  %v11905_v20 = vunpack.i.l.bf16 %v9698_v12  ;;  %v6712_v36 = vpop.permute.xlu0 %6711 }
 0x409   :  { %3909 = vmatprep.mubr.bf16.mxu0 %v11851_v31  ;;  %v11906_v28 = vunpack.i.h.bf16 %v9698_v12  ;;  %v6714_v34 = vunpack.i.h.bf16 %v6712_v36  ;;  %v11911_v12 = vunpack.i.h.bf16 %v9690_v14 }
 0x40a   :  { %v9981_v51 = vpop.f32.mrf.mxu0  ;;  %v2509_v4 = vsel %vm2268_vm8, %v11905_v20, %v6708_v54  ;;  %v11912_v20 = vunpack.i.l.bf16 %v9690_v14 }
 0x40b   :  { %v2510_v24 = vsel %vm2268_vm8, %v11906_v28, %v6709_v23  ;;  %v2512_v23 = vsel %vm2268_vm8, %v11911_v12, %v6714_v34  ;;  %v6717_v28 = vpop.permute.xlu1 %6716  ;;  %v6955_v34 = vld [vmem:[%s11279_s3 + $0x368] ss:$12 sps:$4 sm:$0xff]  }
 0x40c   :  { %v9995_v39 = vpop.f32.mrf.mxu0  ;;  %v10020_v59 = vpack.c.bf16 %v2510_v24, %v2509_v4  ;;  %v6722_v12 = vpop.permute.xlu0 %6721 }
 0x40e   :  { %v10002_v11 = vpop.f32.mrf.mxu0 }
 0x40f   :  { %3797 = vmatmul.mubr.bf16.gmra.mxu1 %v9927_v29  ;;  %11902 = vst [vmem:[#allocation84_spill] sm:$0xff] %v10002_v11  ;;  %v6713_v11 = vunpack.i.l.bf16 %v6712_v36 }
 0x410   :  { %3806 = vmatprep.mubr.bf16.mxu1 %v9997_v21  ;;  %5788 = vmatmul.mubr.msk.bf16.gmra.mxu0 %vm139_vm2, %v9999_v57 }
 0x411   :  { %v10007_v10 = vpop.f32.mrf.mxu0  ;;  %3919 = vmatprep.mubr.bf16.mxu0 %v11851_v31  ;;  %v2511_v4 = vsel %vm2268_vm8, %v11912_v20, %v6713_v11  ;;  %v11917_v11 = vunpack.i.l.bf16 %v9776_v35  ;;  %v6956_v20 = vld [vmem:[%s11279_s3 + $0x350] ss:$12 sps:$4 sm:$0xff]  }
 0x412   :  { %11903 = vst [vmem:[#allocation63_spill] sm:$0xff] %v10007_v10  ;;  %v10042_v36 = vpack.c.bf16 %v2512_v23, %v2511_v4  ;;  %v11915_v10 = vld [vmem:[#allocation16_spill] sm:$0xff] }
 0x413   :  { %v10010_v7 = vpop.f32.mrf.mxu0 }
 0x414   :  { %11904 = vst [vmem:[#allocation29_spill] sm:$0xff] %v10010_v7  ;;  %v11909_v7 = vld [vmem:[#allocation48_spill] sm:$0xff] }
 0x415   :  { %v10018_v9 = vpop.f32.mrf.mxu0 }
 0x416   :  { %11907 = vst [vmem:[#allocation83_spill] sm:$0xff] %v10018_v9  ;;  %v6718_v9 = vunpack.i.l.bf16 %v6717_v28 }
 0x417   :  { %3807 = vmatmul.mubr.bf16.gmra.mxu1 %v9915_v49  ;;  %v10023_v15 = vpop.f32.mrf.mxu0  ;;  %v11933_v49 = vld [vmem:[#allocation76_spill] sm:$0xff] }
 0x418   :  { %11908 = vst [vmem:[#allocation95_spill] sm:$0xff] %v10023_v15  ;;  %4022 = vmatprep.mubr.bf16.mxu1 %v11909_v7  ;;  %5789 = vmatmul.mubr.msk.bf16.gmra.mxu0 %vm139_vm2, %v10020_v59  ;;  %v6952_v7 = vld [vmem:[%s11279_s3 + $0x380] ss:$12 sps:$4 sm:$0xff]   ;;  %v11914_v15 = vld [vmem:[#allocation97_spill] sm:$0xff] }
 0x419   :  { %3929 = vmatprep.mubr.bf16.mxu0 %v11851_v31 }
 0x41b   :  { %v10028_v54 = vpop.f32.mrf.mxu0 }
 0x41c   :  { %11910 = vst [vmem:[#allocation93_spill] sm:$0xff] %v10028_v54  ;;  %v6719_v54 = vunpack.i.h.bf16 %v6717_v28  ;;  %v11920_v28 = vld [vmem:[#allocation104_spill] sm:$0xff] }
 0x41d   :  { %v10037_v24 = vpop.f32.mrf.mxu0 }
 0x41e   :  { %11913 = vst [vmem:[#allocation105_spill] sm:$0xff] %v10037_v24  ;;  %v6724_v24 = vunpack.i.h.bf16 %v6722_v12 }
 0x41f   :  { %4023 = vmatmul.mubr.bf16.vlgmr.msra.gmra.mxu1 %v11914_v15  ;;  %v10047_v14 = vpop.f32.mrf.mxu0  ;;  %v2513_v15 = vsel %vm2268_vm8, %v11917_v11, %v6718_v9  ;;  %v11921_v9 = vld [vmem:[#allocation47_spill] sm:$0xff] }
 0x420   :  { %4030 = vmatprep.mubr.bf16.mxu1 %v11915_v10  ;;  %6174 = vmatpush3.bf16.msra.mxu1 %v9585_v17  ;;  %11916 = vst [vmem:[#allocation99_spill] sm:$0xff] %v10047_v14  ;;  %v11918_v10 = vunpack.i.h.bf16 %v9776_v35  ;;  %v6723_v14 = vunpack.i.l.bf16 %v6722_v12  ;;  %v11924_v12 = vunpack.i.l.bf16 %v9771_v45 }
 0x421   :  { %5790 = vmatmul.mubr.msk.bf16.gmra.mxu0 %vm139_vm2, %v10042_v36  ;;  %6175 = vmatprep.subr.bf16.mxu1 %v6952_v7  ;;  %v10061_v23 = vpop.f32.mrf.mxu0 }
 0x422   :  { %3939 = vmatprep.mubr.bf16.mxu0 %v11851_v31  ;;  %v2514_v17 = vsel %vm2268_vm8, %v11918_v10, %v6719_v54  ;;  %11919 = vst [vmem:[#allocation103_spill] sm:$0xff] %v10061_v23  ;;  %v6727_v10 = vpop.permute.xlu1 %6726 }
 0x423   :  { %v10066_v4 = vpack.c.bf16 %v2514_v17, %v2513_v15  ;;  %v10070_v35 = vpop.f32.mrf.mxu0 }
 0x424   :  { %6176 = vmatpush3.bf16.msra.mxu1 %v6952_v7  ;;  %11922 = vst [vmem:[#allocation46_spill] sm:$0xff] %v10070_v35  ;;  %v6957_v7 = vld [vmem:[%s11279_s3 + $0x338] ss:$12 sps:$4 sm:$0xff]  }
 0x425   :  { %6177 = vmatprep.subr.bf16.mxu1 %v6955_v34  ;;  %v10090_v23 = vpop.f32.mrf.mxu0 }
 0x426   :  { %11925 = vst [vmem:[#allocation14_spill] sm:$0xff] %v10090_v23 }
 0x427   :  { %4031 = vmatmul.mubr.bf16.gmra.mxu1 %v11920_v28  ;;  %v2515_v28 = vsel %vm2268_vm8, %v11924_v12, %v6723_v14 }
 0x428   :  { %4038 = vmatprep.mubr.bf16.mxu1 %v11921_v9  ;;  %6178 = vmatpush3.bf16.msra.mxu1 %v6955_v34  ;;  %v11923_v34 = vunpack.i.h.bf16 %v9771_v45  ;;  %v11926_v45 = vld [vmem:[#allocation6_spill] sm:$0xff] }
 0x429   :  { %5791 = vmatmul.mubr.msk.bf16.gmra.mxu0 %vm139_vm2, %v10066_v4  ;;  %v3678_v54 = vpop.f32.mrf.mxu1  ;;  %6179 = vmatprep.subr.bf16.mxu1 %v6956_v20 }
 0x42a   :  { %v10078_v11 = vadd.f32 %v3678_v54, %v9762_v47  ;;  %3949 = vmatprep.mubr.bf16.mxu0 %v11851_v31  ;;  %v2516_v17 = vsel %vm2268_vm8, %v11923_v34, %v6724_v24  ;;  %v6958_v54 = vld [vmem:[%s11279_s3 + $0x320] ss:$12 sps:$4 sm:$0xff]   ;;  %v10104_v34 = vpop.f32.mrf.mxu0 }
 0x42b   :  { %v3680_v15 = vpop.f32.mrf.mxu1  ;;  %v10098_v24 = vpack.c.bf16 %v2516_v17, %v2515_v28  ;;  %11929 = vst [vmem:[#allocation10_spill] sm:$0xff] %v10104_v34  ;;  %v11930_v28 = vunpack.i.l.bf16 %v9874_v62 }
 0x42c   :  { %v10088_v9 = vadd.f32 %v3680_v15, %v9778_v55  ;;  %6180 = vmatpush3.bf16.msra.mxu1 %v6956_v20  ;;  %v6729_v55 = vunpack.i.h.bf16 %v6727_v10  ;;  %v6728_v15 = vunpack.i.l.bf16 %v6727_v10  ;;  %v11928_v20 = vld [vmem:[#allocation15_spill] sm:$0xff]  ;;  %v10124_v23 = vpop.f32.mrf.mxu0 }
 0x42d   :  { %v3682_v47 = vpop.f32.mrf.mxu1  ;;  %6181 = vmatprep.subr.bf16.mxu1 %v6957_v7  ;;  %11932 = vst [vmem:[#allocation112_spill] sm:$0xff] %v10124_v23 }
 0x42e   :  { %v10096_v35 = vadd.f32 %v3682_v47, %v9796_v43  ;;  %v6959_v43 = vld [vmem:[%s11279_s3 + $0x308] ss:$12 sps:$4 sm:$0xff]   ;;  %v11931_v47 = vunpack.i.h.bf16 %v9874_v62  ;;  %s7049_s3 = smov 96  }
 0x42f   :  { %4039 = vmatmul.mubr.bf16.gmra.mxu1 %v11926_v45  ;;  %v10101_v14 = vpop.f32.mrf.mxu1 }
 0x430   :  { %11927 = vst [vmem:[#allocation41_spill] sm:$0xff] %v10101_v14  ;;  %4046 = vmatprep.mubr.bf16.mxu1 %v11928_v20  ;;  %6182 = vmatpush3.bf16.msra.mxu1 %v6957_v7  ;;  %v2517_v7 = vsel %vm2268_vm8, %v11930_v28, %v6728_v15  ;;  %v2518_v45 = vsel %vm2268_vm8, %v11931_v47, %v6729_v55  ;;  %v6732_v20 = vpop.permute.xlu0 %6731  ;;  %v11935_v28 = vunpack.i.h.bf16 %v9863_v6 }
 0x431   :  { %5792 = vmatmul.mubr.msk.bf16.gmra.mxu0 %vm139_vm2, %v10098_v24  ;;  %v3688_v12 = vpop.f32.mrf.mxu1  ;;  %6183 = vmatprep.subr.bf16.mxu1 %v6958_v54  ;;  %v10129_v34 = vpack.c.bf16 %v2518_v45, %v2517_v7  ;;  %v6734_v62 = vunpack.i.h.bf16 %v6732_v20  ;;  %v6733_v55 = vunpack.i.l.bf16 %v6732_v20 }
 0x432   :  { %v10112_v17 = vadd.f32 %v3688_v12, %v9835_v40  ;;  %3959 = vmatprep.mubr.bf16.mxu0 %v11851_v31 }
 0x433   :  { %v3690_v10 = vpop.f32.mrf.mxu1  ;;  %v2520_v7 = vsel %vm2268_vm8, %v11935_v28, %v6734_v62 }
 0x434   :  { %v10122_v14 = vadd.f32 %v3690_v10, %v9871_v60  ;;  %6184 = vmatpush3.bf16.msra.mxu1 %v6958_v54  ;;  %v10135_v60 = vpop.f32.mrf.mxu0 }
 0x435   :  { %v3692_v40 = vpop.f32.mrf.mxu1  ;;  %6185 = vmatprep.subr.bf16.mxu1 %v6959_v43 }
 0x436   :  { %v10127_v12 = vadd.f32 %v3692_v40, %v9896_v53  ;;  %v10152_v45 = vpop.f32.mrf.mxu0 }
 0x437   :  { %4047 = vmatmul.mubr.bf16.gmra.mxu1 %v11933_v49  ;;  %v10132_v15 = vpop.f32.mrf.mxu1  ;;  %v6737_v49 = vpop.permute.xlu1 %6736 }
 0x438   :  { %11934 = vst [vmem:[#allocation110_spill] sm:$0xff] %v10132_v15  ;;  %4054 = vmatprep.mubr.bf16.mxu1 %v9080_v58  ;;  %6186 = vmatpush3.bf16.msra.mxu1 %v6959_v43  ;;  %v11936_v58 = vunpack.i.l.bf16 %v9863_v6  ;;  %v6739_v62 = vunpack.i.h.bf16 %v6737_v49  ;;  %v6738_v28 = vunpack.i.l.bf16 %v6737_v49  ;;  %v10163_v6 = vpop.f32.mrf.mxu0  ;;  %v11940_v49 = vunpack.i.l.bf16 %v9960_v3 }
 0x439   :  { %5793 = vmatmul.mubr.msk.bf16.gmra.mxu0 %vm139_vm2, %v10129_v34  ;;  %v3698_v54 = vpop.f32.mrf.mxu1 }
 0x43a   :  { %v10140_v53 = vadd.f32 %v3698_v54, %v9937_v18  ;;  %3969 = vmatprep.mubr.bf16.mxu0 %v11851_v31  ;;  %v2519_v43 = vsel %vm2268_vm8, %v11936_v58, %v6733_v55  ;;  %v11937_v54 = vld [vmem:[#allocation65_spill] sm:$0xff] }
 0x43b   :  { %v3700_v10 = vpop.f32.mrf.mxu1  ;;  %v10157_v40 = vpack.c.bf16 %v2520_v7, %v2519_v43  ;;  %v10180_v43 = vpop.f32.mrf.mxu0 }
 0x43c   :  { %v10150_v47 = vadd.f32 %v3700_v10, %v9946_v41  ;;  %v11939_v10 = vunpack.i.h.bf16 %v9960_v3  ;;  %11941 = vst [vmem:[#allocation91_spill] sm:$0xff] %v10180_v43  ;;  %v11943_v3 = vld [vmem:[#allocation9_spill] sm:$0xff] }
 0x43d   :  { %v3702_v20 = vpop.f32.mrf.mxu1 }
 0x43e   :  { %v10155_v18 = vadd.f32 %v3702_v20, %v9964_v52  ;;  %v2522_v7 = vsel %vm2268_vm8, %v11939_v10, %v6739_v62  ;;  %v10189_v62 = vpop.f32.mrf.mxu0  ;;  %v11946_v10 = vld [vmem:[#allocation87_spill] sm:$0xff] }
 0x43f   :  { %4055 = vmatmul.mubr.bf16.gmra.mxu1 %v11937_v54  ;;  %v10160_v15 = vpop.f32.mrf.mxu1 }
 0x440   :  { %11938 = vst [vmem:[#allocation108_spill] sm:$0xff] %v10160_v15  ;;  %4062 = vmatprep.mubr.bf16.mxu1 %v9162_v8  ;;  %v2521_v8 = vsel %vm2268_vm8, %v11940_v49, %v6738_v28  ;;  %v11944_v28 = vld [vmem:[#allocation45_spill] sm:$0xff]  ;;  %v11949_v49 = vld [vmem:[#allocation80_spill] sm:$0xff] }
 0x441   :  { %5794 = vmatmul.mubr.msk.bf16.gmra.mxu0 %vm139_vm2, %v10157_v40  ;;  %v3708_v41 = vpop.f32.mrf.mxu1  ;;  %v10185_v54 = vpack.c.bf16 %v2522_v7, %v2521_v8  ;;  %v11950_v8 = vld [vmem:[#allocation20_spill] sm:$0xff] }
 0x442   :  { %v10168_v55 = vadd.f32 %v3708_v41, %v9978_v2  ;;  %3979 = vmatprep.mubr.bf16.mxu0 %v11851_v31  ;;  %v11942_v41 = vld [vmem:[#allocation13_spill] sm:$0xff] }
 0x443   :  { %v3710_v52 = vpop.f32.mrf.mxu1 }
 0x444   :  { %v10178_v58 = vadd.f32 %v3710_v52, %v9981_v51  ;;  %v10194_v51 = vpop.f32.mrf.mxu0  ;;  %v11945_v52 = vld [vmem:[#allocation40_spill] sm:$0xff] }
 0x445   :  { %v3712_v20 = vpop.f32.mrf.mxu1 }
 0x446   :  { %v10183_v2 = vadd.f32 %v3712_v20, %v9995_v39  ;;  %v10198_v39 = vpop.f32.mrf.mxu0 }
 0x447   :  { %4063 = vmatmul.mubr.bf16.gmra.mxu1 %v9171_v32  ;;  %v11947_v32 = vld [vmem:[#allocation58_spill] sm:$0xff] }
 0x448   :  { %4070 = vmatprep.mubr.bf16.mxu1 %v11942_v41  ;;  %v10202_v7 = vpop.f32.mrf.mxu0  ;;  %v11951_v41 = vld [vmem:[#allocation53_spill] sm:$0xff] }
 0x449   :  { %5795 = vmatmul.mubr.msk.bf16.gmra.mxu0 %vm139_vm2, %v10185_v54  ;;  %11948 = vst [vmem:[#allocation86_spill] sm:$0xff] %v10202_v7  ;;  %v11972_v7 = vld [vmem:[#allocation28_spill] sm:$0xff] }
 0x44a   :  { %4167 = vmatprep.mubr.bf16.mxu0 %v11943_v3  ;;  %v10206_v20 = vpop.f32.mrf.mxu0 }
 0x44c   :  { %v10210_v3 = vpop.f32.mrf.mxu0 }
 0x44f   :  { %4071 = vmatmul.mubr.bf16.gmra.mxu1 %v11944_v28  ;;  %v10214_v28 = vpop.f32.mrf.mxu0 }
 0x450   :  { %4078 = vmatprep.mubr.bf16.mxu1 %v11945_v52 }
 0x451   :  { %4168 = vmatmul.mubr.bf16.vlgmr.msra.gmra.mxu0 %v11946_v10  ;;  %v10218_v52 = vpop.f32.mrf.mxu0 }
 0x452   :  { %4175 = vmatprep.mubr.bf16.mxu0 %v11947_v32  ;;  %11952 = vst [vmem:[#allocation92_spill] sm:$0xff] %v10218_v52 }
 0x453   :  { %v10222_v10 = vpop.f32.mrf.mxu0 }
 0x457   :  { %4079 = vmatmul.mubr.bf16.gmra.mxu1 %v11949_v49 }
 0x458   :  { %4086 = vmatprep.mubr.bf16.mxu1 %v11950_v8 }
 0x459   :  { %4176 = vmatmul.mubr.bf16.gmra.mxu0 %v11951_v41 }
 0x45a   :  { %4183 = vmatprep.mubr.bf16.mxu0 %v9402_v16 }
 0x45f   :  { %4087 = vmatmul.mubr.bf16.gmra.mxu1 %v11816_v30  ;;  %v10226_v30 = vpop.f32.mrf.mxu0 }
 0x460   :  { %4094 = vmatprep.mubr.bf16.mxu1 %v9400_v0 }
 0x461   :  { %4184 = vmatmul.mubr.bf16.gmra.mxu0 %v9428_v33  ;;  %v10230_v0 = vpop.f32.mrf.mxu0  ;;  %v11953_v33 = vld [vmem:[#allocation24_spill] sm:$0xff] }
 0x462   :  { %4191 = vmatprep.mubr.bf16.mxu0 %v9450_v19  ;;  %v10246_v19 = vpop.f32.mrf.mxu1 }
 0x467   :  { %4095 = vmatmul.mubr.bf16.gmra.mxu1 %v8494_v42  ;;  %v10234_v42 = vpop.f32.mrf.mxu0 }
 0x468   :  { %4102 = vmatprep.mubr.bf16.mxu1 %v9462_v13 }
 0x469   :  { %4192 = vmatmul.mubr.bf16.gmra.mxu0 %v9480_v63  ;;  %v10238_v13 = vpop.f32.mrf.mxu0 }
 0x46a   :  { %4199 = vmatprep.mubr.bf16.mxu0 %v9606_v25 }
 0x46b   :  { %v10242_v16 = vpop.f32.mrf.mxu0 }
 0x46d   :  { %v10248_v63 = vpop.f32.mrf.mxu0 }
 0x46f   :  { %4103 = vmatmul.mubr.bf16.gmra.mxu1 %v11829_v27  ;;  %v11955_v27 = vld [vmem:[#allocation57_spill] sm:$0xff] }
 0x470   :  { %4110 = vmatprep.mubr.bf16.mxu1 %v9493_v5  ;;  %v11954_v5 = vld [vmem:[#allocation52_spill] sm:$0xff] }
 0x471   :  { %4200 = vmatmul.mubr.bf16.gmra.mxu0 %v9602_v1  ;;  %v10254_v1 = vpop.f32.mrf.mxu0 }
 0x472   :  { %4207 = vmatprep.mubr.bf16.mxu0 %v9644_v46  ;;  %11956 = vst [vmem:[#allocation89_spill] sm:$0xff] %v10254_v1  ;;  %v11961_v46 = vld [vmem:[#allocation54_spill] sm:$0xff] }
 0x477   :  { %4111 = vmatmul.mubr.bf16.gmra.mxu1 %v11836_v56 }
 0x478   :  { %4118 = vmatprep.mubr.bf16.mxu1 %v9620_v44 }
 0x479   :  { %4208 = vmatmul.mubr.bf16.gmra.mxu0 %v9640_v38  ;;  %v11960_v38 = vld [vmem:[#allocation23_spill] sm:$0xff] }
 0x47a   :  { %4215 = vmatprep.mubr.bf16.mxu0 %v9681_v26  ;;  %v11958_v26 = vld [vmem:[#allocation12_spill] sm:$0xff] }
 0x47f   :  { %4119 = vmatmul.mubr.bf16.gmra.mxu1 %v11846_v48  ;;  %v11959_v48 = vld [vmem:[#allocation19_spill] sm:$0xff] }
 0x480   :  { %4126 = vmatprep.mubr.bf16.mxu1 %v11953_v33  ;;  %v10252_v56 = vpop.f32.mrf.mxu1  ;;  %v11965_v33 = vld [vmem:[#allocation69_spill] sm:$0xff] }
 0x481   :  { %4216 = vmatmul.mubr.bf16.gmra.mxu0 %v11954_v5  ;;  %v11966_v5 = vld [vmem:[#allocation49_spill] sm:$0xff] }
 0x482   :  { %4223 = vmatprep.mubr.bf16.mxu0 %v11955_v27  ;;  %v10256_v25 = vpop.f32.mrf.mxu1  ;;  %v11967_v27 = vld [vmem:[#allocation21_spill] sm:$0xff] }
 0x484   :  { %v10258_v44 = vpop.f32.mrf.mxu0  ;;  %v10265_v32 = vpop.f32.mrf.mxu1 }
 0x485   :  { %11957 = vst [vmem:[#allocation30_spill] sm:$0xff] %v10258_v44 }
 0x486   :  { %v10267_v49 = vpop.f32.mrf.mxu0  ;;  %v10269_v8 = vpop.f32.mrf.mxu1 }
 0x487   :  { %4127 = vmatmul.mubr.bf16.gmra.mxu1 %v11958_v26  ;;  %11962 = vst [vmem:[#allocation31_spill] sm:$0xff] %v10267_v49  ;;  %11963 = vst [vmem:[#allocation96_spill] sm:$0xff] %v10269_v8 }
 0x488   :  { %6187 = vmatprep.mubr.msk.bf16.mxu1 %vm139_vm2, %v11959_v48  ;;  %v10271_v41 = vpop.f32.mrf.mxu0  ;;  %v11968_v48 = vld [vmem:[#allocation17_spill] sm:$0xff] }
 0x489   :  { %4224 = vmatmul.mubr.bf16.gmra.mxu0 %v11960_v38  ;;  %11964 = vst [vmem:[#allocation94_spill] sm:$0xff] %v10271_v41 }
 0x48a   :  { %4231 = vmatprep.mubr.bf16.mxu0 %v11961_v46  ;;  %v10281_v38 = vpop.f32.mrf.mxu0 }
 0x48b   :  { %11969 = vst [vmem:[#allocation100_spill] sm:$0xff] %v10281_v38 }
 0x48f   :  { %6188 = vmatmul.mubr.msk.bf16.vlgmr.msra.gmra.mxu1 %vm139_vm2, %v11965_v33 }
 0x490   :  { %6191 = vmatprep.mubr.msk.bf16.mxu1 %vm139_vm2, %v11966_v5  ;;  %v10278_v26 = vpop.f32.mrf.mxu1  ;;  %v11974_v5 = vld [vmem:[#allocation27_spill] sm:$0xff] }
 0x491   :  { %4232 = vmatmul.mubr.bf16.gmra.mxu0 %v11967_v27  ;;  %v11975_v27 = vld [vmem:[#allocation62_spill] sm:$0xff] }
 0x492   :  { %4239 = vmatprep.mubr.bf16.mxu0 %v11968_v48  ;;  %v10283_v46 = vpop.f32.mrf.mxu1 }
 0x493   :  { %11970 = vst [vmem:[#allocation98_spill] sm:$0xff] %v10283_v46 }
 0x494   :  { %v10285_v43 = vpop.f32.mrf.mxu0  ;;  %v10293_v33 = vpop.f32.mrf.mxu1 }
 0x495   :  { %11971 = vst [vmem:[#allocation32_spill] sm:$0xff] %v10285_v43 }
 0x496   :  { %v10289_v15 = vpop.f32.mrf.mxu0  ;;  %v10299_v52 = vpop.f32.mrf.mxu1 }
 0x497   :  { %6192 = vmatmul.mubr.msk.bf16.gmra.mxu1 %vm139_vm2, %v11972_v7  ;;  %11973 = vst [vmem:[#allocation33_spill] sm:$0xff] %v10289_v15  ;;  %11977 = vst [vmem:[#allocation102_spill] sm:$0xff] %v10299_v52 }
 0x498   :  { %6195 = vmatprep.mubr.msk.bf16.mxu1 %vm139_vm2, %v9869_v61  ;;  %v10297_v48 = vpop.f32.mrf.mxu0 }
 0x499   :  { %4240 = vmatmul.mubr.bf16.gmra.mxu0 %v11974_v5  ;;  %11976 = vst [vmem:[#allocation106_spill] sm:$0xff] %v10297_v48 }
 0x49a   :  { %4247 = vmatprep.mubr.bf16.mxu0 %v11975_v27  ;;  %v10301_v23 = vpop.f32.mrf.mxu0  ;;  %v11981_v27 = vld [vmem:[#allocation59_spill] sm:$0xff] }
 0x49b   :  { %11978 = vst [vmem:[#allocation51_spill] sm:$0xff] %v10301_v23 }
 0x49d   :  { %v10303_v43 = vpop.f32.mrf.mxu1 }
 0x49f   :  { %6196 = vmatmul.mubr.msk.bf16.gmra.mxu1 %vm139_vm2, %v9968_v22  ;;  %v10309_v61 = vpop.f32.mrf.mxu1 }
 0x4a0   :  { %6199 = vmatprep.mubr.msk.bf16.mxu1 %vm139_vm2, %v9999_v57  ;;  %11979 = vst [vmem:[#allocation18_spill] sm:$0xff] %v10309_v61  ;;  %v3851_v7 = vpop.f32.mrf.mxu0 }
 0x4a1   :  { %4248 = vmatmul.mubr.bf16.gmra.mxu0 %v9907_v37  ;;  %v10313_v5 = vadd.f32 %v3851_v7, %v10078_v11  ;;  %v10316_v48 = vpop.f32.mrf.mxu1 }
 0x4a2   :  { %4255 = vmatprep.mubr.bf16.mxu0 %v11981_v27  ;;  %v3853_v23 = vpop.f32.mrf.mxu0 }
 0x4a3   :  { %11980 = vst [vmem:[#allocation107_spill] sm:$0xff] %v10313_v5  ;;  %v10319_v15 = vadd.f32 %v3853_v23, %v10088_v9  ;;  %v10321_v22 = vpop.f32.mrf.mxu1 }
 0x4a4   :  { %11982 = vst [vmem:[#allocation109_spill] sm:$0xff] %v10321_v22  ;;  %v3855_v38 = vpop.f32.mrf.mxu0 }
 0x4a5   :  { %v10324_v57 = vadd.f32 %v3855_v38, %v10096_v35  ;;  %v11986_v35 = vld [vmem:[#allocation90_spill] sm:$0xff] }
 0x4a6   :  { %v10330_v37 = vpop.f32.mrf.mxu0 }
 0x4a7   :  { %11983 = vst [vmem:[#allocation35_spill] sm:$0xff] %v10324_v57  ;;  %v10326_v61 = vpop.f32.mrf.mxu1  ;;  %6200 = vmatmul.mubr.msk.bf16.gmra.mxu1 %vm139_vm2, %v10020_v59  ;;  %11984 = vst [vmem:[#allocation37_spill] sm:$0xff] %v10330_v37 }
 0x4a8   :  { %6203 = vmatprep.mubr.msk.bf16.mxu1 %vm139_vm2, %v10042_v36  ;;  %v3861_v23 = vpop.f32.mrf.mxu0 }
 0x4a9   :  { %v10334_v11 = vpop.f32.mrf.mxu1  ;;  %4256 = vmatmul.mubr.bf16.gmra.mxu0 %v9962_v50  ;;  %v10338_v9 = vadd.f32 %v3861_v23, %v10112_v17 }
 0x4aa   :  { %4263 = vmatprep.mubr.bf16.mxu0 %v11986_v35  ;;  %v3863_v7 = vpop.f32.mrf.mxu0 }
 0x4ab   :  { %11985 = vst [vmem:[#allocation56_spill] sm:$0xff] %v10338_v9  ;;  %v10341_v38 = vpop.f32.mrf.mxu1  ;;  %v10344_v59 = vadd.f32 %v3863_v7, %v10122_v14 }
 0x4ac   :  { %v3865_v37 = vpop.f32.mrf.mxu0 }
 0x4ad   :  { %v10346_v27 = vpop.f32.mrf.mxu1  ;;  %v10349_v36 = vadd.f32 %v3865_v37, %v10127_v12 }
 0x4ae   :  { %11987 = vst [vmem:[#allocation22_spill] sm:$0xff] %v10346_v27  ;;  %v10355_v50 = vpop.f32.mrf.mxu0 }
 0x4af   :  { %11988 = vst [vmem:[#allocation111_spill] sm:$0xff] %v10349_v36  ;;  %v10351_v22 = vpop.f32.mrf.mxu1  ;;  %6204 = vmatmul.mubr.msk.bf16.gmra.mxu1 %vm139_vm2, %v10066_v4  ;;  %11989 = vst [vmem:[#allocation43_spill] sm:$0xff] %v10355_v50 }
 0x4b0   :  { %6207 = vmatprep.mubr.msk.bf16.mxu1 %vm139_vm2, %v10098_v24  ;;  %v3871_v14 = vpop.f32.mrf.mxu0 }
 0x4b1   :  { %v10359_v17 = vpop.f32.mrf.mxu1  ;;  %4264 = vmatmul.mubr.bf16.gmra.mxu0 %v9927_v29  ;;  %v10363_v23 = vadd.f32 %v3871_v14, %v10140_v53 }
 0x4b2   :  { %4271 = vmatprep.mubr.bf16.mxu0 %v9997_v21  ;;  %v3873_v37 = vpop.f32.mrf.mxu0 }
 0x4b3   :  { %11990 = vst [vmem:[#allocation72_spill] sm:$0xff] %v10363_v23  ;;  %v10366_v12 = vpop.f32.mrf.mxu1  ;;  %v10369_v4 = vadd.f32 %v3873_v37, %v10150_v47  ;;  %v11994_v47 = vld [vmem:[#allocation75_spill] sm:$0xff] }
 0x4b4   :  { %v3875_v7 = vpop.f32.mrf.mxu0 }
 0x4b5   :  { %v10371_v35 = vpop.f32.mrf.mxu1  ;;  %v10374_v24 = vadd.f32 %v3875_v7, %v10155_v18 }
 0x4b6   :  { %11991 = vst [vmem:[#allocation50_spill] sm:$0xff] %v10371_v35  ;;  %v10380_v29 = vpop.f32.mrf.mxu0 }
 0x4b7   :  { %11992 = vst [vmem:[#allocation66_spill] sm:$0xff] %v10374_v24  ;;  %v10376_v27 = vpop.f32.mrf.mxu1  ;;  %6208 = vmatmul.mubr.msk.bf16.gmra.mxu1 %vm139_vm2, %v10129_v34  ;;  %11993 = vst [vmem:[#allocation36_spill] sm:$0xff] %v10380_v29 }
 0x4b8   :  { %6211 = vmatprep.mubr.msk.bf16.mxu1 %vm139_vm2, %v10157_v40  ;;  %v3881_v53 = vpop.f32.mrf.mxu0 }
 0x4b9   :  { %v10384_v21 = vpop.f32.mrf.mxu1  ;;  %4272 = vmatmul.mubr.bf16.gmra.mxu0 %v11994_v47  ;;  %v10388_v14 = vadd.f32 %v3881_v53, %v10168_v55  ;;  %v11998_v47 = vld [vmem:[#allocation63_spill] sm:$0xff] }
 0x4ba   :  { %v10392_v37 = vpop.f32.mrf.mxu0  ;;  %v3719_v55 = vadd.f32 %v10252_v56, %v11998_v47 }
 0x4bb   :  { %11995 = vst [vmem:[#allocation55_spill] sm:$0xff] %v10388_v14  ;;  %v10390_v18 = vpop.f32.mrf.mxu1 }
 0x4bc   :  { %v3885_v34 = vpop.f32.mrf.mxu0 }
 0x4bd   :  { %v10394_v7 = vpop.f32.mrf.mxu1  ;;  %v10397_v50 = vadd.f32 %v3885_v34, %v10183_v2  ;;  %v12000_v34 = vld [vmem:[#allocation83_spill] sm:$0xff] }
 0x4be   :  { %11996 = vst [vmem:[#allocation60_spill] sm:$0xff] %v10394_v7  ;;  %v10403_v40 = vpop.f32.mrf.mxu0  ;;  %v3723_v41 = vadd.f32 %v10265_v32, %v12000_v34  ;;  %v12007_v34 = vld [vmem:[#allocation99_spill] sm:$0xff] }
 0x4bf   :  { %11997 = vst [vmem:[#allocation26_spill] sm:$0xff] %v10397_v50  ;;  %v10399_v35 = vpop.f32.mrf.mxu1  ;;  %6212 = vmatmul.mubr.msk.bf16.gmra.mxu1 %vm139_vm2, %v10185_v54 }
 0x4c0   :  { %4786 = vmatprep.mubr.bf16.mxu1 %v11851_v31  ;;  %v3891_v29 = vpop.f32.mrf.mxu0  ;;  %v12003_v31 = vld [vmem:[#allocation93_spill] sm:$0xff] }
 0x4c1   :  { %v10408_v53 = vpop.f32.mrf.mxu1  ;;  %v10410_v7 = vadd.f32 %v3891_v29, %v3719_v55  ;;  %v3729_v29 = vadd.f32 %v10278_v26, %v12003_v31  ;;  %v12011_v26 = vld [vmem:[#allocation46_spill] sm:$0xff] }
 0x4c2   :  { %v10414_v2 = vpop.f32.mrf.mxu0 }
 0x4c3   :  { %11999 = vst [vmem:[#allocation70_spill] sm:$0xff] %v10410_v7  ;;  %v10412_v52 = vpop.f32.mrf.mxu1 }
 0x4c4   :  { %v3895_v49 = vpop.f32.mrf.mxu0 }
 0x4c5   :  { %v10418_v54 = vpop.f32.mrf.mxu1  ;;  %v10420_v46 = vadd.f32 %v3895_v49, %v3723_v41  ;;  %v3733_v49 = vadd.f32 %v10293_v33, %v12007_v34  ;;  %v12014_v34 = vld [vmem:[#allocation10_spill] sm:$0xff] }
 0x4c6   :  { %v10424_v47 = vpop.f32.mrf.mxu0 }
 0x4c7   :  { %12001 = vst [vmem:[#allocation39_spill] sm:$0xff] %v10420_v46  ;;  %v10422_v56 = vpop.f32.mrf.mxu1  ;;  %12002 = vst [vmem:[#allocation67_spill] sm:$0xff] %v10424_v47 }
 0x4c8   :  { %v3901_v44 = vpop.f32.mrf.mxu0 }
 0x4c9   :  { %v10428_v55 = vpop.f32.mrf.mxu1  ;;  %v10430_v1 = vadd.f32 %v3901_v44, %v3729_v29  ;;  %v3739_v44 = vadd.f32 %v10303_v43, %v12011_v26 }
 0x4ca   :  { %v10434_v32 = vpop.f32.mrf.mxu0 }
 0x4cb   :  { %12004 = vst [vmem:[#allocation8_spill] sm:$0xff] %v10430_v1  ;;  %v10432_v8 = vpop.f32.mrf.mxu1  ;;  %12006 = vst [vmem:[#allocation101_spill] sm:$0xff] %v10434_v32 }
 0x4cc   :  { %12005 = vst [vmem:[#allocation77_spill] sm:$0xff] %v10432_v8  ;;  %v3905_v46 = vpop.f32.mrf.mxu0 }
 0x4cd   :  { %v10438_v41 = vpop.f32.mrf.mxu1  ;;  %v10440_v7 = vadd.f32 %v3905_v46, %v3733_v49  ;;  %v3743_v46 = vadd.f32 %v10316_v48, %v12014_v34 }
 0x4ce   :  { %v10444_v31 = vpop.f32.mrf.mxu0 }
 0x4cf   :  { %12008 = vst [vmem:[#allocation68_spill] sm:$0xff] %v10440_v7  ;;  %v10442_v47 = vpop.f32.mrf.mxu1  ;;  %12010 = vst [vmem:[#allocation78_spill] sm:$0xff] %v10444_v31 }
 0x4d0   :  { %12009 = vst [vmem:[#allocation79_spill] sm:$0xff] %v10442_v47  ;;  %v3911_v1 = vpop.f32.mrf.mxu0 }
 0x4d1   :  { %v10448_v29 = vpop.f32.mrf.mxu1  ;;  %v10450_v8 = vadd.f32 %v3911_v1, %v3739_v44  ;;  %v3749_v1 = vadd.f32 %v10326_v61, %v10135_v60 }
 0x4d2   :  { %v10454_v33 = vpop.f32.mrf.mxu0 }
 0x4d3   :  { %12012 = vst [vmem:[#allocation73_spill] sm:$0xff] %v10450_v8  ;;  %v10452_v32 = vpop.f32.mrf.mxu1  ;;  %12013 = vst [vmem:[#allocation71_spill] sm:$0xff] %v10454_v33  ;;  %v3751_v8 = vadd.f32 %v10334_v11, %v10152_v45 }
 0x4d4   :  { %v3915_v7 = vpop.f32.mrf.mxu0 }
 0x4d5   :  { %v10458_v49 = vpop.f32.mrf.mxu1  ;;  %v10460_v47 = vadd.f32 %v3915_v7, %v3743_v46  ;;  %v3753_v7 = vadd.f32 %v10341_v38, %v10163_v6 }
 0x4d6   :  { %v10464_v43 = vpop.f32.mrf.mxu0 }
 0x4d7   :  { %12015 = vst [vmem:[#allocation74_spill] sm:$0xff] %v10460_v47  ;;  %v10462_v31 = vpop.f32.mrf.mxu1  ;;  %12016 = vst [vmem:[#allocation81_spill] sm:$0xff] %v10464_v43 }
 0x4d8   :  { %v3921_v44 = vpop.f32.mrf.mxu0 }
 0x4d9   :  { %v10468_v26 = vpop.f32.mrf.mxu1  ;;  %v10472_v33 = vadd.f32 %v3921_v44, %v3749_v1  ;;  %v3759_v1 = vadd.f32 %v10351_v22, %v10189_v62 }
 0x4da   :  { %12017 = vst [vmem:[#allocation44_spill] sm:$0xff] %v10468_v26  ;;  %v3923_v34 = vpop.f32.mrf.mxu0 }
 0x4db   :  { %12018 = vst [vmem:[#allocation7_spill] sm:$0xff] %v10472_v33  ;;  %v10474_v48 = vpop.f32.mrf.mxu1  ;;  %v3924_v47 = vadd.f32 %v3923_v34, %v3751_v8  ;;  %v3761_v8 = vadd.f32 %v10359_v17, %v10194_v51 }
 0x4dc   :  { %v3925_v60 = vpop.f32.mrf.mxu0 }
 0x4dd   :  { %v10480_v43 = vpop.f32.mrf.mxu1  ;;  %v10483_v61 = vmax.f32 %v10319_v15, %v3924_v47  ;;  %v10485_v26 = vadd.f32 %v3925_v60, %v3753_v7  ;;  %v3763_v60 = vadd.f32 %v10366_v12, %v10198_v39 }
 0x4de   :  { %v10487_v11 = vpop.f32.mrf.mxu0 }
 0x4df   :  { %12019 = vst [vmem:[#allocation5_spill] sm:$0xff] %v10483_v61  ;;  %12020 = vst [vmem:[#allocation34_spill] sm:$0xff] %v10485_v26  ;;  %v5894_v45 = vpop.f32.mrf.mxu1 }
 0x4e1   :  { %v5895_v38 = vpop.f32.mrf.mxu1  ;;  %v3931_v44 = vpop.f32.mrf.mxu0 }
 0x4e2   :  { %v10495_v34 = vadd.f32 %v5895_v38, %v5894_v45  ;;  %v10497_v15 = vadd.f32 %v3931_v44, %v3759_v1  ;;  %v3769_v1 = vadd.f32 %v10376_v27, %v10206_v20  ;;  %v3771_v44 = vadd.f32 %v10384_v21, %v10210_v3  ;;  %v12051_v20 = vld [vmem:[#allocation94_spill] sm:$0xff] }
 0x4e3   :  { %v5897_v47 = vpop.f32.mrf.mxu1  ;;  %v3933_v7 = vpop.f32.mrf.mxu0 }
 0x4e4   :  { %12021 = vst [vmem:[#allocation82_spill] sm:$0xff] %v10497_v15  ;;  %v3934_v22 = vadd.f32 %v3933_v7, %v3761_v8 }
 0x4e5   :  { %v5898_v46 = vpop.f32.mrf.mxu1  ;;  %v3935_v6 = vpop.f32.mrf.mxu0 }
 0x4e6   :  { %v10504_v26 = vmax.f32 %v10344_v59, %v3934_v22  ;;  %v10506_v57 = vadd.f32 %v5898_v46, %v5897_v47  ;;  %v10508_v51 = vadd.f32 %v3935_v6, %v3763_v60  ;;  %v3773_v47 = vadd.f32 %v10390_v18, %v10214_v28 }
 0x4e7   :  { %v5900_v17 = vpop.f32.mrf.mxu1  ;;  %v10510_v45 = vpop.f32.mrf.mxu0 }
 0x4e8   :  { %12022 = vst [vmem:[#allocation11_spill] sm:$0xff] %v10504_v26  ;;  %12023 = vst [vmem:[#allocation42_spill] sm:$0xff] %v10508_v51 }
 0x4e9   :  { %v5901_v12 = vpop.f32.mrf.mxu1  ;;  %v3941_v38 = vpop.f32.mrf.mxu0 }
 0x4ea   :  { %v10518_v59 = vadd.f32 %v5901_v12, %v5900_v17  ;;  %v10520_v46 = vadd.f32 %v3941_v38, %v3769_v1  ;;  %v3779_v1 = vadd.f32 %v10399_v35, %v10222_v10  ;;  %v3781_v38 = vadd.f32 %v10408_v53, %v10226_v30 }
 0x4eb   :  { %v5903_v6 = vpop.f32.mrf.mxu1  ;;  %v3943_v8 = vpop.f32.mrf.mxu0  ;;  %v3783_v10 = vadd.f32 %v10412_v52, %v10230_v0 }
 0x4ec   :  { %12024 = vst [vmem:[#allocation64_spill] sm:$0xff] %v10520_v46  ;;  %v3944_v27 = vadd.f32 %v3943_v8, %v3771_v44 }
 0x4ed   :  { %v5904_v7 = vpop.f32.mrf.mxu1  ;;  %v3945_v60 = vpop.f32.mrf.mxu0 }
 0x4ee   :  { %v10527_v22 = vmax.f32 %v10369_v4, %v3944_v27  ;;  %v10529_v39 = vadd.f32 %v5904_v7, %v5903_v6  ;;  %v10531_v3 = vadd.f32 %v3945_v60, %v3773_v47  ;;  %v3884_v47 = vadd.f32 %v10392_v37, %v10178_v58  ;;  %v12028_v7 = vld [vmem:[#allocation84_spill] sm:$0xff] }
 0x4ef   :  { %v5906_v21 = vpop.f32.mrf.mxu1  ;;  %v10533_v17 = vpop.f32.mrf.mxu0  ;;  %v3715_v60 = vadd.f32 %v10246_v19, %v12028_v7 }
 0x4f0   :  { %12025 = vst [vmem:[#allocation38_spill] sm:$0xff] %v10527_v22  ;;  %12026 = vst [vmem:[#allocation48_spill] sm:$0xff] %v10531_v3  ;;  %v12085_v3 = vld [vmem:[#allocation36_spill] sm:$0xff] }
 0x4f1   :  { %v5907_v18 = vpop.f32.mrf.mxu1  ;;  %v3951_v12 = vpop.f32.mrf.mxu0  ;;  %v3888_v0 = vadd.f32 %v10403_v40, %v3715_v60  ;;  %v12034_v60 = vld [vmem:[#allocation77_spill] sm:$0xff] }
 0x4f2   :  { %v10541_v4 = vadd.f32 %v5907_v18, %v5906_v21  ;;  %v10543_v44 = vadd.f32 %v3951_v12, %v3779_v1  ;;  %v3785_v21 = vadd.f32 %v10418_v54, %v10234_v42  ;;  %v3789_v12 = vadd.f32 %v10422_v56, %v10238_v13  ;;  %v12031_v42 = vld [vmem:[#allocation29_spill] sm:$0xff] }
 0x4f3   :  { %v5909_v6 = vpop.f32.mrf.mxu1  ;;  %v3953_v8 = vpop.f32.mrf.mxu0  ;;  %v3721_v54 = vadd.f32 %v10256_v25, %v12031_v42 }
 0x4f4   :  { %12027 = vst [vmem:[#allocation97_spill] sm:$0xff] %v10543_v44  ;;  %v3954_v27 = vadd.f32 %v3953_v8, %v3781_v38 }
 0x4f5   :  { %v5910_v30 = vpop.f32.mrf.mxu1  ;;  %v3955_v53 = vpop.f32.mrf.mxu0  ;;  %v3894_v7 = vadd.f32 %v10414_v2, %v3721_v54 }
 0x4f6   :  { %v10555_v1 = vmax.f32 %v3884_v47, %v3954_v27  ;;  %v10557_v18 = vadd.f32 %v5910_v30, %v5909_v6  ;;  %v10559_v58 = vadd.f32 %v3955_v53, %v3783_v10  ;;  %v3791_v47 = vadd.f32 %v10428_v55, %v10242_v16  ;;  %v12036_v16 = vld [vmem:[#allocation95_spill] sm:$0xff]  ;;  %v12037_v55 = vld [vmem:[#allocation96_spill] sm:$0xff] }
 0x4f7   :  { %v5912_v37 = vpop.f32.mrf.mxu1  ;;  %v3957_v52 = vpop.f32.mrf.mxu0  ;;  %v3793_v30 = vadd.f32 %v12034_v60, %v10248_v63  ;;  %v12043_v60 = vld [vmem:[#allocation79_spill] sm:$0xff] }
 0x4f8   :  { %12029 = vst [vmem:[#allocation16_spill] sm:$0xff] %v10555_v1  ;;  %12030 = vst [vmem:[#allocation104_spill] sm:$0xff] %v10559_v58  ;;  %v3958_v38 = vadd.f32 %v3957_v52, %v3785_v21  ;;  %4519 = vrot.lane.b32.xlu0 %v10555_v1, %s7049_s3 }
 0x4f9   :  { %v5913_v6 = vpop.f32.mrf.mxu1  ;;  %v3961_v8 = vpop.f32.mrf.mxu0 }
 0x4fa   :  { %v10572_v40 = vmax.f32 %v3888_v0, %v3958_v38  ;;  %v10574_v10 = vadd.f32 %v5913_v6, %v5912_v37  ;;  %v10576_v13 = vadd.f32 %v3961_v8, %v3789_v12  ;;  %v3725_v37 = vadd.f32 %v12037_v55, %v12036_v16  ;;  %v12038_v12 = vld [vmem:[#allocation89_spill] sm:$0xff]  ;;  %v12041_v8 = vld [vmem:[#allocation67_spill] sm:$0xff] }
 0x4fb   :  { %v5915_v56 = vpop.f32.mrf.mxu1  ;;  %v3963_v27 = vpop.f32.mrf.mxu0  ;;  %v3795_v38 = vadd.f32 %v10438_v41, %v12038_v12  ;;  %v12045_v41 = vld [vmem:[#allocation105_spill] sm:$0xff]  ;;  %v3803_v55 = vadd.f32 %v10452_v32, %v12051_v20 }
 0x4fc   :  { %12032 = vst [vmem:[#allocation47_spill] sm:$0xff] %v10572_v40  ;;  %12033 = vst [vmem:[#allocation6_spill] sm:$0xff] %v10576_v13  ;;  %v3964_v21 = vadd.f32 %v3963_v27, %v3791_v47  ;;  %4523 = vrot.lane.b32.xlu0 %v10572_v40, %s7049_s3  ;;  %v3898_v47 = vadd.f32 %v12041_v8, %v3725_v37  ;;  %v12042_v27 = vld [vmem:[#allocation30_spill] sm:$0xff] }
 0x4fd   :  { %v5916_v52 = vpop.f32.mrf.mxu1  ;;  %v3965_v0 = vpop.f32.mrf.mxu0  ;;  %v3799_v62 = vadd.f32 %v12043_v60, %v12042_v27 }
 0x4fe   :  { %v10589_v42 = vmax.f32 %v3894_v7, %v3964_v21  ;;  %v10591_v2 = vadd.f32 %v5916_v52, %v5915_v56  ;;  %v10593_v63 = vadd.f32 %v3965_v0, %v3793_v30  ;;  %v12046_v7 = vld [vmem:[#allocation98_spill] sm:$0xff]  ;;  %v12047_v52 = vld [vmem:[#allocation31_spill] sm:$0xff] }
 0x4ff   :  { %v5918_v54 = vpop.f32.mrf.mxu1  ;;  %v3967_v6 = vpop.f32.mrf.mxu0  ;;  %v3731_v56 = vadd.f32 %v12046_v7, %v12045_v41  ;;  %v3801_v0 = vadd.f32 %v10448_v29, %v12047_v52  ;;  %v12053_v29 = vld [vmem:[#allocation103_spill] sm:$0xff]  ;;  %v12059_v7 = vld [vmem:[#allocation32_spill] sm:$0xff] }
 0x500   :  { %12039 = vst [vmem:[#allocation15_spill] sm:$0xff] %v10589_v42  ;;  %12040 = vst [vmem:[#allocation76_spill] sm:$0xff] %v10593_v63  ;;  %v3968_v28 = vadd.f32 %v3967_v6, %v3795_v38  ;;  %4527 = vrot.lane.b32.xlu0 %v10589_v42, %s7049_s3  ;;  %v12050_v38 = vld [vmem:[#allocation101_spill] sm:$0xff]  ;;  %v3809_v19 = vadd.f32 %v10462_v31, %v12059_v7 }
 0x501   :  { %v5919_v21 = vpop.f32.mrf.mxu1  ;;  %v3971_v30 = vpop.f32.mrf.mxu0  ;;  %v3904_v6 = vadd.f32 %v12050_v38, %v3731_v56 }
 0x502   :  { %v10606_v12 = vmax.f32 %v3898_v47, %v3968_v28  ;;  %v10608_v37 = vadd.f32 %v5919_v21, %v5918_v54  ;;  %v10610_v8 = vadd.f32 %v3971_v30, %v3799_v62  ;;  %v12054_v28 = vld [vmem:[#allocation102_spill] sm:$0xff]  ;;  %v12055_v21 = vld [vmem:[#allocation100_spill] sm:$0xff] }
 0x503   :  { %v5921_v27 = vpop.f32.mrf.mxu1  ;;  %v3973_v60 = vpop.f32.mrf.mxu0  ;;  %v3735_v54 = vadd.f32 %v12054_v28, %v12053_v29  ;;  %v3805_v30 = vadd.f32 %v10458_v49, %v12055_v21  ;;  %v12061_v49 = vld [vmem:[#allocation14_spill] sm:$0xff] }
 0x504   :  { %12048 = vst [vmem:[#allocation65_spill] sm:$0xff] %v10606_v12  ;;  %12049 = vst [vmem:[#allocation13_spill] sm:$0xff] %v10610_v8  ;;  %v3974_v53 = vadd.f32 %v3973_v60, %v3801_v0  ;;  %4531 = vrot.lane.b32.xlu0 %v10606_v12, %s7049_s3  ;;  %v12058_v0 = vld [vmem:[#allocation78_spill] sm:$0xff] }
 0x505   :  { %v5922_v47 = vpop.f32.mrf.mxu1  ;;  %v3975_v62 = vpop.f32.mrf.mxu0  ;;  %v3908_v60 = vadd.f32 %v12058_v0, %v3735_v54  ;;  %v12069_v28 = vld [vmem:[#allocation106_spill] sm:$0xff] }
 0x506   :  { %v10623_v52 = vmax.f32 %v3904_v6, %v3974_v53  ;;  %v10625_v56 = vadd.f32 %v5922_v47, %v5921_v27  ;;  %v10627_v32 = vadd.f32 %v3975_v62, %v3803_v55  ;;  %v12062_v53 = vld [vmem:[#allocation18_spill] sm:$0xff]  ;;  %v12063_v47 = vld [vmem:[#allocation33_spill] sm:$0xff]  ;;  %v12064_v62 = vld [vmem:[#allocation44_spill] sm:$0xff]  ;;  %v3813_v5 = vadd.f32 %v10474_v48, %v12069_v28 }
 0x507   :  { %v5924_v20 = vpop.f32.mrf.mxu1  ;;  %v3977_v38 = vpop.f32.mrf.mxu0  ;;  %v3741_v27 = vadd.f32 %v12062_v53, %v12061_v49  ;;  %v3811_v21 = vadd.f32 %v12064_v62, %v12063_v47 }
 0x508   :  { %12056 = vst [vmem:[#allocation9_spill] sm:$0xff] %v10623_v52  ;;  %12057 = vst [vmem:[#allocation45_spill] sm:$0xff] %v10627_v32  ;;  %v3978_v35 = vadd.f32 %v3977_v38, %v3805_v30  ;;  %4535 = vrot.lane.b32.xlu0 %v10623_v52, %s7049_s3  ;;  %v12068_v30 = vld [vmem:[#allocation71_spill] sm:$0xff] }
 0x509   :  { %v5925_v6 = vpop.f32.mrf.mxu1  ;;  %v3981_v55 = vpop.f32.mrf.mxu0  ;;  %v3914_v38 = vadd.f32 %v12068_v30, %v3741_v27 }
 0x50a   :  { %v10640_v33 = vmax.f32 %v3908_v60, %v3978_v35  ;;  %v10642_v54 = vadd.f32 %v5925_v6, %v5924_v20  ;;  %v10644_v31 = vadd.f32 %v3981_v55, %v3809_v19  ;;  %v12071_v35 = vld [vmem:[#allocation112_spill] sm:$0xff]  ;;  %v12072_v60 = vld [vmem:[#allocation109_spill] sm:$0xff]  ;;  %v12073_v55 = vld [vmem:[#allocation51_spill] sm:$0xff] }
 0x50b   :  { %v5927_v7 = vpop.f32.mrf.mxu1  ;;  %v3983_v0 = vpop.f32.mrf.mxu0  ;;  %v3745_v20 = vadd.f32 %v12072_v60, %v12071_v35  ;;  %v3815_v47 = vadd.f32 %v10480_v43, %v12073_v55 }
 0x50c   :  { %12065 = vst [vmem:[#allocation40_spill] sm:$0xff] %v10640_v33  ;;  %12066 = vst [vmem:[#allocation87_spill] sm:$0xff] %v10642_v54  ;;  %v3984_v51 = vadd.f32 %v3983_v0, %v3811_v21  ;;  %4539 = vrot.lane.b32.xlu0 %v10640_v33, %s7049_s3  ;;  %v12077_v21 = vld [vmem:[#allocation81_spill] sm:$0xff] }
 0x50d   :  { %12067 = vst [vmem:[#allocation58_spill] sm:$0xff] %v10644_v31  ;;  %v5928_v6 = vpop.f32.mrf.mxu1  ;;  %v3985_v19 = vpop.f32.mrf.mxu0  ;;  %v3918_v0 = vadd.f32 %v12077_v21, %v3745_v20  ;;  %v12083_v21 = vld [vmem:[#allocation108_spill] sm:$0xff] }
 0x50e   :  { %v10657_v62 = vmax.f32 %v3914_v38, %v3984_v51  ;;  %v10659_v27 = vadd.f32 %v5928_v6, %v5927_v7  ;;  %v10661_v48 = vadd.f32 %v3985_v19, %v3813_v5  ;;  %v12080_v38 = vld [vmem:[#allocation92_spill] sm:$0xff] }
 0x50f   :  { %v5930_v28 = vpop.f32.mrf.mxu1  ;;  %v3987_v30 = vpop.f32.mrf.mxu0  ;;  %v12081_v6 = vld [vmem:[#allocation60_spill] sm:$0xff] }
 0x510   :  { %12074 = vst [vmem:[#allocation80_spill] sm:$0xff] %v10657_v62  ;;  %12075 = vst [vmem:[#allocation20_spill] sm:$0xff] %v10659_v27  ;;  %v3988_v15 = vadd.f32 %v3987_v30, %v3815_v47  ;;  %4543 = vrot.lane.b32.xlu0 %v10657_v62, %s7049_s3  ;;  %v3775_v19 = vadd.f32 %v12081_v6, %v12080_v38  ;;  %v12082_v30 = vld [vmem:[#allocation88_spill] sm:$0xff] }
 0x511   :  { %12076 = vst [vmem:[#allocation53_spill] sm:$0xff] %v10661_v48  ;;  %v5931_v35 = vpop.f32.mrf.mxu1  ;;  %v5994_v60 = vpop.f32.mrf.mxu0  ;;  %v3705_v36 = vadd.f32 %v12083_v21, %v12082_v30 }
 0x512   :  { %v10668_v43 = vmax.f32 %v3918_v0, %v3988_v15  ;;  %v10670_v51 = vadd.f32 %v5931_v35, %v5930_v28  ;;  %v3948_v9 = vadd.f32 %v10533_v17, %v3775_v19  ;;  %v12087_v19 = vld [vmem:[#allocation86_spill] sm:$0xff] }
 0x513   :  { %v5933_v7 = vpop.f32.mrf.mxu1  ;;  %v5995_v5 = vpop.f32.mrf.mxu0  ;;  %v3878_v38 = vadd.f32 %v12085_v3, %v3705_v36 }
 0x514   :  { %12079 = vst [vmem:[#allocation24_spill] sm:$0xff] %v10668_v43  ;;  %v5996_v55 = vadd.f32 %v5995_v5, %v5994_v60  ;;  %4547 = vrot.lane.b32.xlu0 %v10668_v43, %s7049_s3 }
 0x515   :  { %v5934_v20 = vpop.f32.mrf.mxu1  ;;  %v5997_v47 = vpop.f32.mrf.mxu0  ;;  %v10687_v24 = vmax.f32 %v3878_v38, %v3948_v9 }
 0x516   :  { %v10679_v15 = vadd.f32 %v5934_v20, %v5933_v7  ;;  %v10682_v28 = vadd.f32 %v5996_v55, %v10495_v34  ;;  %v12088_v55 = vld [vmem:[#allocation50_spill] sm:$0xff] }
 0x517   :  { %v5936_v0 = vpop.f32.mrf.mxu1  ;;  %v5998_v35 = vpop.f32.mrf.mxu0  ;;  %12086 = vst [vmem:[#allocation57_spill] sm:$0xff] %v10687_v24  ;;  %v3765_v20 = vadd.f32 %v12088_v55, %v12087_v19 }
 0x518   :  { %12084 = vst [vmem:[#allocation52_spill] sm:$0xff] %v10679_v15  ;;  %v5999_v60 = vadd.f32 %v5998_v35, %v5997_v47  ;;  %4511 = vrot.lane.b32.xlu0 %v10527_v22, %s7049_s3  ;;  %v12089_v47 = vld [vmem:[#allocation25_spill] sm:$0xff]  ;;  %v12090_v35 = vld [vmem:[#allocation110_spill] sm:$0xff]  ;;  %v12091_v22 = vld [vmem:[#allocation43_spill] sm:$0xff] }
 0x519   :  { %v5937_v5 = vpop.f32.mrf.mxu1  ;;  %v6000_v6 = vpop.f32.mrf.mxu0  ;;  %v3695_v9 = vadd.f32 %v12090_v35, %v12089_v47 }
 0x51a   :  { %v10689_v30 = vadd.f32 %v5937_v5, %v5936_v0  ;;  %v10692_v17 = vadd.f32 %v5999_v60, %v10506_v57  ;;  %v3938_v0 = vadd.f32 %v10510_v45, %v3765_v20  ;;  %v12093_v20 = vld [vmem:[#allocation91_spill] sm:$0xff] }
 0x51b   :  { %v5939_v7 = vpop.f32.mrf.mxu1  ;;  %v6001_v34 = vpop.f32.mrf.mxu0  ;;  %v3868_v19 = vadd.f32 %v12091_v22, %v3695_v9  ;;  %v12095_v9 = vld [vmem:[#allocation61_spill] sm:$0xff] }
 0x51c   :  { %v6002_v21 = vadd.f32 %v6001_v34, %v6000_v6  ;;  %4515 = vrot.lane.b32.xlu0 %v10687_v24, %s7049_s3 }
 0x51d   :  { %v5940_v36 = vpop.f32.mrf.mxu1  ;;  %v6003_v3 = vpop.f32.mrf.mxu0  ;;  %v10709_v24 = vmax.f32 %v3868_v19, %v3938_v0 }
 0x51e   :  { %v10701_v38 = vadd.f32 %v5940_v36, %v5939_v7  ;;  %v10704_v57 = vadd.f32 %v6002_v21, %v10518_v59  ;;  %v12094_v21 = vld [vmem:[#allocation22_spill] sm:$0xff] }
 0x51f   :  { %v5942_v60 = vpop.f32.mrf.mxu1  ;;  %v6004_v5 = vpop.f32.mrf.mxu0  ;;  %12092 = vst [vmem:[#allocation12_spill] sm:$0xff] %v10709_v24  ;;  %v3755_v36 = vadd.f32 %v12094_v21, %v12093_v20 }
 0x520   :  { %v6005_v6 = vadd.f32 %v6004_v5, %v6003_v3  ;;  %4503 = vrot.lane.b32.xlu0 %v10504_v26, %s7049_s3  ;;  %v12096_v5 = vld [vmem:[#allocation41_spill] sm:$0xff] }
 0x521   :  { %v5943_v34 = vpop.f32.mrf.mxu1  ;;  %v6006_v55 = vpop.f32.mrf.mxu0  ;;  %v3685_v0 = vadd.f32 %v12096_v5, %v12095_v9  ;;  %v12097_v26 = vld [vmem:[#allocation37_spill] sm:$0xff] }
 0x522   :  { %v10711_v47 = vadd.f32 %v5943_v34, %v5942_v60  ;;  %v10714_v45 = vadd.f32 %v6005_v6, %v10529_v39  ;;  %v3928_v60 = vadd.f32 %v10487_v11, %v3755_v36 }
 0x523   :  { %v5945_v7 = vpop.f32.mrf.mxu1  ;;  %v6007_v59 = vpop.f32.mrf.mxu0  ;;  %v3858_v20 = vadd.f32 %v12097_v26, %v3685_v0 }
 0x524   :  { %v6008_v35 = vadd.f32 %v6007_v59, %v6006_v55  ;;  %4507 = vrot.lane.b32.xlu0 %v10709_v24, %s7049_s3 }
 0x525   :  { %v5946_v22 = vpop.f32.mrf.mxu1  ;;  %v6009_v3 = vpop.f32.mrf.mxu0  ;;  %v10733_v24 = vmax.f32 %v3858_v20, %v3928_v60 }
 0x526   :  { %v10723_v19 = vadd.f32 %v5946_v22, %v5945_v7  ;;  %v10726_v39 = vadd.f32 %v6008_v35, %v10541_v4 }
 0x527   :  { %v5948_v6 = vpop.f32.mrf.mxu1  ;;  %v6010_v34 = vpop.f32.mrf.mxu0  ;;  %12098 = vst [vmem:[#allocation19_spill] sm:$0xff] %v10733_v24 }
 0x528   :  { %v6011_v55 = vadd.f32 %v6010_v34, %v6009_v3  ;;  %4495 = vrot.lane.b32.xlu0 %v10483_v61, %s7049_s3 }
 0x529   :  { %v5949_v59 = vpop.f32.mrf.mxu1  ;;  %v10731_v21 = vpop.f32.mrf.mxu0 }
 0x52a   :  { %v10735_v9 = vadd.f32 %v5949_v59, %v5948_v6  ;;  %v10738_v11 = vadd.f32 %v6011_v55, %v10557_v18 }
 0x52b   :  { %v5951_v4 = vpop.f32.mrf.mxu1  ;;  %v10740_v7 = vpop.f32.mrf.mxu0 }
 0x52c   :  { %4499 = vrot.lane.b32.xlu0 %v10733_v24, %s7049_s3 }
 0x52d   :  { %v5952_v26 = vpop.f32.mrf.mxu1  ;;  %v10744_v36 = vpop.f32.mrf.mxu0 }
 0x52e   :  { %v10746_v35 = vadd.f32 %v5952_v26, %v5951_v4 }
 0x52f   :  { %v5954_v22 = vpop.f32.mrf.mxu1  ;;  %v10748_v3 = vpop.f32.mrf.mxu0 }
 0x531   :  { %v5955_v5 = vpop.f32.mrf.mxu1  ;;  %v10750_v0 = vpop.f32.mrf.mxu0 }
 0x532   :  { %v10752_v60 = vadd.f32 %v5955_v5, %v5954_v22 }
 0x533   :  { %v5957_v18 = vpop.f32.mrf.mxu1  ;;  %v10754_v6 = vpop.f32.mrf.mxu0 }
 0x535   :  { %v5958_v34 = vpop.f32.mrf.mxu1  ;;  %v10756_v20 = vpop.f32.mrf.mxu0 }
 0x536   :  { %v10758_v55 = vadd.f32 %v5958_v34, %v5957_v18 }
 0x537   :  { %v5960_v59 = vpop.f32.mrf.mxu1  ;;  %v10760_v24 = vpop.f32.mrf.mxu0 }
 0x539   :  { %v5961_v4 = vpop.f32.mrf.mxu1  ;;  %v10762_v26 = vpop.f32.mrf.mxu0 }
 0x53a   :  { %v10764_v61 = vadd.f32 %v5961_v4, %v5960_v59 }
 0x53b   :  { %v5963_v1 = vpop.f32.mrf.mxu1  ;;  %v10766_v46 = vpop.f32.mrf.mxu0 }
 0x53d   :  { %v5964_v22 = vpop.f32.mrf.mxu1  ;;  %v10768_v5 = vpop.f32.mrf.mxu0 }
 0x53e   :  { %12099 = vst [vmem:[#allocation23_spill] sm:$0xff] %v10768_v5  ;;  %v10770_v23 = vadd.f32 %v5964_v22, %v5963_v1 }
 0x53f   :  { %v5966_v40 = vpop.f32.mrf.mxu1  ;;  %v10772_v42 = vpop.f32.mrf.mxu0 }
 0x540   :  { %12100 = vst [vmem:[#allocation54_spill] sm:$0xff] %v10772_v42 }
 0x541   :  { %v5967_v18 = vpop.f32.mrf.mxu1  ;;  %v10774_v34 = vpop.f32.mrf.mxu0 }
 0x542   :  { %v10776_v48 = vadd.f32 %v5967_v18, %v5966_v40 }
 0x543   :  { %v5969_v53 = vpop.f32.mrf.mxu1  ;;  %v10778_v43 = vpop.f32.mrf.mxu0 }
 0x544   :  { %12101 = vst [vmem:[#allocation69_spill] sm:$0xff] %v10776_v48 }
 0x545   :  { %v5970_v59 = vpop.f32.mrf.mxu1  ;;  %v10780_v4 = vpop.f32.mrf.mxu0 }
 0x546   :  { %v10782_v12 = vadd.f32 %v5970_v59, %v5969_v53 }
 0x547   :  { %v5972_v52 = vpop.f32.mrf.mxu1  ;;  %v10784_v31 = vpop.f32.mrf.mxu0 }
 0x548   :  { %12102 = vst [vmem:[#allocation49_spill] sm:$0xff] %v10782_v12 }
 0x549   :  { %v5973_v1 = vpop.f32.mrf.mxu1  ;;  %v6036_v22 = vpop.f32.mrf.mxu0 }
 0x54a   :  { %v10786_v49 = vadd.f32 %v5973_v1, %v5972_v52 }
 0x54b   :  { %v5975_v62 = vpop.f32.mrf.mxu1  ;;  %v6037_v33 = vpop.f32.mrf.mxu0 }
 0x54c   :  { %12103 = vst [vmem:[#allocation21_spill] sm:$0xff] %v10786_v49  ;;  %v6038_v32 = vadd.f32 %v6037_v33, %v6036_v22 }
 0x54d   :  { %v5976_v40 = vpop.f32.mrf.mxu1  ;;  %v6039_v18 = vpop.f32.mrf.mxu0 }
 0x54e   :  { %v10788_v29 = vadd.f32 %v5976_v40, %v5975_v62  ;;  %v4226_v8 = vadd.f32 %v6038_v32, %v10689_v30 }
 0x54f   :  { %v6189_v41 = vpop.f32.mrf.mxu1  ;;  %v6040_v63 = vpop.f32.mrf.mxu0 }
 0x550   :  { %12104 = vst [vmem:[#allocation17_spill] sm:$0xff] %v10788_v29  ;;  %v10792_v53 = vadd.f32 %v6189_v41, %v10704_v57  ;;  %v6041_v59 = vadd.f32 %v6040_v63, %v6039_v18 }
 0x551   :  { %v4314_v16 = vpop.f32.mrf.mxu1  ;;  %v6042_v13 = vpop.f32.mrf.mxu0 }
 0x552   :  { %v10795_v52 = vadd.f32 %v4314_v16, %v10682_v28  ;;  %v4229_v1 = vadd.f32 %v6041_v59, %v10701_v38 }
 0x553   :  { %v6190_v33 = vpop.f32.mrf.mxu1  ;;  %v6043_v22 = vpop.f32.mrf.mxu0 }
 0x554   :  { %v10799_v62 = vadd.f32 %v6190_v33, %v10714_v45  ;;  %v6044_v54 = vadd.f32 %v6043_v22, %v6042_v13  ;;  %v6020_v13 = vadd.f32 %v10754_v6, %v10750_v0 }
 0x555   :  { %v4317_v40 = vpop.f32.mrf.mxu1  ;;  %v6045_v32 = vpop.f32.mrf.mxu0 }
 0x556   :  { %v10802_v30 = vadd.f32 %v4317_v40, %v10692_v17  ;;  %v4202_v0 = vadd.f32 %v6020_v13, %v10608_v37 }
 0x557   :  { %v10804_v41 = vpop.f32.mrf.mxu1  ;;  %v6046_v63 = vpop.f32.mrf.mxu0 }
 0x559   :  { %v4330_v57 = vpop.f32.mrf.mxu1  ;;  %v6048_v18 = vpop.f32.mrf.mxu0 }
 0x55a   :  { %v10807_v16 = vadd.f32 %v4330_v57, %v10726_v39 }
 0x55b   :  { %v10809_v28 = vpop.f32.mrf.mxu1  ;;  %v6049_v38 = vpop.f32.mrf.mxu0 }
 0x55c   :  { %12105 = vst [vmem:[#allocation28_spill] sm:$0xff] %v10809_v28 }
 0x55d   :  { %v4333_v59 = vpop.f32.mrf.mxu1  ;;  %v6051_v25 = vpop.f32.mrf.mxu0 }
 0x55e   :  { %v10812_v45 = vadd.f32 %v4333_v59, %v10738_v11  ;;  %v6050_v11 = vadd.f32 %v6049_v38, %v6048_v18  ;;  %v6047_v18 = vadd.f32 %v6046_v63, %v6045_v32  ;;  %v4234_v59 = vadd.f32 %v6044_v54, %v10711_v47 }
 0x55f   :  { %v10814_v33 = vpop.f32.mrf.mxu1  ;;  %v6052_v17 = vpop.f32.mrf.mxu0  ;;  %v6014_v32 = vadd.f32 %v10740_v7, %v10731_v21 }
 0x560   :  { %12106 = vst [vmem:[#allocation27_spill] sm:$0xff] %v10814_v33  ;;  %v6053_v49 = vadd.f32 %v6052_v17, %v6051_v25 }
 0x561   :  { %v4346_v40 = vpop.f32.mrf.mxu1  ;;  %v6054_v58 = vpop.f32.mrf.mxu0 }
 0x563   :  { %v10816_v50 = vpop.f32.mrf.mxu1  ;;  %v6055_v44 = vpop.f32.mrf.mxu0 }
 0x564   :  { %12107 = vst [vmem:[#allocation62_spill] sm:$0xff] %v10816_v50 }
 0x565   :  { %v10818_v14 = vpop.f32.mrf.mxu1  ;;  %v6057_v39 = vpop.f32.mrf.mxu0 }
 0x567   :  { %v6201_v57 = vpop.f32.mrf.mxu1  ;;  %v6058_v12 = vpop.f32.mrf.mxu0 }
 0x568   :  { %v10820_v27 = vadd.f32 %v6201_v57, %v4226_v8  ;;  %v4242_v57 = vadd.f32 %v6050_v11, %v10735_v9  ;;  %v4245_v9 = vadd.f32 %v6053_v49, %v10746_v35  ;;  %v6056_v11 = vadd.f32 %v6055_v44, %v6054_v58 }
 0x569   :  { %v10822_v29 = vpop.f32.mrf.mxu1  ;;  %v6060_v15 = vpop.f32.mrf.mxu0  ;;  %v6017_v58 = vadd.f32 %v10748_v3, %v10744_v36 }
 0x56a   :  { %12108 = vst [vmem:[#allocation59_spill] sm:$0xff] %v10822_v29 }
 0x56b   :  { %v6202_v33 = vpop.f32.mrf.mxu1  ;;  %v6061_v48 = vpop.f32.mrf.mxu0 }
 0x56c   :  { %v10826_v42 = vadd.f32 %v6202_v33, %v4229_v1  ;;  %v6062_v33 = vadd.f32 %v6061_v48, %v6060_v15  ;;  %v4237_v48 = vadd.f32 %v6047_v18, %v10723_v19  ;;  %v6023_v15 = vadd.f32 %v10760_v24, %v10756_v20 }
 0x56d   :  { %v10828_v50 = vpop.f32.mrf.mxu1  ;;  %v6063_v5 = vpop.f32.mrf.mxu0  ;;  %v4194_v19 = vadd.f32 %v6014_v32, %v10574_v10  ;;  %v6059_v20 = vadd.f32 %v6058_v12, %v6057_v39  ;;  %v6032_v18 = vadd.f32 %v10778_v43, %v10774_v34  ;;  %v6026_v12 = vadd.f32 %v10766_v46, %v10762_v26  ;;  %v12109_v46 = vld [vmem:[#allocation28_spill] sm:$0xff] }
 0x56e   :  { %v4430_v8 = vmax.f32 %v10802_v30, %v10826_v42  ;;  %v4258_v44 = vadd.f32 %v6062_v33, %v10764_v61  ;;  %v4205_v61 = vadd.f32 %v6023_v15, %v10625_v56  ;;  %v4197_v39 = vadd.f32 %v6017_v58, %v10591_v2  ;;  %v12125_v42 = vld [vmem:[#allocation55_spill] sm:$0xff]  ;;  %v12126_v30 = vld [vmem:[#allocation97_spill] sm:$0xff] }
 0x56f   :  { %v6205_v29 = vpop.f32.mrf.mxu1  ;;  %v6064_v28 = vpop.f32.mrf.mxu0  ;;  %v4339_v36 = vadd.f32 %v10804_v41, %v4194_v19  ;;  %v6035_v41 = vadd.f32 %v10784_v31, %v10780_v4 }
 0x570   :  { %v10833_v38 = vadd.f32 %v6205_v29, %v4242_v57  ;;  %v6065_v35 = vadd.f32 %v6064_v28, %v6063_v5  ;;  %v4250_v28 = vadd.f32 %v6056_v11, %v10752_v60  ;;  %v4350_v60 = vadd.f32 %v10818_v14, %v4205_v61  ;;  %v12110_v14 = vld [vmem:[#allocation21_spill] sm:$0xff] }
 0x571   :  { %v4378_v1 = vpop.f32.mrf.mxu1  ;;  %v6066_v22 = vpop.f32.mrf.mxu0  ;;  %v4342_v26 = vadd.f32 %v12109_v46, %v4197_v39  ;;  %v12119_v39 = vld [vmem:[#allocation20_spill] sm:$0xff]  ;;  %v12128_v46 = vld [vmem:[#allocation26_spill] sm:$0xff] }
 0x572   :  { %v4439_v25 = vmax.f32 %v10807_v16, %v10833_v38  ;;  %v10840_v17 = vadd.f32 %v4378_v1, %v4234_v59  ;;  %v4347_v59 = vadd.f32 %v4346_v40, %v4202_v0  ;;  %v4261_v40 = vadd.f32 %v6065_v35, %v10770_v23  ;;  %v12112_v0 = vld [vmem:[#allocation54_spill] sm:$0xff]  ;;  %v12113_v35 = vld [vmem:[#allocation87_spill] sm:$0xff]  ;;  %v4520_v16 = vpop.permute.xlu0 %4519 }
 0x573   :  { %v6206_v29 = vpop.f32.mrf.mxu1  ;;  %v6067_v63 = vpop.f32.mrf.mxu0  ;;  %v4218_v23 = vadd.f32 %v6032_v18, %v10670_v51  ;;  %v12115_v51 = vld [vmem:[#allocation69_spill] sm:$0xff] }
 0x574   :  { %v4433_v54 = vmax.f32 %v10792_v53, %v10840_v17  ;;  %v10847_v47 = vadd.f32 %v6206_v29, %v4245_v9  ;;  %v6068_v33 = vadd.f32 %v6067_v63, %v6066_v22  ;;  %v4253_v29 = vadd.f32 %v6059_v20, %v10758_v55  ;;  %v12111_v63 = vld [vmem:[#allocation23_spill] sm:$0xff] }
 0x575   :  { %v4381_v6 = vpop.f32.mrf.mxu1  ;;  %v6069_v49 = vpop.f32.mrf.mxu0  ;;  %v4210_v55 = vadd.f32 %v6026_v12, %v12113_v35 }
 0x576   :  { %v4442_v21 = vmax.f32 %v10812_v45, %v10847_v47  ;;  %v10855_v7 = vadd.f32 %v4381_v6, %v4237_v48  ;;  %v6029_v6 = vadd.f32 %v12112_v0, %v12111_v63  ;;  %v4266_v19 = vadd.f32 %v6068_v33, %v12115_v51  ;;  %v4524_v45 = vpop.permute.xlu0 %4523 }
 0x577   :  { %v6209_v57 = vpop.f32.mrf.mxu1  ;;  %v6070_v24 = vpop.f32.mrf.mxu0 }
 0x578   :  { %v4436_v37 = vmax.f32 %v10799_v62, %v10855_v7  ;;  %v4403_v5 = vadd.f32 %v6209_v57, %v4258_v44  ;;  %v12114_v44 = vld [vmem:[#allocation59_spill] sm:$0xff] }
 0x579   :  { %v4394_v13 = vpop.f32.mrf.mxu1  ;;  %v6072_v1 = vpop.f32.mrf.mxu0  ;;  %v4363_v58 = vadd.f32 %v12114_v44, %v4218_v23  ;;  %v4622_v62 = vld [vmem:[%s11280_s4] sm:$0x3]  ;;  %v12132_v44 = vld [vmem:[#allocation6_spill] sm:$0xff] }
 0x57a   :  { %v4451_v10 = vmax.f32 %v4347_v59, %v4403_v5  ;;  %v4395_v3 = vadd.f32 %v4394_v13, %v4250_v28  ;;  %v6071_v59 = vadd.f32 %v6070_v24, %v6069_v49  ;;  %v12116_v28 = vld [vmem:[#allocation52_spill] sm:$0xff]  ;;  %v12117_v13 = vld [vmem:[#allocation27_spill] sm:$0xff]  ;;  %v4528_v38 = vpop.permute.xlu0 %4527 }
 0x57b   :  { %v6210_v9 = vpop.f32.mrf.mxu1  ;;  %v6073_v43 = vpop.f32.mrf.mxu0  ;;  %v4221_v18 = vadd.f32 %v6035_v41, %v12116_v28 }
 0x57c   :  { %v4445_v34 = vmax.f32 %v4339_v36, %v4395_v3  ;;  %v4406_v56 = vadd.f32 %v6210_v9, %v4261_v40  ;;  %v6074_v32 = vadd.f32 %v6073_v43, %v6072_v1  ;;  %v4355_v1 = vadd.f32 %v12117_v13, %v4210_v55  ;;  %v12118_v40 = vld [vmem:[#allocation17_spill] sm:$0xff]  ;;  %v12131_v55 = vld [vmem:[#allocation70_spill] sm:$0xff] }
 0x57d   :  { %v4397_v11 = vpop.f32.mrf.mxu1  ;;  %v6075_v48 = vpop.f32.mrf.mxu0  ;;  %v4366_v33 = vadd.f32 %v10828_v50, %v4221_v18  ;;  %v12120_v43 = vld [vmem:[#allocation49_spill] sm:$0xff]  ;;  %v12122_v50 = vmax.f32 %v10795_v52, %v10820_v27 }
 0x57e   :  { %v4454_v2 = vmax.f32 %v4350_v60, %v4406_v56  ;;  %v4398_v15 = vadd.f32 %v4397_v11, %v4253_v29  ;;  %4521 = vrot.lane.b32.xlu1 %v4445_v34, %s7049_s3  ;;  %v4274_v22 = vadd.f32 %v6074_v32, %v12110_v14  ;;  %v4213_v60 = vadd.f32 %v6029_v6, %v12119_v39  ;;  %v12121_v32 = vld [vmem:[#allocation62_spill] sm:$0xff]  ;;  %v4532_v53 = vpop.permute.xlu0 %4531  ;;  %v12123_v52 = vld [vmem:[#allocation85_spill] sm:$0xff] }
 0x57f   :  { %v6213_v31 = vpop.f32.mrf.mxu1  ;;  %v6076_v4 = vpop.f32.mrf.mxu0  ;;  %v4269_v34 = vadd.f32 %v6071_v59, %v12120_v43 }
 0x580   :  { %v4448_v57 = vmax.f32 %v4342_v26, %v4398_v15  ;;  %v4419_v20 = vadd.f32 %v6213_v31, %v4274_v22  ;;  %v6077_v5 = vadd.f32 %v6076_v4, %v6075_v48  ;;  %v4358_v29 = vadd.f32 %v12121_v32, %v4213_v60  ;;  %v12129_v26 = vld [vmem:[#allocation104_spill] sm:$0xff] }
 0x581   :  { %v4410_v61 = vpop.f32.mrf.mxu1 }
 0x582   :  { %v4463_v36 = vmax.f32 %v4363_v58, %v4419_v20  ;;  %v4411_v3 = vadd.f32 %v4410_v61, %v4266_v19  ;;  %4525 = vrot.lane.b32.xlu1 %v4448_v57, %s7049_s3  ;;  %v4277_v12 = vadd.f32 %v6077_v5, %v12118_v40  ;;  %v12133_v58 = vmax.f32 %v12131_v55, %v12132_v44  ;;  %v12134_v57 = vld [vmem:[#allocation39_spill] sm:$0xff]  ;;  %v12135_v20 = vld [vmem:[#allocation76_spill] sm:$0xff] }
 0x583   :  { %v6214_v9 = vpop.f32.mrf.mxu1  ;;  %v12136_v5 = vmax.f32 %v12134_v57, %v12135_v20  ;;  %v12137_v40 = vld [vmem:[#allocation8_spill] sm:$0xff]  ;;  %v12156_v57 = vld [vmem:[#allocation47_spill] sm:$0xff] }
 0x584   :  { %v4457_v49 = vmax.f32 %v4355_v1, %v4411_v3  ;;  %v4422_v24 = vadd.f32 %v6214_v9, %v4277_v12  ;;  %v12138_v12 = vld [vmem:[#allocation13_spill] sm:$0xff] }
 0x585   :  { %v4413_v56 = vpop.f32.mrf.mxu1  ;;  %v12139_v39 = vmax.f32 %v12137_v40, %v12138_v12  ;;  %v12157_v12 = vld [vmem:[#allocation72_spill] sm:$0xff] }
 0x586   :  { %v4466_v41 = vmax.f32 %v4366_v33, %v4422_v24  ;;  %v4414_v23 = vadd.f32 %v4413_v56, %v4269_v34  ;;  %4529 = vrot.lane.b32.xlu1 %v4451_v10, %s7049_s3  ;;  %v12140_v34 = vld [vmem:[#allocation68_spill] sm:$0xff]  ;;  %v12141_v56 = vld [vmem:[#allocation45_spill] sm:$0xff] }
 0x587   :  { %v12142_v32 = vmax.f32 %v12140_v34, %v12141_v56 }
 0x588   :  { %v4460_v11 = vmax.f32 %v4358_v29, %v4414_v23 }
 0x58a   :  { %4533 = vrot.lane.b32.xlu1 %v4454_v2, %s7049_s3  ;;  %v12130_v2 = vmax.f32 %v12128_v46, %v12129_v26  ;;  %v12150_v46 = vld [vmem:[#allocation65_spill] sm:$0xff] }
 0x58e   :  { %4537 = vrot.lane.b32.xlu1 %v4457_v49, %s7049_s3 }
 0x592   :  { %4541 = vrot.lane.b32.xlu1 %v4460_v11, %s7049_s3  ;;  %v12143_v11 = vld [vmem:[#allocation40_spill] sm:$0xff] }
 0x596   :  { %4545 = vrot.lane.b32.xlu1 %v4463_v36, %s7049_s3 }
 0x59a   :  { %4549 = vrot.lane.b32.xlu1 %v4466_v41, %s7049_s3 }
 0x59e   :  { %4513 = vrot.lane.b32.xlu1 %v4439_v25, %s7049_s3  ;;  %v4536_v25 = vpop.permute.xlu0 %4535 }
 0x5a2   :  { %4517 = vrot.lane.b32.xlu1 %v4442_v21, %s7049_s3  ;;  %v4540_v7 = vpop.permute.xlu0 %4539 }
 0x5a6   :  { %4505 = vrot.lane.b32.xlu1 %v4433_v54, %s7049_s3  ;;  %v12124_v54 = vsub.s32 0, %v12123_v52  ;;  %v4544_v0 = vpop.permute.xlu0 %4543 }
 0x5a8   :  { %v10932_v47 = vrot.slane %v4622_v62, %v12124_v54  ;;  %v12146_v54 = vld [vmem:[#allocation58_spill] sm:$0xff] }
 0x5aa   :  { %4509 = vrot.lane.b32.xlu1 %v4436_v37, %s7049_s3  ;;  %v4548_v18 = vpop.permute.xlu0 %4547 }
 0x5ae   :  { %4497 = vrot.lane.b32.xlu1 %v12122_v50, %s7049_s3  ;;  %v4512_v24 = vpop.permute.xlu0 %4511 }
 0x5b2   :  { %4501 = vrot.lane.b32.xlu1 %v4430_v8, %s7049_s3  ;;  %v12127_v8 = vmax.f32 %v12125_v42, %v12126_v30 }
 0x5f0   :  { %v10926_v17 = vpop.permute.xlu1 %4521 }
 0x5f1   :  { %v4558_v27 = vsel %vm4551_vm9, %v4520_v16, %v10926_v17 }
 0x5f2   :  { %v4606_v21 = vmax.f32 %v12127_v8, %v4558_v27  ;;  %v12145_v27 = vld [vmem:[#allocation73_spill] sm:$0xff]  ;;  %v12148_v8 = vsub.s32 1, %v12123_v52  ;;  %v12152_v52 = vld [vmem:[#allocation74_spill] sm:$0xff] }
 0x5f3   :  { %v12147_v42 = vmax.f32 %v12145_v27, %v12146_v54 }
 0x5f4   :  { %v10937_v37 = vpop.permute.xlu1 %4525  ;;  %v4646_v48 = vadd.f32 %v10932_v47, %v4606_v21  ;;  %v10978_v21 = vrot.slane %v4622_v62, %v12148_v8  ;;  %v12153_v62 = vld [vmem:[#allocation53_spill] sm:$0xff] }
 0x5f5   :  { %v4559_v10 = vsel %vm4551_vm9, %v4524_v45, %v10937_v37  ;;  %v12144_v45 = vld [vmem:[#allocation80_spill] sm:$0xff]  ;;  %v12154_v44 = vmax.f32 %v12152_v52, %v12153_v62  ;;  %v4609_v20 = vmax.f32 %v12156_v57, %v10937_v37 }
 0x5f6   :  { %v4608_v15 = vmax.f32 %v12130_v2, %v4559_v10  ;;  %v4674_v6 = vmax.f32 %v4646_v48, 0.0  ;;  %v4516_v48 = vpop.permute.xlu0 %4515  ;;  %v12170_v57 = vld [vmem:[#allocation12_spill] sm:$0xff] }
 0x5f8   :  { %v4648_v14 = vadd.f32 %v10932_v47, %v4608_v15  ;;  %v4530_v22 = vpop.permute.xlu1 %4529 }
 0x5f9   :  { %v4560_v63 = vsel %vm4551_vm9, %v4528_v38, %v4530_v22 }
 0x5fa   :  { %v4676_v35 = vmax.f32 %v4648_v14, 0.0  ;;  %v4610_v31 = vmax.f32 %v12133_v58, %v4560_v63 }
 0x5fc   :  { %v10950_v4 = vpack.c.bf16 %v4676_v35, %v4674_v6  ;;  %v4534_v51 = vpop.permute.xlu1 %4533  ;;  %v4650_v59 = vadd.f32 %v10932_v47, %v4610_v31  ;;  %v12151_v6 = vld [vmem:[#allocation24_spill] sm:$0xff]  ;;  %v12155_v31 = vld [vmem:[#allocation15_spill] sm:$0xff] }
 0x5fd   :  { %v4561_v19 = vsel %vm4551_vm9, %v4532_v53, %v4534_v51  ;;  %v4613_v26 = vmax.f32 %v12150_v46, %v4534_v51 }
 0x5fe   :  { %v4612_v28 = vmax.f32 %v12136_v5, %v4561_v19  ;;  %v4678_v36 = vmax.f32 %v4650_v59, 0.0  ;;  %v4611_v19 = vmax.f32 %v12155_v31, %v4530_v22 }
 0x5ff   :  { %v4653_v5 = vadd.f32 %v10978_v21, %v4613_v26 }
 0x600   :  { %v4652_v61 = vadd.f32 %v10932_v47, %v4612_v28  ;;  %v4538_v13 = vpop.permute.xlu1 %4537 }
 0x601   :  { %v4562_v1 = vsel %vm4551_vm9, %v4536_v25, %v4538_v13 }
 0x602   :  { %v4680_v3 = vmax.f32 %v4652_v61, 0.0  ;;  %v4614_v60 = vmax.f32 %v12139_v39, %v4562_v1  ;;  %v12158_v39 = vld [vmem:[#allocation64_spill] sm:$0xff] }
 0x604   :  { %v10962_v9 = vpack.c.bf16 %v4680_v3, %v4678_v36  ;;  %v4542_v33 = vpop.permute.xlu1 %4541  ;;  %v4654_v43 = vadd.f32 %v10932_v47, %v4614_v60  ;;  %v4504_v3 = vpop.permute.xlu0 %4503  ;;  %v12159_v60 = vmax.f32 %v12157_v12, %v12158_v39 }
 0x605   :  { %v4563_v49 = vsel %vm4551_vm9, %v4540_v7, %v4542_v33  ;;  %v4617_v50 = vmax.f32 %v12143_v11, %v4542_v33  ;;  %v12149_v7 = vld [vmem:[#allocation9_spill] sm:$0xff] }
 0x606   :  { %v4616_v29 = vmax.f32 %v12142_v32, %v4563_v49  ;;  %v4682_v53 = vmax.f32 %v4654_v43, 0.0  ;;  %v4615_v10 = vmax.f32 %v12149_v7, %v4538_v13  ;;  %v12160_v49 = vld [vmem:[#allocation16_spill] sm:$0xff]  ;;  %v4651_v43 = vadd.f32 %v10978_v21, %v4611_v19  ;;  %v12161_v11 = vld [vmem:[#allocation57_spill] sm:$0xff] }
 0x607   :  { %v4657_v14 = vadd.f32 %v10978_v21, %v4617_v50  ;;  %v4607_v37 = vmax.f32 %v12160_v49, %v10926_v17  ;;  %v4649_v32 = vadd.f32 %v10978_v21, %v4609_v20 }
 0x608   :  { %v4656_v41 = vadd.f32 %v10932_v47, %v4616_v29  ;;  %v4546_v23 = vpop.permute.xlu1 %4545  ;;  %v4655_v51 = vadd.f32 %v10978_v21, %v4615_v10  ;;  %v4679_v54 = vmax.f32 %v4651_v43, 0.0  ;;  %v4508_v8 = vpop.permute.xlu0 %4507 }
 0x609   :  { %v4564_v16 = vsel %vm4551_vm9, %v4544_v0, %v4546_v23  ;;  %v4619_v38 = vmax.f32 %v12144_v45, %v4546_v23  ;;  %v4685_v61 = vmax.f32 %v4657_v14, 0.0  ;;  %v4681_v23 = vmax.f32 %v4653_v5, 0.0 }
 0x60a   :  { %v4684_v25 = vmax.f32 %v4656_v41, 0.0  ;;  %v4618_v30 = vmax.f32 %v12147_v42, %v4564_v16  ;;  %v4683_v34 = vmax.f32 %v4655_v51, 0.0  ;;  %v4647_v27 = vadd.f32 %v10978_v21, %v4607_v37  ;;  %v12165_v42 = vld [vmem:[#allocation38_spill] sm:$0xff] }
 0x60b   :  { %v4659_v63 = vadd.f32 %v10978_v21, %v4619_v38  ;;  %v12162_v38 = vld [vmem:[#allocation66_spill] sm:$0xff] }
 0x60c   :  { %v4710_v2 = vpack.c.bf16 %v4684_v25, %v4682_v53  ;;  %v4550_v15 = vpop.permute.xlu1 %4549  ;;  %v4658_v55 = vadd.f32 %v10932_v47, %v4618_v30  ;;  %v4711_v16 = vpack.c.bf16 %v4685_v61, %v4683_v34  ;;  %v12163_v53 = vld [vmem:[#allocation48_spill] sm:$0xff]  ;;  %v4675_v52 = vmax.f32 %v4647_v27, 0.0  ;;  %v12171_v61 = vld [vmem:[#allocation111_spill] sm:$0xff]  ;;  %v12180_v27 = vld [vmem:[#allocation34_spill] sm:$0xff] }
 0x60d   :  { %v4565_v0 = vsel %vm4551_vm9, %v4548_v18, %v4550_v15  ;;  %v4621_v35 = vmax.f32 %v12151_v6, %v4550_v15  ;;  %v4687_v13 = vmax.f32 %v4659_v63, 0.0  ;;  %v12164_v17 = vmax.f32 %v12162_v38, %v12163_v53  ;;  %v12167_v6 = vld [vmem:[#allocation82_spill] sm:$0xff] }
 0x60e   :  { %v4620_v58 = vmax.f32 %v12154_v44, %v4565_v0  ;;  %v4686_v40 = vmax.f32 %v4658_v55, 0.0  ;;  %v4709_v15 = vpack.c.bf16 %v4681_v23, %v4679_v54  ;;  %v12166_v0 = vld [vmem:[#allocation56_spill] sm:$0xff]  ;;  %v12169_v44 = vld [vmem:[#allocation11_spill] sm:$0xff] }
 0x60f   :  { %v4661_v59 = vadd.f32 %v10978_v21, %v4621_v35  ;;  %v12168_v35 = vmax.f32 %v12166_v0, %v12167_v6  ;;  %v6964_v0 = vld [vmem:[%s11281_s5 + $0x20] sm:$0xff]   ;;  %v6965_v6 = vld [vmem:[%s11282_s6 + $0xf8] sm:$0xff]  }
 0x610   :  { %v4660_v28 = vadd.f32 %v10932_v47, %v4620_v58  ;;  %v4514_v18 = vpop.permute.xlu1 %4513  ;;  %6121 = vmatprep.subr.bf16.mxu0 %v6965_v6 }
 0x611   :  { %v4689_v1 = vmax.f32 %v4661_v59, 0.0  ;;  %v4556_v36 = vsel %vm4551_vm9, %v4512_v24, %v4514_v18  ;;  %v4603_v30 = vmax.f32 %v12165_v42, %v4514_v18 }
 0x612   :  { %v4688_v22 = vmax.f32 %v4660_v28, 0.0  ;;  %v4602_v33 = vmax.f32 %v12159_v60, %v4556_v36  ;;  %v4496_v28 = vpop.permute.xlu0 %4495 }
 0x613   :  { %v4713_v56 = vpack.c.bf16 %v4689_v1, %v4687_v13  ;;  %v4643_v62 = vadd.f32 %v10978_v21, %v4603_v30  ;;  %v12172_v13 = vld [vmem:[#allocation42_spill] sm:$0xff] }
 0x614   :  { %v4712_v29 = vpack.c.bf16 %v4688_v22, %v4686_v40  ;;  %v4518_v41 = vpop.permute.xlu1 %4517  ;;  %v4642_v45 = vadd.f32 %v10932_v47, %v4602_v33  ;;  %v12174_v33 = vld [vmem:[#allocation5_spill] sm:$0xff] }
 0x615   :  { %v4557_v24 = vsel %vm4551_vm9, %v4516_v48, %v4518_v41  ;;  %v4605_v50 = vmax.f32 %v12161_v11, %v4518_v41  ;;  %4756 = vmatprep.subr.bf16.mxu1 %v4713_v56  ;;  %v4677_v48 = vmax.f32 %v4649_v32, 0.0  ;;  %v4671_v36 = vmax.f32 %v4643_v62, 0.0  ;;  %v12175_v56 = vld [vmem:[#allocation107_spill] sm:$0xff]  ;;  %v6970_v62 = vld [vmem:[%s11282_s6 + $0x38] sm:$0xff]  }
 0x616   :  { %v4604_v25 = vmax.f32 %v12164_v17, %v4557_v24  ;;  %4757 = vmatpush1.bf16.msra.mxu1 %v4712_v29  ;;  %v4670_v14 = vmax.f32 %v4642_v45, 0.0  ;;  %v12176_v32 = vld [vmem:[#allocation7_spill] sm:$0xff]  ;;  %v4500_v23 = vpop.permute.xlu0 %4499 }
 0x617   :  { %4758 = vmatprep.subr.bf16.mxu1 %v4711_v16  ;;  %v4645_v46 = vadd.f32 %v10978_v21, %v4605_v50  ;;  %v4707_v5 = vpack.c.bf16 %v4677_v48, %v4675_v52  ;;  %v12178_v45 = vld [vmem:[#allocation19_spill] sm:$0xff]  ;;  %v6969_v52 = vld [vmem:[%s11282_s6 + $0x78] sm:$0xff]  }
 0x618   :  { %v4644_v7 = vadd.f32 %v10932_v47, %v4604_v25  ;;  %v4506_v10 = vpop.permute.xlu1 %4505  ;;  %v12179_v25 = vld [vmem:[#allocation35_spill] sm:$0xff] }
 0x619   :  { %v4554_v26 = vsel %vm4551_vm9, %v4504_v3, %v4506_v10  ;;  %v4599_v58 = vmax.f32 %v12169_v44, %v4506_v10  ;;  %v4673_v51 = vmax.f32 %v4645_v46, 0.0  ;;  %v12181_v54 = vmax.f32 %v12179_v25, %v12180_v27  ;;  %v6971_v44 = vld [vmem:[%s11282_s6 + $0x70] sm:$0xff]   ;;  %v7004_v27 = vld [vmem:[%s11282_s6 + $0x80] sm:$0xff]  }
 0x61a   :  { %v4672_v63 = vmax.f32 %v4644_v7, 0.0  ;;  %v4598_v55 = vmax.f32 %v12168_v35, %v4554_v26  ;;  %4759 = vmatpush1.bf16.msra.mxu1 %v4710_v2  ;;  %v12173_v2 = vmax.f32 %v12171_v61, %v12172_v13  ;;  %v6966_v35 = vld [vmem:[%s11282_s6 + $0xb8] sm:$0xff]  }
 0x61b   :  { %4760 = vmatprep.subr.bf16.mxu1 %v4709_v15  ;;  %v4639_v3 = vadd.f32 %v10978_v21, %v4599_v58  ;;  %v4705_v37 = vpack.c.bf16 %v4673_v51, %v4671_v36  ;;  %v6960_v15 = vld [vmem:[%s11281_s5] sm:$0xff]   ;;  %6122 = vmatpush3.bf16.msra.mxu0 %v6966_v35  ;;  %v6968_v58 = vld [vmem:[%s11282_s6 + $0xb0] sm:$0xff]   ;;  %v6975_v51 = vld [vmem:[%s11282_s6 + $0x68] sm:$0xff]  }
 0x61c   :  { %v4704_v31 = vpack.c.bf16 %v4672_v63, %v4670_v14  ;;  %v4510_v19 = vpop.permute.xlu1 %4509  ;;  %v4638_v18 = vadd.f32 %v10932_v47, %v4598_v55  ;;  %v12182_v14 = vmov 0   ;;  %v6963_v63 = vld [vmem:[%s11281_s5 + $0x18] sm:$0xff]   ;;  %v6967_v55 = vld [vmem:[%s11282_s6 + $0xf0] sm:$0xff]   ;;  %v6985_v36 = vld [vmem:[%s11282_s6 + $0x48] sm:$0xff]  }
 0x61d   :  { %v4555_v59 = vsel %vm4551_vm9, %v4508_v8, %v4510_v19  ;;  %v4601_v20 = vmax.f32 %v12170_v57, %v4510_v19  ;;  %v4667_v41 = vmax.f32 %v4639_v3, 0.0  ;;  %6123 = vmatprep.subr.bf16.mxu0 %v6967_v55  ;;  %v6973_v19 = vld [vmem:[%s11282_s6 + $0xe8] sm:$0xff]   ;;  %v6979_v61 = vld [vmem:[%s11282_s6 + $0x58] sm:$0xff]  }
 0x61e   :  { %v4600_v1 = vmax.f32 %v12173_v2, %v4555_v59  ;;  %4761 = vmatpush1.bf16.msra.mxu1 %v10962_v9  ;;  %v4666_v43 = vmax.f32 %v4638_v18, 0.0  ;;  %v12177_v9 = vmax.f32 %v12175_v56, %v12176_v32  ;;  %v6974_v59 = vld [vmem:[%s11282_s6 + $0xa8] sm:$0xff]   ;;  %v6978_v18 = vld [vmem:[%s11282_s6 + $0x20] sm:$0xff]   ;;  %v6980_v13 = vld [vmem:[%s11282_s6 + $0x18] sm:$0xff]  }
 0x61f   :  { %v4641_v40 = vadd.f32 %v10978_v21, %v4601_v20  ;;  %4762 = vmatprep.subr.bf16.mxu1 %v4707_v5  ;;  %6124 = vmatpush3.bf16.msra.mxu0 %v6968_v58  ;;  %v6976_v57 = vld [vmem:[%s11282_s6 + $0x28] sm:$0xff]   ;;  %v6982_v20 = vld [vmem:[%s11282_s6 + $0xe0] sm:$0xff]   ;;  %v6981_v2 = vld [vmem:[%s11282_s6 + $0x50] sm:$0xff]  }
 0x620   :  { %v4640_v22 = vadd.f32 %v10932_v47, %v4600_v1  ;;  %v4498_v12 = vpop.permute.xlu1 %4497  ;;  %6125 = vmatprep.subr.bf16.mxu0 %v6973_v19  ;;  %v6977_v5 = vld [vmem:[%s11282_s6 + $0x60] sm:$0xff]   ;;  %v6983_v1 = vld [vmem:[%s11282_s6 + $0x10] sm:$0xff]   ;;  %v6986_v3 = vld [vmem:[%s11282_s6 + $0x8] sm:$0xff]  }
 0x621   :  { %v4669_v39 = vmax.f32 %v4641_v40, 0.0  ;;  %v4552_v60 = vsel %vm4551_vm9, %v4496_v28, %v4498_v12  ;;  %v4595_v49 = vmax.f32 %v12174_v33, %v4498_v12  ;;  %v6984_v28 = vld [vmem:[%s11282_s6 + $0xa0] sm:$0xff]   ;;  %v6992_v56 = vld [vmem:[%s11282_s6 + $0x98] sm:$0xff]   ;;  %v6995_v58 = vld [vmem:[%s11282_s6 + $0x130] sm:$0xff]  }
 0x622   :  { %v4668_v34 = vmax.f32 %v4640_v22, 0.0  ;;  %v4594_v29 = vmax.f32 %v12177_v9, %v4552_v60  ;;  %4763 = vmatpush1.bf16.msra.mxu1 %v10950_v4  ;;  %v6987_v12 = vld [vmem:[%s11282_s6 + $0x40] sm:$0xff]   ;;  %v6994_v9 = vld [vmem:[%s11282_s6 + $0xd0] sm:$0xff]   ;;  %v6991_v55 = vld [vmem:[%s11282_s6 + $0x138] sm:$0xff]  }
 0x623   :  { %4764 = vmatprep.subr.bf16.mxu1 %v4705_v37  ;;  %v4635_v50 = vadd.f32 %v10978_v21, %v4595_v49  ;;  %v4703_v53 = vpack.c.bf16 %v4669_v39, %v4667_v41  ;;  %6126 = vmatpush3.bf16.msra.mxu0 %v6974_v59  ;;  %v6988_v39 = vld [vmem:[%s11282_s6] sm:$0xff]   ;;  %v6989_v37 = vld [vmem:[%s11282_s6 + $0x178] sm:$0xff]  }
 0x624   :  { %v4702_v24 = vpack.c.bf16 %v4668_v34, %v4666_v43  ;;  %v4502_v11 = vpop.permute.xlu1 %4501  ;;  %v4634_v17 = vadd.f32 %v10932_v47, %v4594_v29  ;;  %6127 = vmatprep.subr.bf16.mxu0 %v6982_v20  ;;  %v6990_v34 = vld [vmem:[%s11282_s6 + $0xd8] sm:$0xff]  }
 0x625   :  { %v4553_v16 = vsel %vm4551_vm9, %v4500_v23, %v4502_v11  ;;  %v4597_v38 = vmax.f32 %v12178_v45, %v4502_v11  ;;  %v4663_v8 = vmax.f32 %v4635_v50, 0.0  ;;  %v6996_v23 = vld [vmem:[%s11282_s6 + $0x90] sm:$0xff]   ;;  %v6998_v11 = vld [vmem:[%s11282_s6 + $0xc8] sm:$0xff]  }
 0x626   :  { %v4596_v42 = vmax.f32 %v12181_v54, %v4553_v16  ;;  %4765 = vmatpush1.bf16.msra.mxu1 %v4704_v31  ;;  %v4662_v10 = vmax.f32 %v4634_v17, 0.0  ;;  %v6972_v31 = vld [vmem:[%s11282_s6 + $0x30] sm:$0xff]   ;;  %v7000_v45 = vld [vmem:[%s11282_s6 + $0x88] sm:$0xff]  }
 0x627   :  { %v4637_v4 = vadd.f32 %v10978_v21, %v4597_v38  ;;  %4766 = vmatprep.subr.bf16.mxu1 %v4703_v53  ;;  %v6962_v21 = vld [vmem:[%s11281_s5 + $0x10] sm:$0xff]   ;;  %6128 = vmatpush3.bf16.msra.mxu0 %v6984_v28  ;;  %v7002_v53 = vld [vmem:[%s11282_s6 + $0xc0] sm:$0xff]  }
 0x628   :  { %v4636_v30 = vadd.f32 %v10932_v47, %v4596_v42  ;;  %v6961_v47 = vld [vmem:[%s11281_s5 + $0x8] sm:$0xff]   ;;  %6129 = vmatprep.subr.bf16.mxu0 %v6990_v34  ;;  %v7001_v28 = vld [vmem:[%s11282_s6 + $0x160] sm:$0xff]  }
 0x629   :  { %v4665_v7 = vmax.f32 %v4637_v4, 0.0 }
 0x62a   :  { %v4664_v48 = vmax.f32 %v4636_v30, 0.0  ;;  %4767 = vmatpush1.bf16.msra.mxu1 %v4702_v24 }
 0x62b   :  { %v4701_v46 = vpack.c.bf16 %v4665_v7, %v4663_v8  ;;  %6130 = vmatpush3.bf16.msra.mxu0 %v6992_v56  ;;  %v7006_v56 = vld [vmem:[%s11282_s6 + $0x118] sm:$0xff]  }
 0x62c   :  { %v4700_v26 = vpack.c.bf16 %v4664_v48, %v4662_v10  ;;  %6131 = vmatprep.subr.bf16.mxu0 %v6994_v9 }
 0x62d   :  { %4768 = vmatprep.subr.bf16.mxu1 %v4701_v46  ;;  %v7051_v46 = vmov 0.0  }
 0x62e   :  { %4769 = vmatpush1.bf16.msra.mxu1 %v4700_v26 }
 0x62f   :  { %6099 = vmatprep.subr.bf16.mxu1 %v6969_v52  ;;  %6132 = vmatpush3.bf16.msra.mxu0 %v6996_v23 }
 0x630   :  { %6133 = vmatprep.subr.bf16.mxu0 %v6998_v11  ;;  %v7009_v11 = vld [vmem:[%s11282_s6 + $0x148] sm:$0xff]  }
 0x631   :  { %5815 = vmatmul.mubr.msk.bf16.vlgmr.msra.gmra.mxu1 %vm139_vm2, %v6960_v15 }
 0x632   :  { %4796 = vmatprep.mubr.bf16.mxu1 %v12182_v14  ;;  %6100 = vmatpush3.bf16.msra.mxu1 %v6970_v62  ;;  %v6993_v62 = vld [vmem:[%s11282_s6 + $0x170] sm:$0xff]  }
 0x633   :  { %6101 = vmatprep.subr.bf16.mxu1 %v6971_v44  ;;  %6134 = vmatpush3.bf16.msra.mxu0 %v7000_v45  ;;  %v7010_v45 = vld [vmem:[%s11282_s6 + $0x108] sm:$0xff]  }
 0x634   :  { %6135 = vmatprep.subr.bf16.mxu0 %v7002_v53 }
 0x636   :  { %6102 = vmatpush3.bf16.msra.mxu1 %v6972_v31  ;;  %v6997_v31 = vld [vmem:[%s11282_s6 + $0x168] sm:$0xff]  }
 0x637   :  { %6103 = vmatprep.subr.bf16.mxu1 %v6975_v51  ;;  %6136 = vmatpush3.bf16.msra.mxu0 %v7004_v27 }
 0x638   :  { %6215 = vmatprep.subr.bf16.mxu0 %v7051_v46 }
 0x639   :  { %5816 = vmatmul.mubr.msk.bf16.gmra.mxu1 %vm139_vm2, %v6961_v47 }
 0x63a   :  { %4806 = vmatprep.mubr.bf16.mxu1 %v12182_v14  ;;  %6104 = vmatpush3.bf16.msra.mxu1 %v6976_v57  ;;  %v6999_v57 = vld [vmem:[%s11282_s6 + $0x128] sm:$0xff]  }
 0x63b   :  { %6105 = vmatprep.subr.bf16.mxu1 %v6977_v5 }
 0x63e   :  { %6106 = vmatpush3.bf16.msra.mxu1 %v6978_v18 }
 0x63f   :  { %6107 = vmatprep.subr.bf16.mxu1 %v6979_v61 }
 0x641   :  { %5817 = vmatmul.mubr.msk.bf16.gmra.mxu1 %vm139_vm2, %v6962_v21 }
 0x642   :  { %4816 = vmatprep.mubr.bf16.mxu1 %v12182_v14  ;;  %6108 = vmatpush3.bf16.msra.mxu1 %v6980_v13 }
 0x643   :  { %6109 = vmatprep.subr.bf16.mxu1 %v6981_v2 }
 0x646   :  { %6110 = vmatpush3.bf16.msra.mxu1 %v6983_v1 }
 0x647   :  { %6111 = vmatprep.subr.bf16.mxu1 %v6985_v36 }
 0x649   :  { %5818 = vmatmul.mubr.msk.bf16.gmra.mxu1 %vm139_vm2, %v6963_v63 }
 0x64a   :  { %4826 = vmatprep.mubr.bf16.mxu1 %v12182_v14  ;;  %6112 = vmatpush3.bf16.msra.mxu1 %v6986_v3  ;;  %v7003_v3 = vld [vmem:[%s11282_s6 + $0x120] sm:$0xff]  }
 0x64b   :  { %6113 = vmatprep.subr.bf16.mxu1 %v6987_v12 }
 0x64e   :  { %6114 = vmatpush3.bf16.msra.mxu1 %v6988_v39  ;;  %v7005_v39 = vld [vmem:[%s11282_s6 + $0x158] sm:$0xff]  }
 0x64f   :  { %6143 = vmatprep.subr.bf16.mxu1 %v6989_v37 }
 0x651   :  { %5819 = vmatmul.mubr.msk.bf16.gmra.mxu1 %vm139_vm2, %v6964_v0 }
 0x6f1   :  { %v11136_v40 = vpop.f32.mrf.mxu1 }
 0x6f3   :  { %v4790_v22 = vpop.f32.mrf.mxu1 }
 0x6f5   :  { %v11144_v60 = vpop.f32.mrf.mxu1 }
 0x6f6   :  { %v4898_v33 = vpack.c.bf16 %v11144_v60, %v11136_v40 }
 0x6f7   :  { %v4794_v49 = vpop.f32.mrf.mxu1 }
 0x6f9   :  { %v4798_v43 = vpop.f32.mrf.mxu1 }
 0x6fb   :  { %v4800_v32 = vpop.f32.mrf.mxu1 }
 0x6fd   :  { %v4802_v29 = vpop.f32.mrf.mxu1 }
 0x6fe   :  { %v6740_v41 = vpack.i.bf16 %v4802_v29, %v4798_v43  ;;  %v7007_v29 = vld [vmem:[%s11282_s6 + $0x150] sm:$0xff]  }
 0x6ff   :  { %v4804_v24 = vpop.f32.mrf.mxu1 }
 0x700   :  { %v6745_v50 = vpack.i.bf16 %v4804_v24, %v4800_v32  ;;  %6741 = vrot.lane.b32.xlu0 %v6740_v41, %s7048_s0  ;;  %v7013_v32 = vld [vmem:[%s11282_s6 + $0x188] sm:$0xff]   ;;  %v7008_v41 = vld [vmem:[%s11282_s6 + $0x110] sm:$0xff]   ;;  %v7014_v24 = vld [vmem:[%s11282_s6 + $0x180] sm:$0xff]  }
 0x701   :  { %v4808_v16 = vpop.f32.mrf.mxu1 }
 0x702   :  { %6746 = vrot.lane.b32.xlu1 %v6745_v50, %s7048_s0 }
 0x703   :  { %v4810_v38 = vpop.f32.mrf.mxu1 }
 0x704   :  { %v6750_v17 = vpack.i.bf16 %v4810_v38, %v4808_v16  ;;  %v7011_v38 = vld [vmem:[%s11282_s6 + $0x140] sm:$0xff]  }
 0x705   :  { %v4812_v25 = vpop.f32.mrf.mxu1 }
 0x706   :  { %6751 = vrot.lane.b32.xlu1 %v6750_v17, %s7050_s27 }
 0x707   :  { %v4814_v54 = vpop.f32.mrf.mxu1 }
 0x708   :  { %v6755_v42 = vpack.i.bf16 %v4814_v54, %v4812_v25  ;;  %v7012_v25 = vld [vmem:[%s11282_s6 + $0x100] sm:$0xff]  }
 0x709   :  { %v4818_v4 = vpop.f32.mrf.mxu1 }
 0x70a   :  { %6756 = vrot.lane.b32.xlu0 %v6755_v42, %s7050_s27 }
 0x70b   :  { %v4820_v30 = vpop.f32.mrf.mxu1 }
 0x70d   :  { %v4822_v8 = vpop.f32.mrf.mxu1 }
 0x70e   :  { %v6760_v7 = vpack.i.bf16 %v4822_v8, %v4818_v4  ;;  %v7015_v4 = vld [vmem:[%s11284_s8 + $0x18] sm:$0xff]   ;;  %v7017_v8 = vld [vmem:[%s11284_s8 + $0x8] sm:$0xff]  }
 0x70f   :  { %v4824_v10 = vpop.f32.mrf.mxu1 }
 0x710   :  { %6761 = vrot.lane.b32.xlu0 %v6760_v7, %s7049_s3  ;;  %v6765_v48 = vpack.i.bf16 %v4824_v10, %v4820_v30  ;;  %v7016_v30 = vld [vmem:[%s11284_s8 + $0x10] sm:$0xff]   ;;  %v7018_v7 = vld [vmem:[%s11284_s8] sm:$0xff]  }
 0x711   :  { %v4828_v26 = vpop.f32.mrf.mxu1 }
 0x712   :  { %6766 = vrot.lane.b32.xlu1 %v6765_v48, %s7049_s3 }
 0x713   :  { %v11180_v15 = vpop.f32.mrf.mxu1 }
 0x715   :  { %v4832_v6 = vpop.f32.mrf.mxu1 }
 0x716   :  { %v4903_v52 = vpack.c.bf16 %v4832_v6, %v4828_v26 }
 0x717   :  { %v4834_v23 = vpop.f32.mrf.mxu1 }
 0x718   :  { %v4904_v16 = vpack.c.bf16 %v4834_v23, %v11180_v15 }
 0x772   :  { %v6742_v14 = vpop.permute.xlu0 %6741 }
 0x773   :  { %v6744_v47 = vunpack.i.h.bf16 %v6742_v14  ;;  %v6743_v21 = vunpack.i.l.bf16 %v6742_v14 }
 0x774   :  { %v6747_v44 = vpop.permute.xlu1 %6746 }
 0x775   :  { %v4892_v63 = vsel %vm2268_vm8, %v4790_v22, %v6743_v21  ;;  %v4893_v0 = vsel %vm2268_vm8, %v4794_v49, %v6744_v47  ;;  %v6749_v5 = vunpack.i.h.bf16 %v6747_v44  ;;  %v6748_v13 = vunpack.i.l.bf16 %v6747_v44 }
 0x776   :  { %v4899_v35 = vpack.c.bf16 %v4893_v0, %v4892_v63 }
 0x777   :  { %v4850_v40 = vsel %vm2268_vm8, %v6744_v47, %v6749_v5 }
 0x778   :  { %5347 = vmatprep.mubr.bf16.mxu1 %v4899_v35  ;;  %v6752_v51 = vpop.permute.xlu1 %6751 }
 0x779   :  { %5348 = vmatmul.mubr.bf16.vlgmr.msra.gmra.mxu1 %v4898_v33  ;;  %v6754_v20 = vunpack.i.h.bf16 %v6752_v51  ;;  %v6753_v61 = vunpack.i.l.bf16 %v6752_v51  ;;  %v4849_v33 = vsel %vm2268_vm8, %v6743_v21, %v6748_v13 }
 0x77a   :  { %6144 = vmatpush3.bf16.msra.mxu1 %v6991_v55  ;;  %5429 = vmatprep.mubr.bf16.mxu1 %v4903_v52  ;;  %v5820_v55 = vld [vmem:[%s11283_s7] ss:$0 sm:$0xff] }
 0x77b   :  { %6145 = vmatprep.subr.bf16.mxu1 %v6993_v62  ;;  %v4868_v1 = vsel %vm4867_vm10, %v6753_v61, %v6754_v20  ;;  %v4894_v43 = vsel %vm4867_vm10, %v4849_v33, %v6753_v61 }
 0x77c   :  { %v6757_v19 = vpop.permute.xlu0 %6756 }
 0x77d   :  { %v6759_v59 = vunpack.i.h.bf16 %v6757_v19  ;;  %v6758_v18 = vunpack.i.l.bf16 %v6757_v19 }
 0x77e   :  { %6146 = vmatpush3.bf16.msra.mxu1 %v6995_v58 }
 0x77f   :  { %6147 = vmatprep.subr.bf16.mxu1 %v6997_v31  ;;  %v4869_v2 = vsel %vm4867_vm10, %v6758_v18, %v6759_v59  ;;  %v4895_v60 = vsel %vm4867_vm10, %v4850_v40, %v6758_v18 }
 0x780   :  { %v4900_v9 = vpack.c.bf16 %v4895_v60, %v4894_v43 }
 0x782   :  { %6148 = vmatpush3.bf16.msra.mxu1 %v6999_v57  ;;  %v6762_v36 = vpop.permute.xlu0 %6761 }
 0x783   :  { %v6764_v22 = vunpack.i.h.bf16 %v6762_v36  ;;  %v6763_v12 = vunpack.i.l.bf16 %v6762_v36  ;;  %6149 = vmatprep.subr.bf16.mxu1 %v7001_v28 }
 0x784   :  { %v6767_v50 = vpop.permute.xlu1 %6766 }
 0x785   :  { %v4896_v49 = vsel %vm4551_vm9, %v4868_v1, %v6763_v12  ;;  %v4897_v37 = vsel %vm4551_vm9, %v4869_v2, %v6764_v22  ;;  %v6769_v53 = vunpack.i.h.bf16 %v6767_v50  ;;  %v6768_v17 = vunpack.i.l.bf16 %v6767_v50 }
 0x786   :  { %6150 = vmatpush3.bf16.msra.mxu1 %v7003_v3  ;;  %v4901_v34 = vpack.c.bf16 %v4897_v37, %v4896_v49 }
 0x787   :  { %6151 = vmatprep.subr.bf16.mxu1 %v7005_v39  ;;  %v4887_v27 = vsel %vm4551_vm9, %v6764_v22, %v6769_v53  ;;  %v4886_v54 = vsel %vm4551_vm9, %v6763_v12, %v6768_v17  ;;  %v5872_v12 = vld [vmem:[%s11285_s9] ss:$0 sm:$0xff] }
 0x788   :  { %5388 = vmatprep.mubr.bf16.mxu0 %v4901_v34  ;;  %v4902_v42 = vpack.c.bf16 %v4887_v27, %v4886_v54 }
 0x789   :  { %5389 = vmatmul.mubr.bf16.vlgmr.msra.gmra.mxu0 %v4900_v9 }
 0x78a   :  { %6152 = vmatpush3.bf16.msra.mxu1 %v7006_v56  ;;  %6216 = vmatpush3.bf16.msra.mxu0 %v7013_v32 }
 0x78b   :  { %6153 = vmatprep.subr.bf16.mxu1 %v7007_v29  ;;  %6217 = vmatprep.subr.bf16.mxu0 %v7051_v46 }
 0x78c   :  { %6219 = vmatprep.mubr.msk.bf16.mxu0 %vm7052_vm11, %v7051_v46 }
 0x78e   :  { %6154 = vmatpush3.bf16.msra.mxu1 %v7008_v41  ;;  %6218 = vmatpush3.bf16.msra.mxu0 %v7014_v24 }
 0x78f   :  { %6155 = vmatprep.subr.bf16.mxu1 %v7009_v11  ;;  %6223 = vmatprep.subr.bf16.mxu0 %v7051_v46 }
 0x791   :  { %6220 = vmatmul.mubr.msk.bf16.vlgmr.msra.gmra.mxu0 %vm2268_vm8, %v4904_v16 }
 0x792   :  { %6156 = vmatpush3.bf16.msra.mxu1 %v7010_v45  ;;  %6231 = vmatprep.mubr.msk.bf16.mxu0 %vm7052_vm11, %v7051_v46 }
 0x793   :  { %6157 = vmatprep.subr.bf16.mxu1 %v7011_v38  ;;  %6224 = vmatpush3.bf16.msra.mxu0 %v7015_v4 }
 0x794   :  { %6225 = vmatprep.subr.bf16.mxu0 %v7051_v46 }
 0x796   :  { %6158 = vmatpush3.bf16.msra.mxu1 %v7012_v25 }
 0x797   :  { %6226 = vmatpush3.bf16.msra.mxu0 %v7016_v30 }
 0x798   :  { %6227 = vmatprep.subr.bf16.mxu0 %v7051_v46 }
 0x799   :  { %5430 = vmatmul.mubr.bf16.vlgmr.msra.gmra.mxu1 %v4902_v42 }
 0x79b   :  { %6228 = vmatpush3.bf16.msra.mxu0 %v7017_v8 }
 0x79c   :  { %6229 = vmatprep.subr.bf16.mxu0 %v7051_v46 }
 0x79f   :  { %6230 = vmatpush3.bf16.msra.mxu0 %v7018_v7 }
 0x839   :  { %v6115_v48 = vpop.f32.mrf.mxu1 }
 0x83b   :  { %v6116_v14 = vpop.f32.mrf.mxu1 }
 0x83c   :  { %v6117_v35 = vadd.f32 %v6116_v14, %v6115_v48 }
 0x83d   :  { %v6118_v63 = vpop.f32.mrf.mxu1 }
 0x83e   :  { %v5350_v58 = vadd.f32 %v6117_v35, %v5820_v55 }
 0x83f   :  { %v6119_v52 = vpop.f32.mrf.mxu1 }
 0x840   :  { %v6120_v31 = vadd.f32 %v6119_v52, %v6118_v63 }
 0x842   :  { %v5353_v5 = vadd.f32 %v6120_v31, %v5820_v55 }
 0x849   :  { %v6137_v10 = vpop.f32.mrf.mxu0 }
 0x84b   :  { %v6138_v26 = vpop.f32.mrf.mxu0 }
 0x84c   :  { %v6139_v44 = vadd.f32 %v6138_v26, %v6137_v10 }
 0x84d   :  { %v6140_v15 = vpop.f32.mrf.mxu0 }
 0x84e   :  { %v5391_v51 = vadd.f32 %v6139_v44, %v5350_v58 }
 0x84f   :  { %v6141_v47 = vpop.f32.mrf.mxu0 }
 0x850   :  { %v6142_v59 = vadd.f32 %v6141_v47, %v6140_v15 }
 0x851   :  { %v5472_v21 = vpop.f32.mrf.mxu0 }
 0x852   :  { %v5394_v61 = vadd.f32 %v6142_v59, %v5353_v5 }
 0x853   :  { %v6221_v0 = vpop.f32.mrf.mxu0 }
 0x855   :  { %v5475_v6 = vpop.f32.mrf.mxu0 }
 0x857   :  { %v6222_v62 = vpop.f32.mrf.mxu0 }
 0x859   :  { %v6159_v46 = vpop.f32.mrf.mxu1 }
 0x85b   :  { %v6160_v19 = vpop.f32.mrf.mxu1 }
 0x85c   :  { %v6161_v57 = vadd.f32 %v6160_v19, %v6159_v46 }
 0x85d   :  { %v6162_v20 = vpop.f32.mrf.mxu1 }
 0x85e   :  { %v5432_v28 = vadd.f32 %v6161_v57, %v5391_v51 }
 0x85f   :  { %v6163_v18 = vpop.f32.mrf.mxu1 }
 0x860   :  { %v6164_v13 = vadd.f32 %v6163_v18, %v6162_v20  ;;  %v5473_v2 = vadd.f32 %v5472_v21, %v5432_v28 }
 0x862   :  { %v5435_v1 = vadd.f32 %v6164_v13, %v5394_v61  ;;  %v5479_v3 = vmax.f32 %v5473_v2, 0.0 }
 0x864   :  { %v5476_v36 = vadd.f32 %v5475_v6, %v5435_v1 }
 0x866   :  { %v5480_v40 = vmax.f32 %v5476_v36, 0.0 }
 0x868   :  { %v5481_v22 = vpack.c.bf16 %v5480_v40, %v5479_v3 }
 0x86a   :  { %6232 = vmatmul.mubr.msk.bf16.vlgmr.msra.gmra.mxu0 %vm4867_vm10, %v5481_v22 }
 0x92a   :  { %v5558_v39 = vpop.f32.mrf.mxu0 }
 0x92b   :  { %v5559_v60 = vadd.f32 %v5872_v12, %v5558_v39 }
 0x92c   :  { %v6233_v33 = vpop.f32.mrf.mxu0 }
 0x92d   :  { %5565 = vst [vmem:[#allocation2] sm:$0xff] %v5559_v60 }
 0x92e   :  { %v5561_v49 = vpop.f32.mrf.mxu0 }
 0x92f   :  { %v5562_v37 = vadd.f32 %v5872_v12, %v5561_v49 }
 0x930   :  { %v6234_v43 = vpop.f32.mrf.mxu0 }
 0x931   :  { %5566 = vst [vmem:[#allocation2 + $0x8] sm:$0xff] %v5562_v37 }
 0x932   :  { %7030 = shalt.err (!%p7027_p4)
}
 0x933   :  { %s7054_s24 = smov 128   ;;  %s7055_s9 = smov 8  }
 0x934   :  { %5578 = dma.vmem_to_hbm [thread:$0]  %s5573_s1, 256, %s11286_s10, [#allocation3], %s7054_s24, %s7054_s24, %s7055_s9  }
 0x935   :  { %7039 = dma.done.wait [#allocation3], 256  }
 0x936   :  { %7040 = vsyncadd [#allocation3], 4294967040 }
 0x937   :  { %5582 = vsyncpa [#allocation3], 1 }

</bundles_post_ra>
